<compile_context>
chip_gen: v7x
topology: tpu7x:2x2x1
jax: 0.10.0
libtpu: 0.0.40
codegen_flags: <defaults>
</compile_context>

<pallas_src>
import functools
import numpy as np
import jax
import jax.numpy as jnp
from jax.experimental import pallas as pl
from jax.experimental.pallas import tpu as pltpu

_VMEM_LIMIT = 32 * 1024 * 1024


# ----------------------------- Pallas kernels ------------------------------

def _conv_mm_kernel(a_ref, w_ref, b_ref, o_ref, *, relu):
    # a: (tm, K) bf16 im2col patches, w: (K, N) bf16 (BN scale folded in),
    # b: (1, N) f32 folded BN bias.
    acc = jnp.dot(a_ref[...], w_ref[...], preferred_element_type=jnp.float32)
    y = acc + b_ref[...]
    if relu:
        y = jnp.maximum(y, 0.0)
    o_ref[...] = y.astype(o_ref.dtype)


def _conv_mm_res_kernel(a_ref, w_ref, b_ref, id_ref, o_ref):
    # conv2 of a basic block: matmul + bias + residual add + ReLU fused.
    acc = jnp.dot(a_ref[...], w_ref[...], preferred_element_type=jnp.float32)
    o_ref[...] = jnp.maximum(acc + b_ref[...] + id_ref[...],
                             0.0).astype(o_ref.dtype)


def _conv_mm_res_pool_kernel(a_ref, w_ref, b_ref, id_ref, p_ref, o_ref):
    # Final block's conv2: matmul + bias + residual + ReLU + global avg pool
    # expressed as a tiny (B, M) @ (M, N) matmul -> (B, N) features.
    acc = jnp.dot(a_ref[...], w_ref[...], preferred_element_type=jnp.float32)
    y = jnp.maximum(acc + b_ref[...] + id_ref[...], 0.0)
    o_ref[...] = jnp.dot(p_ref[...], y,
                         preferred_element_type=jnp.float32).astype(o_ref.dtype)


def _maxpool_kernel(x_ref, o_ref):
    # x: (9, tr, L) shifted window slabs; elementwise VPU max tree over axis 0.
    m = x_ref[0]
    for k in range(1, 9):
        m = jnp.maximum(m, x_ref[k])
    o_ref[...] = m


def _avgpool_kernel(x_ref, o_ref):
    # Fallback only: (B, HW, C) -> (B, C).
    o_ref[...] = jnp.mean(x_ref[...], axis=1)


# --------------------------- tiling / call helpers ---------------------------

def _pick_tm(M):
    # Largest row tile in {512,256,128} that still leaves >= 2 grid blocks
    # (keeps both v7x TensorCores busy); otherwise a single full block.
    for tm in (512, 256, 128):
        if M % tm == 0 and M // tm >= 2:
            return tm
    return M


def _pick_rows(R):
    for t in (1024, 512, 256):
        if R % t == 0 and R // t >= 2:
            return t
    return R


def _pad_k(a, w):
    # Pad the contraction dim to a multiple of 128 (unmasked MXU lane tiles).
    K = a.shape[1]
    Kp = ((K + 127) // 128) * 128
    if Kp != K:
        a = jnp.pad(a, ((0, 0), (0, Kp - K)))
        w = jnp.pad(w, ((0, Kp - K), (0, 0)))
    return a, w


def _mm_params():
    return pltpu.CompilerParams(dimension_semantics=("parallel",),
                                vmem_limit_bytes=_VMEM_LIMIT)


def _matmul_bias(a, w, bias, relu):
    a, w = _pad_k(a, w)
    M, K = a.shape
    N = w.shape[1]
    tm = _pick_tm(M)
    kernel = functools.partial(_conv_mm_kernel, relu=relu)
    return pl.pallas_call(
        kernel,
        out_shape=jax.ShapeDtypeStruct((M, N), jnp.float32),
        grid=(M // tm,),
        in_specs=[
            pl.BlockSpec((tm, K), lambda i: (i, 0)),
            pl.BlockSpec((K, N), lambda i: (0, 0)),
            pl.BlockSpec((1, N), lambda i: (0, 0)),
        ],
        out_specs=pl.BlockSpec((tm, N), lambda i: (i, 0)),
        compiler_params=_mm_params(),
    )(a.astype(jnp.bfloat16), w.astype(jnp.bfloat16), bias.reshape(1, N))


def _matmul_bias_res(a, w, bias, identity):
    a, w = _pad_k(a, w)
    M, K = a.shape
    N = w.shape[1]
    tm = _pick_tm(M)
    return pl.pallas_call(
        _conv_mm_res_kernel,
        out_shape=jax.ShapeDtypeStruct((M, N), jnp.float32),
        grid=(M // tm,),
        in_specs=[
            pl.BlockSpec((tm, K), lambda i: (i, 0)),
            pl.BlockSpec((K, N), lambda i: (0, 0)),
            pl.BlockSpec((1, N), lambda i: (0, 0)),
            pl.BlockSpec((tm, N), lambda i: (i, 0)),
        ],
        out_specs=pl.BlockSpec((tm, N), lambda i: (i, 0)),
        compiler_params=_mm_params(),
    )(a.astype(jnp.bfloat16), w.astype(jnp.bfloat16), bias.reshape(1, N),
      identity)


def _matmul_bias_res_pool(a, w, bias, identity, pool_mat):
    # Single-block fused conv + bias + residual + ReLU + global average pool.
    a, w = _pad_k(a, w)
    M, K = a.shape
    N = w.shape[1]
    B = pool_mat.shape[0]
    return pl.pallas_call(
        _conv_mm_res_pool_kernel,
        out_shape=jax.ShapeDtypeStruct((B, N), jnp.float32),
        in_specs=[
            pl.BlockSpec((M, K), lambda: (0, 0)),
            pl.BlockSpec((K, N), lambda: (0, 0)),
            pl.BlockSpec((1, N), lambda: (0, 0)),
            pl.BlockSpec((M, N), lambda: (0, 0)),
            pl.BlockSpec((B, M), lambda: (0, 0)),
        ],
        out_specs=pl.BlockSpec((B, N), lambda: (0, 0)),
        compiler_params=pltpu.CompilerParams(vmem_limit_bytes=_VMEM_LIMIT),
    )(a.astype(jnp.bfloat16), w.astype(jnp.bfloat16), bias.reshape(1, N),
      identity, pool_mat)


def _maxpool_call(wins):  # wins: (9, R, L) with L lane-dense (128 when possible)
    _, R, L = wins.shape
    tr = _pick_rows(R)
    return pl.pallas_call(
        _maxpool_kernel,
        out_shape=jax.ShapeDtypeStruct((R, L), jnp.float32),
        grid=(R // tr,),
        in_specs=[pl.BlockSpec((9, tr, L), lambda i: (0, i, 0))],
        out_specs=pl.BlockSpec((tr, L), lambda i: (i, 0)),
        compiler_params=_mm_params(),
    )(wins)


def _avgpool_call(x):  # fallback only: (B, HW, C) -> (B, C)
    B, HW, C = x.shape
    return pl.pallas_call(
        _avgpool_kernel,
        out_shape=jax.ShapeDtypeStruct((B, C), jnp.float32),
        in_specs=[pl.BlockSpec((B, HW, C), lambda: (0, 0, 0))],
        out_specs=pl.BlockSpec((B, C), lambda: (0, 0)),
        compiler_params=pltpu.CompilerParams(vmem_limit_bytes=_VMEM_LIMIT),
    )(x)


# ------------------------------- glue (JAX) ---------------------------------

def _extract_patches(x, kh, kw, stride, pad, pad_value=0.0):
    # x: (B, H, W, C) NHWC -> (B, Ho, Wo, kh*kw*C), K ordered as (ki, kj, cin).
    B, H, W, C = x.shape
    xp = jnp.pad(x, ((0, 0), (pad, pad), (pad, pad), (0, 0)),
                 constant_values=pad_value)
    Ho = (H + 2 * pad - kh) // stride + 1
    Wo = (W + 2 * pad - kw) // stride + 1
    cols = []
    for ki in range(kh):
        for kj in range(kw):
            cols.append(xp[:, ki:ki + stride * Ho:stride,
                           kj:kj + stride * Wo:stride, :])
    return jnp.concatenate(cols, axis=-1), Ho, Wo


def _conv_bn(x, w_pt, scale, bias, stride, pad, relu,
             identity=None, pool_mat=None):
    # w_pt: PyTorch layout (Cout, Cin, KH, KW); BN scale folded into weights.
    B = x.shape[0]
    Cout, Cin, KH, KW = w_pt.shape
    patches, Ho, Wo = _extract_patches(x, KH, KW, stride, pad)
    K = KH * KW * Cin
    a = patches.reshape(B * Ho * Wo, K)
    w = jnp.transpose(w_pt, (2, 3, 1, 0)).reshape(K, Cout) * scale[None, :]
    if pool_mat is not None:
        return _matmul_bias_res_pool(a, w, bias, identity, pool_mat)  # (B, Cout)
    if identity is not None:
        out = _matmul_bias_res(a, w, bias, identity)
    else:
        out = _matmul_bias(a, w, bias, relu)
    return out.reshape(B, Ho, Wo, Cout)


def _maxpool_3x3_s2(x):
    B, H, W, C = x.shape
    xp = jnp.pad(x, ((0, 0), (1, 1), (1, 1), (0, 0)), constant_values=-jnp.inf)
    Ho = (H + 2 - 3) // 2 + 1
    Wo = (W + 2 - 3) // 2 + 1
    wins = [xp[:, ki:ki + 2 * Ho:2, kj:kj + 2 * Wo:2, :]
            for ki in range(3) for kj in range(3)]
    total = B * Ho * Wo * C
    lanes = 128 if total % 128 == 0 else C      # lane-dense layout when possible
    stacked = jnp.stack(wins, axis=0).reshape(9, total // lanes, lanes)
    out = _maxpool_call(stacked)
    return out.reshape(B, Ho, Wo, C)


def _make_pool_matrix(B, HW):
    # (B, B*HW) block-diagonal averaging matrix (constant at trace time).
    return jnp.asarray(np.kron(np.eye(B), np.ones((1, HW))) / HW,
                       dtype=jnp.float32)


def _basic_block(x, p, stride, final_pool=False):
    out1 = _conv_bn(x, p["conv1_w"], p["bn1_scale"], p["bn1_bias"],
                    stride=stride, pad=1, relu=True)
    if "ds_w" in p:
        identity = _conv_bn(x, p["ds_w"], p["ds_scale"], p["ds_bias"],
                            stride=stride, pad=0, relu=False)
    else:
        identity = x
    B, H, W, C = out1.shape
    id2d = identity.reshape(B * H * W, C)
    if final_pool:
        M = B * H * W
        if M <= 512:
            pool = _make_pool_matrix(B, H * W)
            return _conv_bn(out1, p["conv2_w"], p["bn2_scale"], p["bn2_bias"],
                            stride=1, pad=1, relu=True,
                            identity=id2d, pool_mat=pool)   # (B, C)
        y = _conv_bn(out1, p["conv2_w"], p["bn2_scale"], p["bn2_bias"],
                     stride=1, pad=1, relu=True, identity=id2d)
        return _avgpool_call(y.reshape(B, H * W, C))
    return _conv_bn(out1, p["conv2_w"], p["bn2_scale"], p["bn2_bias"],
                    stride=1, pad=1, relu=True, identity=id2d)


def extractor_forward(x_nchw, params):
    # x_nchw: (B, 3, H, W) float32, as in the PyTorch module.  Returns (B, 128).
    x = jnp.transpose(x_nchw, (0, 2, 3, 1))  # -> NHWC
    x = _conv_bn(x, params["conv1_w"], params["bn1_scale"], params["bn1_bias"],
                 stride=2, pad=3, relu=True)
    x = _maxpool_3x3_s2(x)
    x = _basic_block(x, params["layer1"][0], stride=1)
    x = _basic_block(x, params["layer1"][1], stride=1)
    x = _basic_block(x, params["layer2"][0], stride=2)
    feats = _basic_block(x, params["layer2"][1], stride=1, final_pool=True)
    return feats  # (B, 128)


# ----------------------------- parameter init -------------------------------

def _init_conv(key, cout, cin, kh, kw):
    fan_in = cin * kh * kw
    return (jax.random.normal(key, (cout, cin, kh, kw), jnp.float32)
            * (1.0 / np.sqrt(fan_in)))


def _init_bn(key, c):
    k1, k2, k3 = jax.random.split(key, 3)
    gamma = 1.0 + 0.1 * jax.random.normal(k1, (c,), jnp.float32)
    beta = 0.1 * jax.random.normal(k2, (c,), jnp.float32)
    running_mean = 0.1 * jax.random.normal(k3, (c,), jnp.float32)
    running_var = jnp.ones((c,), jnp.float32)
    eps = 1e-5
    scale = gamma / jnp.sqrt(running_var + eps)
    bias = beta - running_mean * scale
    return scale, bias


def _init_basic_block(key, cin, cout, downsample):
    ks = jax.random.split(key, 6)
    p = {}
    p["conv1_w"] = _init_conv(ks[0], cout, cin, 3, 3)
    p["bn1_scale"], p["bn1_bias"] = _init_bn(ks[1], cout)
    p["conv2_w"] = _init_conv(ks[2], cout, cout, 3, 3)
    p["bn2_scale"], p["bn2_bias"] = _init_bn(ks[3], cout)
    if downsample:
        p["ds_w"] = _init_conv(ks[4], cout, cin, 1, 1)
        p["ds_scale"], p["ds_bias"] = _init_bn(ks[5], cout)
    return p


def init_params(key):
    ks = jax.random.split(key, 8)
    params = {}
    params["conv1_w"] = _init_conv(ks[0], 64, 3, 7, 7)
    params["bn1_scale"], params["bn1_bias"] = _init_bn(ks[1], 64)
    params["layer1"] = [
        _init_basic_block(ks[2], 64, 64, downsample=False),
        _init_basic_block(ks[3], 64, 64, downsample=False),
    ]
    params["layer2"] = [
        _init_basic_block(ks[4], 64, 128, downsample=True),
        _init_basic_block(ks[5], 128, 128, downsample=False),
    ]
    return params


# ---------------------------------- main -------------------------------------

if __name__ == "__main__":
    key = jax.random.PRNGKey(0)
    kp, kx = jax.random.split(key)
    params = init_params(kp)
    x = jax.random.normal(kx, (2, 3, 32, 32), jnp.float32)  # NCHW input
    feats = jax.jit(extractor_forward)(x, params)
    feats = jax.block_until_ready(feats)
    assert feats.shape == (2, 128), feats.shape
    assert feats.dtype == jnp.float32
    print("KERNEL_OK")
</pallas_src>

<mosaic_0001>
module attributes {stable_mosaic.version = 11 : i64} {
  func.func @_conv_mm_kernel(%arg0: i32, %arg1: memref<256x256xbf16, #tpu.memory_space<vmem>>, %arg2: memref<256x64xbf16, #tpu.memory_space<vmem>>, %arg3: memref<1x64xf32, #tpu.memory_space<vmem>>, %arg4: memref<256x64xf32, #tpu.memory_space<vmem>>) attributes {dimension_semantics = [#tpu.dimension_semantics<parallel>], iteration_bounds = array<i64: 2>, scalar_prefetch = 0 : i64, scratch_operands = 0 : i64, tpu.core_type = #tpu.core_type<tc>, window_params = [{transform_indices = @transform_0, window_bounds = array<i64: 256, 256>}, {pipeline_mode = #tpu.pipeline_mode<synchronous>, transform_indices = @transform_1, window_bounds = array<i64: 256, 64>}, {pipeline_mode = #tpu.pipeline_mode<synchronous>, transform_indices = @transform_2, window_bounds = array<i64: 1, 64>}, {transform_indices = @transform_3, window_bounds = array<i64: 256, 64>}]} {
    %c0 = arith.constant 0 : index
    %c0_0 = arith.constant 0 : index
    %0 = vector.load %arg1[%c0, %c0_0] : memref<256x256xbf16, #tpu.memory_space<vmem>>, vector<256x256xbf16>
    %c0_1 = arith.constant 0 : index
    %c0_2 = arith.constant 0 : index
    %1 = vector.load %arg2[%c0_1, %c0_2] : memref<256x64xbf16, #tpu.memory_space<vmem>>, vector<256x64xbf16>
    %cst = arith.constant dense<0.000000e+00> : vector<256x64xf32>
    %2 = tpu.matmul %0, %1, %cst {dimension_numbers = #tpu.dot_dimension_numbers<[1], [0], [0], [1], [0, 0, 1, 1], [], []>} : vector<256x256xbf16>, vector<256x64xbf16>, vector<256x64xf32> -> vector<256x64xf32>
    %c0_3 = arith.constant 0 : index
    %c0_4 = arith.constant 0 : index
    %3 = vector.load %arg3[%c0_3, %c0_4] : memref<1x64xf32, #tpu.memory_space<vmem>>, vector<1x64xf32>
    %4 = vector.broadcast %3 : vector<1x64xf32> to vector<256x64xf32>
    %5 = arith.addf %2, %4 : vector<256x64xf32>
    %cst_5 = arith.constant 0.000000e+00 : f32
    %6 = vector.broadcast %cst_5 : f32 to vector<256x64xf32>
    %7 = arith.maximumf %5, %6 : vector<256x64xf32>
    %c0_6 = arith.constant 0 : index
    %c0_7 = arith.constant 0 : index
    %8 = vector.load %arg4[%c0_6, %c0_7] : memref<256x64xf32, #tpu.memory_space<vmem>>, vector<256x64xf32>
    tpu.vector_store %arg4[%c0_6, %c0_7], %7 {strides = array<i32>} : memref<256x64xf32, #tpu.memory_space<vmem>>, vector<256x64xf32>,
    return
  }
  func.func @transform_0(%arg0: i32) -> (i32, i32) {
    %c0_i32 = arith.constant 0 : i32
    %c0_i32_0 = arith.constant 0 : i32
    return %arg0, %c0_i32 : i32, i32
  }
  func.func @transform_1(%arg0: i32) -> (i32, i32) {
    %c0_i32 = arith.constant 0 : i32
    %c0_i32_0 = arith.constant 0 : i32
    %c0_i32_1 = arith.constant 0 : i32
    return %c0_i32, %c0_i32_0 : i32, i32
  }
  func.func @transform_2(%arg0: i32) -> (i32, i32) {
    %c0_i32 = arith.constant 0 : i32
    %c0_i32_0 = arith.constant 0 : i32
    %c0_i32_1 = arith.constant 0 : i32
    return %c0_i32, %c0_i32_0 : i32, i32
  }
  func.func @transform_3(%arg0: i32) -> (i32, i32) {
    %c0_i32 = arith.constant 0 : i32
    %c0_i32_0 = arith.constant 0 : i32
    return %arg0, %c0_i32 : i32, i32
  }
}

module attributes {stable_mosaic.version = 11 : i64} {
  func.func @_maxpool_kernel(%arg0: i32, %arg1: memref<9x64x128xf32, #tpu.memory_space<vmem>>, %arg2: memref<64x128xf32, #tpu.memory_space<vmem>>) attributes {dimension_semantics = [#tpu.dimension_semantics<parallel>], iteration_bounds = array<i64: 1>, scalar_prefetch = 0 : i64, scratch_operands = 0 : i64, tpu.core_type = #tpu.core_type<tc>, window_params = [{transform_indices = @transform_0, window_bounds = array<i64: 9, 64, 128>}, {transform_indices = @transform_1, window_bounds = array<i64: 64, 128>}]} {
    %c0 = arith.constant 0 : index
    %c0_0 = arith.constant 0 : index
    %c0_1 = arith.constant 0 : index
    %0 = vector.load %arg1[%c0, %c0_0, %c0_1] : memref<9x64x128xf32, #tpu.memory_space<vmem>>, vector<1x64x128xf32>
    %1 = vector.shape_cast %0 : vector<1x64x128xf32> to vector<64x128xf32>
    %c1 = arith.constant 1 : index
    %c0_2 = arith.constant 0 : index
    %c0_3 = arith.constant 0 : index
    %2 = vector.load %arg1[%c1, %c0_2, %c0_3] : memref<9x64x128xf32, #tpu.memory_space<vmem>>, vector<1x64x128xf32>
    %3 = vector.shape_cast %2 : vector<1x64x128xf32> to vector<64x128xf32>
    %4 = arith.maximumf %1, %3 : vector<64x128xf32>
    %c2 = arith.constant 2 : index
    %c0_4 = arith.constant 0 : index
    %c0_5 = arith.constant 0 : index
    %5 = vector.load %arg1[%c2, %c0_4, %c0_5] : memref<9x64x128xf32, #tpu.memory_space<vmem>>, vector<1x64x128xf32>
    %6 = vector.shape_cast %5 : vector<1x64x128xf32> to vector<64x128xf32>
    %7 = arith.maximumf %4, %6 : vector<64x128xf32>
    %c3 = arith.constant 3 : index
    %c0_6 = arith.constant 0 : index
    %c0_7 = arith.constant 0 : index
    %8 = vector.load %arg1[%c3, %c0_6, %c0_7] : memref<9x64x128xf32, #tpu.memory_space<vmem>>, vector<1x64x128xf32>
    %9 = vector.shape_cast %8 : vector<1x64x128xf32> to vector<64x128xf32>
    %10 = arith.maximumf %7, %9 : vector<64x128xf32>
    %c4 = arith.constant 4 : index
    %c0_8 = arith.constant 0 : index
    %c0_9 = arith.constant 0 : index
    %11 = vector.load %arg1[%c4, %c0_8, %c0_9] : memref<9x64x128xf32, #tpu.memory_space<vmem>>, vector<1x64x128xf32>
    %12 = vector.shape_cast %11 : vector<1x64x128xf32> to vector<64x128xf32>
    %13 = arith.maximumf %10, %12 : vector<64x128xf32>
    %c5 = arith.constant 5 : index
    %c0_10 = arith.constant 0 : index
    %c0_11 = arith.constant 0 : index
    %14 = vector.load %arg1[%c5, %c0_10, %c0_11] : memref<9x64x128xf32, #tpu.memory_space<vmem>>, vector<1x64x128xf32>
    %15 = vector.shape_cast %14 : vector<1x64x128xf32> to vector<64x128xf32>
    %16 = arith.maximumf %13, %15 : vector<64x128xf32>
    %c6 = arith.constant 6 : index
    %c0_12 = arith.constant 0 : index
    %c0_13 = arith.constant 0 : index
    %17 = vector.load %arg1[%c6, %c0_12, %c0_13] : memref<9x64x128xf32, #tpu.memory_space<vmem>>, vector<1x64x128xf32>
    %18 = vector.shape_cast %17 : vector<1x64x128xf32> to vector<64x128xf32>
    %19 = arith.maximumf %16, %18 : vector<64x128xf32>
    %c7 = arith.constant 7 : index
    %c0_14 = arith.constant 0 : index
    %c0_15 = arith.constant 0 : index
    %20 = vector.load %arg1[%c7, %c0_14, %c0_15] : memref<9x64x128xf32, #tpu.memory_space<vmem>>, vector<1x64x128xf32>
    %21 = vector.shape_cast %20 : vector<1x64x128xf32> to vector<64x128xf32>
    %22 = arith.maximumf %19, %21 : vector<64x128xf32>
    %c8 = arith.constant 8 : index
    %c0_16 = arith.constant 0 : index
    %c0_17 = arith.constant 0 : index
    %23 = vector.load %arg1[%c8, %c0_16, %c0_17] : memref<9x64x128xf32, #tpu.memory_space<vmem>>, vector<1x64x128xf32>
    %24 = vector.shape_cast %23 : vector<1x64x128xf32> to vector<64x128xf32>
    %25 = arith.maximumf %22, %24 : vector<64x128xf32>
    %c0_18 = arith.constant 0 : index
    %c0_19 = arith.constant 0 : index
    %26 = vector.load %arg2[%c0_18, %c0_19] : memref<64x128xf32, #tpu.memory_space<vmem>>, vector<64x128xf32>
    tpu.vector_store %arg2[%c0_18, %c0_19], %25 {strides = array<i32>} : memref<64x128xf32, #tpu.memory_space<vmem>>, vector<64x128xf32>,
    return
  }
  func.func @transform_0(%arg0: i32) -> (i32, i32, i32) {
    %c0_i32 = arith.constant 0 : i32
    %c0_i32_0 = arith.constant 0 : i32
    %c0_i32_1 = arith.constant 0 : i32
    return %c0_i32, %arg0, %c0_i32_0 : i32, i32, i32
  }
  func.func @transform_1(%arg0: i32) -> (i32, i32) {
    %c0_i32 = arith.constant 0 : i32
    %c0_i32_0 = arith.constant 0 : i32
    return %arg0, %c0_i32 : i32, i32
  }
}

module attributes {stable_mosaic.version = 11 : i64} {
  func.func @_conv_mm_kernel(%arg0: i32, %arg1: memref<128x640xbf16, #tpu.memory_space<vmem>>, %arg2: memref<640x64xbf16, #tpu.memory_space<vmem>>, %arg3: memref<1x64xf32, #tpu.memory_space<vmem>>, %arg4: memref<128x64xf32, #tpu.memory_space<vmem>>) attributes {dimension_semantics = [#tpu.dimension_semantics<parallel>], iteration_bounds = array<i64: 1>, scalar_prefetch = 0 : i64, scratch_operands = 0 : i64, tpu.core_type = #tpu.core_type<tc>, window_params = [{transform_indices = @transform_0, window_bounds = array<i64: 128, 640>}, {pipeline_mode = #tpu.pipeline_mode<synchronous>, transform_indices = @transform_1, window_bounds = array<i64: 640, 64>}, {pipeline_mode = #tpu.pipeline_mode<synchronous>, transform_indices = @transform_2, window_bounds = array<i64: 1, 64>}, {transform_indices = @transform_3, window_bounds = array<i64: 128, 64>}]} {
    %c0 = arith.constant 0 : index
    %c0_0 = arith.constant 0 : index
    %0 = vector.load %arg1[%c0, %c0_0] : memref<128x640xbf16, #tpu.memory_space<vmem>>, vector<128x640xbf16>
    %c0_1 = arith.constant 0 : index
    %c0_2 = arith.constant 0 : index
    %1 = vector.load %arg2[%c0_1, %c0_2] : memref<640x64xbf16, #tpu.memory_space<vmem>>, vector<640x64xbf16>
    %cst = arith.constant dense<0.000000e+00> : vector<128x64xf32>
    %2 = tpu.matmul %0, %1, %cst {dimension_numbers = #tpu.dot_dimension_numbers<[1], [0], [0], [1], [0, 0, 1, 1], [], []>} : vector<128x640xbf16>, vector<640x64xbf16>, vector<128x64xf32> -> vector<128x64xf32>
    %c0_3 = arith.constant 0 : index
    %c0_4 = arith.constant 0 : index
    %3 = vector.load %arg3[%c0_3, %c0_4] : memref<1x64xf32, #tpu.memory_space<vmem>>, vector<1x64xf32>
    %4 = vector.broadcast %3 : vector<1x64xf32> to vector<128x64xf32>
    %5 = arith.addf %2, %4 : vector<128x64xf32>
    %cst_5 = arith.constant 0.000000e+00 : f32
    %6 = vector.broadcast %cst_5 : f32 to vector<128x64xf32>
    %7 = arith.maximumf %5, %6 : vector<128x64xf32>
    %c0_6 = arith.constant 0 : index
    %c0_7 = arith.constant 0 : index
    %8 = vector.load %arg4[%c0_6, %c0_7] : memref<128x64xf32, #tpu.memory_space<vmem>>, vector<128x64xf32>
    tpu.vector_store %arg4[%c0_6, %c0_7], %7 {strides = array<i32>} : memref<128x64xf32, #tpu.memory_space<vmem>>, vector<128x64xf32>,
    return
  }
  func.func @transform_0(%arg0: i32) -> (i32, i32) {
    %c0_i32 = arith.constant 0 : i32
    %c0_i32_0 = arith.constant 0 : i32
    return %arg0, %c0_i32 : i32, i32
  }
  func.func @transform_1(%arg0: i32) -> (i32, i32) {
    %c0_i32 = arith.constant 0 : i32
    %c0_i32_0 = arith.constant 0 : i32
    %c0_i32_1 = arith.constant 0 : i32
    return %c0_i32, %c0_i32_0 : i32, i32
  }
  func.func @transform_2(%arg0: i32) -> (i32, i32) {
    %c0_i32 = arith.constant 0 : i32
    %c0_i32_0 = arith.constant 0 : i32
    %c0_i32_1 = arith.constant 0 : i32
    return %c0_i32, %c0_i32_0 : i32, i32
  }
  func.func @transform_3(%arg0: i32) -> (i32, i32) {
    %c0_i32 = arith.constant 0 : i32
    %c0_i32_0 = arith.constant 0 : i32
    return %arg0, %c0_i32 : i32, i32
  }
}

module attributes {stable_mosaic.version = 11 : i64} {
  func.func @_conv_mm_res_kernel(%arg0: i32, %arg1: memref<128x640xbf16, #tpu.memory_space<vmem>>, %arg2: memref<640x64xbf16, #tpu.memory_space<vmem>>, %arg3: memref<1x64xf32, #tpu.memory_space<vmem>>, %arg4: memref<128x64xf32, #tpu.memory_space<vmem>>, %arg5: memref<128x64xf32, #tpu.memory_space<vmem>>) attributes {dimension_semantics = [#tpu.dimension_semantics<parallel>], iteration_bounds = array<i64: 1>, scalar_prefetch = 0 : i64, scratch_operands = 0 : i64, tpu.core_type = #tpu.core_type<tc>, window_params = [{transform_indices = @transform_0, window_bounds = array<i64: 128, 640>}, {pipeline_mode = #tpu.pipeline_mode<synchronous>, transform_indices = @transform_1, window_bounds = array<i64: 640, 64>}, {pipeline_mode = #tpu.pipeline_mode<synchronous>, transform_indices = @transform_2, window_bounds = array<i64: 1, 64>}, {transform_indices = @transform_3, window_bounds = array<i64: 128, 64>}, {transform_indices = @transform_4, window_bounds = array<i64: 128, 64>}]} {
    %c0 = arith.constant 0 : index
    %c0_0 = arith.constant 0 : index
    %0 = vector.load %arg1[%c0, %c0_0] : memref<128x640xbf16, #tpu.memory_space<vmem>>, vector<128x640xbf16>
    %c0_1 = arith.constant 0 : index
    %c0_2 = arith.constant 0 : index
    %1 = vector.load %arg2[%c0_1, %c0_2] : memref<640x64xbf16, #tpu.memory_space<vmem>>, vector<640x64xbf16>
    %cst = arith.constant dense<0.000000e+00> : vector<128x64xf32>
    %2 = tpu.matmul %0, %1, %cst {dimension_numbers = #tpu.dot_dimension_numbers<[1], [0], [0], [1], [0, 0, 1, 1], [], []>} : vector<128x640xbf16>, vector<640x64xbf16>, vector<128x64xf32> -> vector<128x64xf32>
    %c0_3 = arith.constant 0 : index
    %c0_4 = arith.constant 0 : index
    %3 = vector.load %arg3[%c0_3, %c0_4] : memref<1x64xf32, #tpu.memory_space<vmem>>, vector<1x64xf32>
    %4 = vector.broadcast %3 : vector<1x64xf32> to vector<128x64xf32>
    %5 = arith.addf %2, %4 : vector<128x64xf32>
    %c0_5 = arith.constant 0 : index
    %c0_6 = arith.constant 0 : index
    %6 = vector.load %arg4[%c0_5, %c0_6] : memref<128x64xf32, #tpu.memory_space<vmem>>, vector<128x64xf32>
    %7 = arith.addf %5, %6 : vector<128x64xf32>
    %cst_7 = arith.constant 0.000000e+00 : f32
    %8 = vector.broadcast %cst_7 : f32 to vector<128x64xf32>
    %9 = arith.maximumf %7, %8 : vector<128x64xf32>
    %c0_8 = arith.constant 0 : index
    %c0_9 = arith.constant 0 : index
    %10 = vector.load %arg5[%c0_8, %c0_9] : memref<128x64xf32, #tpu.memory_space<vmem>>, vector<128x64xf32>
    tpu.vector_store %arg5[%c0_8, %c0_9], %9 {strides = array<i32>} : memref<128x64xf32, #tpu.memory_space<vmem>>, vector<128x64xf32>,
    return
  }
  func.func @transform_0(%arg0: i32) -> (i32, i32) {
    %c0_i32 = arith.constant 0 : i32
    %c0_i32_0 = arith.constant 0 : i32
    return %arg0, %c0_i32 : i32, i32
  }
  func.func @transform_1(%arg0: i32) -> (i32, i32) {
    %c0_i32 = arith.constant 0 : i32
    %c0_i32_0 = arith.constant 0 : i32
    %c0_i32_1 = arith.constant 0 : i32
    return %c0_i32, %c0_i32_0 : i32, i32
  }
  func.func @transform_2(%arg0: i32) -> (i32, i32) {
    %c0_i32 = arith.constant 0 : i32
    %c0_i32_0 = arith.constant 0 : i32
    %c0_i32_1 = arith.constant 0 : i32
    return %c0_i32, %c0_i32_0 : i32, i32
  }
  func.func @transform_3(%arg0: i32) -> (i32, i32) {
    %c0_i32 = arith.constant 0 : i32
    %c0_i32_0 = arith.constant 0 : i32
    return %arg0, %c0_i32 : i32, i32
  }
  func.func @transform_4(%arg0: i32) -> (i32, i32) {
    %c0_i32 = arith.constant 0 : i32
    %c0_i32_0 = arith.constant 0 : i32
    return %arg0, %c0_i32 : i32, i32
  }
}

module attributes {stable_mosaic.version = 11 : i64} {
  func.func @_conv_mm_kernel(%arg0: i32, %arg1: memref<32x640xbf16, #tpu.memory_space<vmem>>, %arg2: memref<640x128xbf16, #tpu.memory_space<vmem>>, %arg3: memref<1x128xf32, #tpu.memory_space<vmem>>, %arg4: memref<32x128xf32, #tpu.memory_space<vmem>>) attributes {dimension_semantics = [#tpu.dimension_semantics<parallel>], iteration_bounds = array<i64: 1>, scalar_prefetch = 0 : i64, scratch_operands = 0 : i64, tpu.core_type = #tpu.core_type<tc>, window_params = [{transform_indices = @transform_0, window_bounds = array<i64: 32, 640>}, {pipeline_mode = #tpu.pipeline_mode<synchronous>, transform_indices = @transform_1, window_bounds = array<i64: 640, 128>}, {pipeline_mode = #tpu.pipeline_mode<synchronous>, transform_indices = @transform_2, window_bounds = array<i64: 1, 128>}, {transform_indices = @transform_3, window_bounds = array<i64: 32, 128>}]} {
    %c0 = arith.constant 0 : index
    %c0_0 = arith.constant 0 : index
    %0 = vector.load %arg1[%c0, %c0_0] : memref<32x640xbf16, #tpu.memory_space<vmem>>, vector<32x640xbf16>
    %c0_1 = arith.constant 0 : index
    %c0_2 = arith.constant 0 : index
    %1 = vector.load %arg2[%c0_1, %c0_2] : memref<640x128xbf16, #tpu.memory_space<vmem>>, vector<640x128xbf16>
    %cst = arith.constant dense<0.000000e+00> : vector<32x128xf32>
    %2 = tpu.matmul %0, %1, %cst {dimension_numbers = #tpu.dot_dimension_numbers<[1], [0], [0], [1], [0, 0, 1, 1], [], []>} : vector<32x640xbf16>, vector<640x128xbf16>, vector<32x128xf32> -> vector<32x128xf32>
    %c0_3 = arith.constant 0 : index
    %c0_4 = arith.constant 0 : index
    %3 = vector.load %arg3[%c0_3, %c0_4] : memref<1x128xf32, #tpu.memory_space<vmem>>, vector<1x128xf32>
    %4 = vector.broadcast %3 : vector<1x128xf32> to vector<32x128xf32>
    %5 = arith.addf %2, %4 : vector<32x128xf32>
    %cst_5 = arith.constant 0.000000e+00 : f32
    %6 = vector.broadcast %cst_5 : f32 to vector<32x128xf32>
    %7 = arith.maximumf %5, %6 : vector<32x128xf32>
    %c0_6 = arith.constant 0 : index
    %c0_7 = arith.constant 0 : index
    %8 = vector.load %arg4[%c0_6, %c0_7] : memref<32x128xf32, #tpu.memory_space<vmem>>, vector<32x128xf32>
    tpu.vector_store %arg4[%c0_6, %c0_7], %7 {strides = array<i32>} : memref<32x128xf32, #tpu.memory_space<vmem>>, vector<32x128xf32>,
    return
  }
  func.func @transform_0(%arg0: i32) -> (i32, i32) {
    %c0_i32 = arith.constant 0 : i32
    %c0_i32_0 = arith.constant 0 : i32
    return %arg0, %c0_i32 : i32, i32
  }
  func.func @transform_1(%arg0: i32) -> (i32, i32) {
    %c0_i32 = arith.constant 0 : i32
    %c0_i32_0 = arith.constant 0 : i32
    %c0_i32_1 = arith.constant 0 : i32
    return %c0_i32, %c0_i32_0 : i32, i32
  }
  func.func @transform_2(%arg0: i32) -> (i32, i32) {
    %c0_i32 = arith.constant 0 : i32
    %c0_i32_0 = arith.constant 0 : i32
    %c0_i32_1 = arith.constant 0 : i32
    return %c0_i32, %c0_i32_0 : i32, i32
  }
  func.func @transform_3(%arg0: i32) -> (i32, i32) {
    %c0_i32 = arith.constant 0 : i32
    %c0_i32_0 = arith.constant 0 : i32
    return %arg0, %c0_i32 : i32, i32
  }
}

module attributes {stable_mosaic.version = 11 : i64} {
  func.func @_conv_mm_kernel(%arg0: i32, %arg1: memref<32x128xbf16, #tpu.memory_space<vmem>>, %arg2: memref<128x128xbf16, #tpu.memory_space<vmem>>, %arg3: memref<1x128xf32, #tpu.memory_space<vmem>>, %arg4: memref<32x128xf32, #tpu.memory_space<vmem>>) attributes {dimension_semantics = [#tpu.dimension_semantics<parallel>], iteration_bounds = array<i64: 1>, scalar_prefetch = 0 : i64, scratch_operands = 0 : i64, tpu.core_type = #tpu.core_type<tc>, window_params = [{transform_indices = @transform_0, window_bounds = array<i64: 32, 128>}, {pipeline_mode = #tpu.pipeline_mode<synchronous>, transform_indices = @transform_1, window_bounds = array<i64: 128, 128>}, {pipeline_mode = #tpu.pipeline_mode<synchronous>, transform_indices = @transform_2, window_bounds = array<i64: 1, 128>}, {transform_indices = @transform_3, window_bounds = array<i64: 32, 128>}]} {
    %c0 = arith.constant 0 : index
    %c0_0 = arith.constant 0 : index
    %0 = vector.load %arg1[%c0, %c0_0] : memref<32x128xbf16, #tpu.memory_space<vmem>>, vector<32x128xbf16>
    %c0_1 = arith.constant 0 : index
    %c0_2 = arith.constant 0 : index
    %1 = vector.load %arg2[%c0_1, %c0_2] : memref<128x128xbf16, #tpu.memory_space<vmem>>, vector<128x128xbf16>
    %cst = arith.constant dense<0.000000e+00> : vector<32x128xf32>
    %2 = tpu.matmul %0, %1, %cst {dimension_numbers = #tpu.dot_dimension_numbers<[1], [0], [0], [1], [0, 0, 1, 1], [], []>} : vector<32x128xbf16>, vector<128x128xbf16>, vector<32x128xf32> -> vector<32x128xf32>
    %c0_3 = arith.constant 0 : index
    %c0_4 = arith.constant 0 : index
    %3 = vector.load %arg3[%c0_3, %c0_4] : memref<1x128xf32, #tpu.memory_space<vmem>>, vector<1x128xf32>
    %4 = vector.broadcast %3 : vector<1x128xf32> to vector<32x128xf32>
    %5 = arith.addf %2, %4 : vector<32x128xf32>
    %c0_5 = arith.constant 0 : index
    %c0_6 = arith.constant 0 : index
    %6 = vector.load %arg4[%c0_5, %c0_6] : memref<32x128xf32, #tpu.memory_space<vmem>>, vector<32x128xf32>
    tpu.vector_store %arg4[%c0_5, %c0_6], %5 {strides = array<i32>} : memref<32x128xf32, #tpu.memory_space<vmem>>, vector<32x128xf32>,
    return
  }
  func.func @transform_0(%arg0: i32) -> (i32, i32) {
    %c0_i32 = arith.constant 0 : i32
    %c0_i32_0 = arith.constant 0 : i32
    return %arg0, %c0_i32 : i32, i32
  }
  func.func @transform_1(%arg0: i32) -> (i32, i32) {
    %c0_i32 = arith.constant 0 : i32
    %c0_i32_0 = arith.constant 0 : i32
    %c0_i32_1 = arith.constant 0 : i32
    return %c0_i32, %c0_i32_0 : i32, i32
  }
  func.func @transform_2(%arg0: i32) -> (i32, i32) {
    %c0_i32 = arith.constant 0 : i32
    %c0_i32_0 = arith.constant 0 : i32
    %c0_i32_1 = arith.constant 0 : i32
    return %c0_i32, %c0_i32_0 : i32, i32
  }
  func.func @transform_3(%arg0: i32) -> (i32, i32) {
    %c0_i32 = arith.constant 0 : i32
    %c0_i32_0 = arith.constant 0 : i32
    return %arg0, %c0_i32 : i32, i32
  }
}

module attributes {stable_mosaic.version = 11 : i64} {
  func.func @_conv_mm_res_kernel(%arg0: i32, %arg1: memref<32x1152xbf16, #tpu.memory_space<vmem>>, %arg2: memref<1152x128xbf16, #tpu.memory_space<vmem>>, %arg3: memref<1x128xf32, #tpu.memory_space<vmem>>, %arg4: memref<32x128xf32, #tpu.memory_space<vmem>>, %arg5: memref<32x128xf32, #tpu.memory_space<vmem>>) attributes {dimension_semantics = [#tpu.dimension_semantics<parallel>], iteration_bounds = array<i64: 1>, scalar_prefetch = 0 : i64, scratch_operands = 0 : i64, tpu.core_type = #tpu.core_type<tc>, window_params = [{transform_indices = @transform_0, window_bounds = array<i64: 32, 1152>}, {pipeline_mode = #tpu.pipeline_mode<synchronous>, transform_indices = @transform_1, window_bounds = array<i64: 1152, 128>}, {pipeline_mode = #tpu.pipeline_mode<synchronous>, transform_indices = @transform_2, window_bounds = array<i64: 1, 128>}, {transform_indices = @transform_3, window_bounds = array<i64: 32, 128>}, {transform_indices = @transform_4, window_bounds = array<i64: 32, 128>}]} {
    %c0 = arith.constant 0 : index
    %c0_0 = arith.constant 0 : index
    %0 = vector.load %arg1[%c0, %c0_0] : memref<32x1152xbf16, #tpu.memory_space<vmem>>, vector<32x1152xbf16>
    %c0_1 = arith.constant 0 : index
    %c0_2 = arith.constant 0 : index
    %1 = vector.load %arg2[%c0_1, %c0_2] : memref<1152x128xbf16, #tpu.memory_space<vmem>>, vector<1152x128xbf16>
    %cst = arith.constant dense<0.000000e+00> : vector<32x128xf32>
    %2 = tpu.matmul %0, %1, %cst {dimension_numbers = #tpu.dot_dimension_numbers<[1], [0], [0], [1], [0, 0, 1, 1], [], []>} : vector<32x1152xbf16>, vector<1152x128xbf16>, vector<32x128xf32> -> vector<32x128xf32>
    %c0_3 = arith.constant 0 : index
    %c0_4 = arith.constant 0 : index
    %3 = vector.load %arg3[%c0_3, %c0_4] : memref<1x128xf32, #tpu.memory_space<vmem>>, vector<1x128xf32>
    %4 = vector.broadcast %3 : vector<1x128xf32> to vector<32x128xf32>
    %5 = arith.addf %2, %4 : vector<32x128xf32>
    %c0_5 = arith.constant 0 : index
    %c0_6 = arith.constant 0 : index
    %6 = vector.load %arg4[%c0_5, %c0_6] : memref<32x128xf32, #tpu.memory_space<vmem>>, vector<32x128xf32>
    %7 = arith.addf %5, %6 : vector<32x128xf32>
    %cst_7 = arith.constant 0.000000e+00 : f32
    %8 = vector.broadcast %cst_7 : f32 to vector<32x128xf32>
    %9 = arith.maximumf %7, %8 : vector<32x128xf32>
    %c0_8 = arith.constant 0 : index
    %c0_9 = arith.constant 0 : index
    %10 = vector.load %arg5[%c0_8, %c0_9] : memref<32x128xf32, #tpu.memory_space<vmem>>, vector<32x128xf32>
    tpu.vector_store %arg5[%c0_8, %c0_9], %9 {strides = array<i32>} : memref<32x128xf32, #tpu.memory_space<vmem>>, vector<32x128xf32>,
    return
  }
  func.func @transform_0(%arg0: i32) -> (i32, i32) {
    %c0_i32 = arith.constant 0 : i32
    %c0_i32_0 = arith.constant 0 : i32
    return %arg0, %c0_i32 : i32, i32
  }
  func.func @transform_1(%arg0: i32) -> (i32, i32) {
    %c0_i32 = arith.constant 0 : i32
    %c0_i32_0 = arith.constant 0 : i32
    %c0_i32_1 = arith.constant 0 : i32
    return %c0_i32, %c0_i32_0 : i32, i32
  }
  func.func @transform_2(%arg0: i32) -> (i32, i32) {
    %c0_i32 = arith.constant 0 : i32
    %c0_i32_0 = arith.constant 0 : i32
    %c0_i32_1 = arith.constant 0 : i32
    return %c0_i32, %c0_i32_0 : i32, i32
  }
  func.func @transform_3(%arg0: i32) -> (i32, i32) {
    %c0_i32 = arith.constant 0 : i32
    %c0_i32_0 = arith.constant 0 : i32
    return %arg0, %c0_i32 : i32, i32
  }
  func.func @transform_4(%arg0: i32) -> (i32, i32) {
    %c0_i32 = arith.constant 0 : i32
    %c0_i32_0 = arith.constant 0 : i32
    return %arg0, %c0_i32 : i32, i32
  }
}

module attributes {stable_mosaic.version = 11 : i64} {
  func.func @_conv_mm_kernel(%arg0: i32, %arg1: memref<32x1152xbf16, #tpu.memory_space<vmem>>, %arg2: memref<1152x128xbf16, #tpu.memory_space<vmem>>, %arg3: memref<1x128xf32, #tpu.memory_space<vmem>>, %arg4: memref<32x128xf32, #tpu.memory_space<vmem>>) attributes {dimension_semantics = [#tpu.dimension_semantics<parallel>], iteration_bounds = array<i64: 1>, scalar_prefetch = 0 : i64, scratch_operands = 0 : i64, tpu.core_type = #tpu.core_type<tc>, window_params = [{transform_indices = @transform_0, window_bounds = array<i64: 32, 1152>}, {pipeline_mode = #tpu.pipeline_mode<synchronous>, transform_indices = @transform_1, window_bounds = array<i64: 1152, 128>}, {pipeline_mode = #tpu.pipeline_mode<synchronous>, transform_indices = @transform_2, window_bounds = array<i64: 1, 128>}, {transform_indices = @transform_3, window_bounds = array<i64: 32, 128>}]} {
    %c0 = arith.constant 0 : index
    %c0_0 = arith.constant 0 : index
    %0 = vector.load %arg1[%c0, %c0_0] : memref<32x1152xbf16, #tpu.memory_space<vmem>>, vector<32x1152xbf16>
    %c0_1 = arith.constant 0 : index
    %c0_2 = arith.constant 0 : index
    %1 = vector.load %arg2[%c0_1, %c0_2] : memref<1152x128xbf16, #tpu.memory_space<vmem>>, vector<1152x128xbf16>
    %cst = arith.constant dense<0.000000e+00> : vector<32x128xf32>
    %2 = tpu.matmul %0, %1, %cst {dimension_numbers = #tpu.dot_dimension_numbers<[1], [0], [0], [1], [0, 0, 1, 1], [], []>} : vector<32x1152xbf16>, vector<1152x128xbf16>, vector<32x128xf32> -> vector<32x128xf32>
    %c0_3 = arith.constant 0 : index
    %c0_4 = arith.constant 0 : index
    %3 = vector.load %arg3[%c0_3, %c0_4] : memref<1x128xf32, #tpu.memory_space<vmem>>, vector<1x128xf32>
    %4 = vector.broadcast %3 : vector<1x128xf32> to vector<32x128xf32>
    %5 = arith.addf %2, %4 : vector<32x128xf32>
    %cst_5 = arith.constant 0.000000e+00 : f32
    %6 = vector.broadcast %cst_5 : f32 to vector<32x128xf32>
    %7 = arith.maximumf %5, %6 : vector<32x128xf32>
    %c0_6 = arith.constant 0 : index
    %c0_7 = arith.constant 0 : index
    %8 = vector.load %arg4[%c0_6, %c0_7] : memref<32x128xf32, #tpu.memory_space<vmem>>, vector<32x128xf32>
    tpu.vector_store %arg4[%c0_6, %c0_7], %7 {strides = array<i32>} : memref<32x128xf32, #tpu.memory_space<vmem>>, vector<32x128xf32>,
    return
  }
  func.func @transform_0(%arg0: i32) -> (i32, i32) {
    %c0_i32 = arith.constant 0 : i32
    %c0_i32_0 = arith.constant 0 : i32
    return %arg0, %c0_i32 : i32, i32
  }
  func.func @transform_1(%arg0: i32) -> (i32, i32) {
    %c0_i32 = arith.constant 0 : i32
    %c0_i32_0 = arith.constant 0 : i32
    %c0_i32_1 = arith.constant 0 : i32
    return %c0_i32, %c0_i32_0 : i32, i32
  }
  func.func @transform_2(%arg0: i32) -> (i32, i32) {
    %c0_i32 = arith.constant 0 : i32
    %c0_i32_0 = arith.constant 0 : i32
    %c0_i32_1 = arith.constant 0 : i32
    return %c0_i32, %c0_i32_0 : i32, i32
  }
  func.func @transform_3(%arg0: i32) -> (i32, i32) {
    %c0_i32 = arith.constant 0 : i32
    %c0_i32_0 = arith.constant 0 : i32
    return %arg0, %c0_i32 : i32, i32
  }
}

module attributes {stable_mosaic.version = 11 : i64} {
  func.func @_conv_mm_res_pool_kernel(%arg0: memref<32x1152xbf16, #tpu.memory_space<vmem>>, %arg1: memref<1152x128xbf16, #tpu.memory_space<vmem>>, %arg2: memref<1x128xf32, #tpu.memory_space<vmem>>, %arg3: memref<32x128xf32, #tpu.memory_space<vmem>>, %arg4: memref<2x32xf32, #tpu.memory_space<vmem>>, %arg5: memref<2x128xf32, #tpu.memory_space<vmem>>) attributes {dimension_semantics = [], scalar_prefetch = 0 : i64, scratch_operands = 0 : i64, tpu.core_type = #tpu.core_type<tc>} {
    %c0 = arith.constant 0 : index
    %c0_0 = arith.constant 0 : index
    %0 = vector.load %arg0[%c0, %c0_0] : memref<32x1152xbf16, #tpu.memory_space<vmem>>, vector<32x1152xbf16>
    %c0_1 = arith.constant 0 : index
    %c0_2 = arith.constant 0 : index
    %1 = vector.load %arg1[%c0_1, %c0_2] : memref<1152x128xbf16, #tpu.memory_space<vmem>>, vector<1152x128xbf16>
    %cst = arith.constant dense<0.000000e+00> : vector<32x128xf32>
    %2 = tpu.matmul %0, %1, %cst {dimension_numbers = #tpu.dot_dimension_numbers<[1], [0], [0], [1], [0, 0, 1, 1], [], []>} : vector<32x1152xbf16>, vector<1152x128xbf16>, vector<32x128xf32> -> vector<32x128xf32>
    %c0_3 = arith.constant 0 : index
    %c0_4 = arith.constant 0 : index
    %3 = vector.load %arg2[%c0_3, %c0_4] : memref<1x128xf32, #tpu.memory_space<vmem>>, vector<1x128xf32>
    %4 = vector.broadcast %3 : vector<1x128xf32> to vector<32x128xf32>
    %5 = arith.addf %2, %4 : vector<32x128xf32>
    %c0_5 = arith.constant 0 : index
    %c0_6 = arith.constant 0 : index
    %6 = vector.load %arg3[%c0_5, %c0_6] : memref<32x128xf32, #tpu.memory_space<vmem>>, vector<32x128xf32>
    %7 = arith.addf %5, %6 : vector<32x128xf32>
    %cst_7 = arith.constant 0.000000e+00 : f32
    %8 = vector.broadcast %cst_7 : f32 to vector<32x128xf32>
    %9 = arith.maximumf %7, %8 : vector<32x128xf32>
    %c0_8 = arith.constant 0 : index
    %c0_9 = arith.constant 0 : index
    %10 = vector.load %arg4[%c0_8, %c0_9] : memref<2x32xf32, #tpu.memory_space<vmem>>, vector<2x32xf32>
    %cst_10 = arith.constant dense<0.000000e+00> : vector<2x128xf32>
    %11 = tpu.matmul %10, %9, %cst_10 {dimension_numbers = #tpu.dot_dimension_numbers<[1], [0], [0], [1], [0, 0, 1, 1], [], []>} : vector<2x32xf32>, vector<32x128xf32>, vector<2x128xf32> -> vector<2x128xf32>
    %c0_11 = arith.constant 0 : index
    %c0_12 = arith.constant 0 : index
    %12 = vector.load %arg5[%c0_11, %c0_12] : memref<2x128xf32, #tpu.memory_space<vmem>>, vector<2x128xf32>
    tpu.vector_store %arg5[%c0_11, %c0_12], %11 {strides = array<i32>} : memref<2x128xf32, #tpu.memory_space<vmem>>, vector<2x128xf32>,
    return
  }
}

</mosaic_0001>

<bundles_post_ra>
// kernel: extractor_forward.12
= control target key start
LH: loop header
LB: loop body
LE: loop exit
PB: predicated region body
PF: predicated region fallthrough
CT: control target
= control target key end

     0   :  { %s478_s0 = inlined_call_operand.vmem [shape: f32[9,64,128], index: 0, kind: input, shape index: {}]   ;;  %s479_s1 = inlined_call_operand.vmem [shape: f32[64,128], index: 1, kind: output, shape index: {}]  }
   0x1   :  { %v8_v0 = vld [vmem:[%s478_s0] sm:$0xff]  ;;  %v9_v6 = vld [vmem:[%s478_s0 + $0x8] sm:$0xff]  ;;  %v10_v15 = vld [vmem:[%s478_s0 + $0x10] sm:$0xff] }
   0x2   :  { %v164_v1 = vld [vmem:[%s478_s0 + $0x40] sm:$0xff]  ;;  %v165_v7 = vld [vmem:[%s478_s0 + $0x48] sm:$0xff]  ;;  %v166_v16 = vld [vmem:[%s478_s0 + $0x50] sm:$0xff] }
   0x3   :  { %v172_v2 = vld [vmem:[%s478_s0 + $0x80] sm:$0xff]  ;;  %v25_v3 = vmax.f32 %v8_v0, %v164_v1  ;;  %v173_v8 = vld [vmem:[%s478_s0 + $0x88] sm:$0xff]  ;;  %v26_v10 = vmax.f32 %v9_v6, %v165_v7  ;;  %v174_v17 = vld [vmem:[%s478_s0 + $0x90] sm:$0xff]  ;;  %v27_v20 = vmax.f32 %v10_v15, %v166_v16 }
   0x4   :  { %v180_v4 = vld [vmem:[%s478_s0 + $0xc0] sm:$0xff]  ;;  %v181_v13 = vld [vmem:[%s478_s0 + $0xc8] sm:$0xff]  ;;  %v182_v24 = vld [vmem:[%s478_s0 + $0xd0] sm:$0xff] }
   0x5   :  { %v42_v5 = vmax.f32 %v25_v3, %v172_v2  ;;  %v188_v9 = vld [vmem:[%s478_s0 + $0x100] sm:$0xff]  ;;  %v43_v14 = vmax.f32 %v26_v10, %v173_v8  ;;  %v189_v19 = vld [vmem:[%s478_s0 + $0x108] sm:$0xff]  ;;  %v44_v26 = vmax.f32 %v27_v20, %v174_v17  ;;  %v11_v27 = vld [vmem:[%s478_s0 + $0x18] sm:$0xff] }
   0x6   :  { %v196_v12 = vld [vmem:[%s478_s0 + $0x140] sm:$0xff]  ;;  %v197_v23 = vld [vmem:[%s478_s0 + $0x148] sm:$0xff]  ;;  %v167_v28 = vld [vmem:[%s478_s0 + $0x58] sm:$0xff] }
   0x7   :  { %v59_v11 = vmax.f32 %v42_v5, %v180_v4  ;;  %v204_v21 = vld [vmem:[%s478_s0 + $0x180] sm:$0xff]  ;;  %v60_v22 = vmax.f32 %v43_v14, %v181_v13  ;;  %v175_v29 = vld [vmem:[%s478_s0 + $0x98] sm:$0xff]  ;;  %v190_v33 = vld [vmem:[%s478_s0 + $0x110] sm:$0xff]  ;;  %v28_v34 = vmax.f32 %v11_v27, %v167_v28  ;;  %v61_v37 = vmax.f32 %v44_v26, %v182_v24 }
   0x8   :  { %v212_v30 = vld [vmem:[%s478_s0 + $0x1c0] sm:$0xff]  ;;  %v205_v36 = vld [vmem:[%s478_s0 + $0x188] sm:$0xff]  ;;  %v198_v38 = vld [vmem:[%s478_s0 + $0x150] sm:$0xff] }
   0x9   :  { %v76_v18 = vmax.f32 %v59_v11, %v188_v9  ;;  %v220_v31 = vld [vmem:[%s478_s0 + $0x200] sm:$0xff]  ;;  %v77_v32 = vmax.f32 %v60_v22, %v189_v19  ;;  %v183_v39 = vld [vmem:[%s478_s0 + $0xd8] sm:$0xff]  ;;  %v45_v41 = vmax.f32 %v28_v34, %v175_v29  ;;  %v213_v46 = vld [vmem:[%s478_s0 + $0x1c8] sm:$0xff]  ;;  %v78_v48 = vmax.f32 %v61_v37, %v190_v33 }
   0xa   :  { %v12_v42 = vld [vmem:[%s478_s0 + $0x20] sm:$0xff]  ;;  %v221_v47 = vld [vmem:[%s478_s0 + $0x208] sm:$0xff]  ;;  %v191_v49 = vld [vmem:[%s478_s0 + $0x118] sm:$0xff] }
   0xb   :  { %v93_v25 = vmax.f32 %v76_v18, %v196_v12  ;;  %v94_v40 = vmax.f32 %v77_v32, %v197_v23  ;;  %v168_v43 = vld [vmem:[%s478_s0 + $0x60] sm:$0xff]  ;;  %v206_v52 = vld [vmem:[%s478_s0 + $0x190] sm:$0xff]  ;;  %v62_v53 = vmax.f32 %v45_v41, %v183_v39  ;;  %v199_v54 = vld [vmem:[%s478_s0 + $0x158] sm:$0xff]  ;;  %v95_v57 = vmax.f32 %v78_v48, %v198_v38 }
   0xc   :  { %v176_v44 = vld [vmem:[%s478_s0 + $0xa0] sm:$0xff]  ;;  %v29_v50 = vmax.f32 %v12_v42, %v168_v43  ;;  %v13_v59 = vld [vmem:[%s478_s0 + $0x28] sm:$0xff]  ;;  %v214_v63 = vld [vmem:[%s478_s0 + $0x1d0] sm:$0xff] }
   0xd   :  { %v110_v35 = vmax.f32 %v93_v25, %v204_v21  ;;  %v111_v51 = vmax.f32 %v94_v40, %v205_v36  ;;  %v184_v55 = vld [vmem:[%s478_s0 + $0xe0] sm:$0xff]  ;;  %v169_v60 = vld [vmem:[%s478_s0 + $0x68] sm:$0xff]  ;;  %v222_v0 = vld [vmem:[%s478_s0 + $0x210] sm:$0xff]  ;;  %v79_v1 = vmax.f32 %v62_v53, %v191_v49  ;;  %v112_v4 = vmax.f32 %v95_v57, %v206_v52 }
   0xe   :  { %v46_v58 = vmax.f32 %v29_v50, %v176_v44  ;;  %v177_v61 = vld [vmem:[%s478_s0 + $0xa8] sm:$0xff]  ;;  %v192_v2 = vld [vmem:[%s478_s0 + $0x120] sm:$0xff]  ;;  %v30_v3 = vmax.f32 %v13_v59, %v169_v60  ;;  %v207_v5 = vld [vmem:[%s478_s0 + $0x198] sm:$0xff] }
   0xf   :  { %v127_v45 = vmax.f32 %v110_v35, %v212_v30  ;;  %v128_v62 = vmax.f32 %v111_v51, %v213_v46  ;;  %v200_v7 = vld [vmem:[%s478_s0 + $0x160] sm:$0xff]  ;;  %v185_v8 = vld [vmem:[%s478_s0 + $0xe8] sm:$0xff]  ;;  %v96_v10 = vmax.f32 %v79_v1, %v199_v54  ;;  %v14_v12 = vld [vmem:[%s478_s0 + $0x30] sm:$0xff]  ;;  %v129_v15 = vmax.f32 %v112_v4, %v214_v63 }
  0x10   :  { %v63_v6 = vmax.f32 %v46_v58, %v184_v55  ;;  %v47_v11 = vmax.f32 %v30_v3, %v177_v61  ;;  %v170_v13 = vld [vmem:[%s478_s0 + $0x70] sm:$0xff]  ;;  %v215_v16 = vld [vmem:[%s478_s0 + $0x1d8] sm:$0xff]  ;;  %v193_v19 = vld [vmem:[%s478_s0 + $0x128] sm:$0xff] }
  0x11   :  { %v144_v56 = vmax.f32 %v127_v45, %v220_v31  ;;  %v145_v9 = vmax.f32 %v128_v62, %v221_v47  ;;  %v178_v14 = vld [vmem:[%s478_s0 + $0xb0] sm:$0xff]  ;;  %v223_v17 = vld [vmem:[%s478_s0 + $0x218] sm:$0xff]  ;;  %v31_v20 = vmax.f32 %v14_v12, %v170_v13  ;;  %v113_v21 = vmax.f32 %v96_v10, %v207_v5  ;;  %v208_v22 = vld [vmem:[%s478_s0 + $0x1a0] sm:$0xff] }
  0x12   :  { %v80_v18 = vmax.f32 %v63_v6, %v192_v2  ;;  %v64_v23 = vmax.f32 %v47_v11, %v185_v8  ;;  %v201_v24 = vld [vmem:[%s478_s0 + $0x168] sm:$0xff]  ;;  %v186_v25 = vld [vmem:[%s478_s0 + $0xf0] sm:$0xff]  ;;  %v146_v26 = vmax.f32 %v129_v15, %v222_v0  ;;  %v15_v29 = vld [vmem:[%s478_s0 + $0x38] sm:$0xff] }
  0x13   :  { %152 = vst [vmem:[%s479_s1] sm:$0xff] %v144_v56  ;;  %153 = vst [vmem:[%s479_s1 + $0x8] sm:$0xff] %v145_v9  ;;  %v48_v28 = vmax.f32 %v31_v20, %v178_v14  ;;  %v171_v30 = vld [vmem:[%s478_s0 + $0x78] sm:$0xff]  ;;  %v130_v32 = vmax.f32 %v113_v21, %v215_v16  ;;  %v216_v33 = vld [vmem:[%s478_s0 + $0x1e0] sm:$0xff] }
  0x14   :  { %v97_v27 = vmax.f32 %v80_v18, %v200_v7  ;;  %v179_v31 = vld [vmem:[%s478_s0 + $0xb8] sm:$0xff]  ;;  %v81_v34 = vmax.f32 %v64_v23, %v193_v19  ;;  %v194_v35 = vld [vmem:[%s478_s0 + $0x130] sm:$0xff]  ;;  %v32_v36 = vmax.f32 %v15_v29, %v171_v30  ;;  %154 = vst [vmem:[%s479_s1 + $0x10] sm:$0xff] %v146_v26  ;;  %v209_v38 = vld [vmem:[%s478_s0 + $0x1a8] sm:$0xff] }
  0x15   :  { %v65_v39 = vmax.f32 %v48_v28, %v186_v25  ;;  %v187_v40 = vld [vmem:[%s478_s0 + $0xf8] sm:$0xff]  ;;  %v147_v41 = vmax.f32 %v130_v32, %v223_v17  ;;  %v224_v42 = vld [vmem:[%s478_s0 + $0x220] sm:$0xff]  ;;  %v202_v44 = vld [vmem:[%s478_s0 + $0x170] sm:$0xff] }
  0x16   :  { %v114_v37 = vmax.f32 %v97_v27, %v208_v22  ;;  %v98_v43 = vmax.f32 %v81_v34, %v201_v24  ;;  %v49_v45 = vmax.f32 %v32_v36, %v179_v31  ;;  %v217_v47 = vld [vmem:[%s478_s0 + $0x1e8] sm:$0xff]  ;;  %v195_v49 = vld [vmem:[%s478_s0 + $0x138] sm:$0xff]  ;;  %v210_v51 = vld [vmem:[%s478_s0 + $0x1b0] sm:$0xff] }
  0x17   :  { %v82_v48 = vmax.f32 %v65_v39, %v194_v35  ;;  %155 = vst [vmem:[%s479_s1 + $0x18] sm:$0xff] %v147_v41  ;;  %v225_v54 = vld [vmem:[%s478_s0 + $0x228] sm:$0xff]  ;;  %v203_v56 = vld [vmem:[%s478_s0 + $0x178] sm:$0xff]  ;;  %v218_v58 = vld [vmem:[%s478_s0 + $0x1f0] sm:$0xff] }
  0x18   :  { %v131_v46 = vmax.f32 %v114_v37, %v216_v33  ;;  %v115_v50 = vmax.f32 %v98_v43, %v209_v38  ;;  %v66_v52 = vmax.f32 %v49_v45, %v187_v40  ;;  %v211_v61 = vld [vmem:[%s478_s0 + $0x1b8] sm:$0xff]  ;;  %v226_v63 = vld [vmem:[%s478_s0 + $0x230] sm:$0xff] }
  0x19   :  { %v99_v55 = vmax.f32 %v82_v48, %v202_v44  ;;  %v219_v2 = vld [vmem:[%s478_s0 + $0x1f8] sm:$0xff] }
  0x1a   :  { %v148_v53 = vmax.f32 %v131_v46, %v224_v42  ;;  %v132_v57 = vmax.f32 %v115_v50, %v217_v47  ;;  %v83_v59 = vmax.f32 %v66_v52, %v195_v49  ;;  %v227_v5 = vld [vmem:[%s478_s0 + $0x238] sm:$0xff] }
  0x1b   :  { %v116_v60 = vmax.f32 %v99_v55, %v210_v51 }
  0x1c   :  { %156 = vst [vmem:[%s479_s1 + $0x20] sm:$0xff] %v148_v53  ;;  %v149_v62 = vmax.f32 %v132_v57, %v225_v54  ;;  %v100_v0 = vmax.f32 %v83_v59, %v203_v56 }
  0x1d   :  { %v133_v1 = vmax.f32 %v116_v60, %v218_v58 }
  0x1e   :  { %157 = vst [vmem:[%s479_s1 + $0x28] sm:$0xff] %v149_v62  ;;  %v117_v3 = vmax.f32 %v100_v0, %v211_v61 }
  0x1f   :  { %v150_v4 = vmax.f32 %v133_v1, %v226_v63 }
  0x20   :  { %v134_v6 = vmax.f32 %v117_v3, %v219_v2 }
  0x21   :  { %158 = vst [vmem:[%s479_s1 + $0x30] sm:$0xff] %v150_v4 }
  0x22   :  { %v151_v7 = vmax.f32 %v134_v6, %v227_v5 }
  0x24   :  { %159 = vst [vmem:[%s479_s1 + $0x38] sm:$0xff] %v151_v7 }

// kernel: extractor_forward.11
= control target key start
LH: loop header
LB: loop body
LE: loop exit
PB: predicated region body
PF: predicated region fallthrough
CT: control target
= control target key end

     0   :  { %s1077_s12 = smov 0   ;;  %s1286_s0 = inlined_call_operand.vmem [shape: bf16[512,256], index: 0, kind: input, shape index: {}]   ;;  %s1287_s1 = inlined_call_operand.vmem [shape: bf16[256,64], index: 1, kind: input, shape index: {}]   ;;  %s1288_s2 = inlined_call_operand.vmem [shape: f32[1,64], index: 2, kind: input, shape index: {}]   ;;  %s1289_s3 = inlined_call_operand.vmem [shape: f32[512,64], index: 3, kind: output, shape index: {}]  }
   0x1 LB: > { %s787_s13 = sadd.s32 4294967295, %s1055_s12   ;;  %p791_p0 = scmp.ge.s32.totalorder %s1055_s12, 1  ;;  %s1055_s12 = sphi %s1077_s12, %s13_s12  }
   0x2   : > { %p139_p1 = scmp.lt.s32.totalorder %s1055_s12, 3 }
   0x4   : > { %p140_p2 = pnand %p791_p0, %p139_p1 }
   0x5   : > { %v985_v0 = vld [vmem:[%s1287_s1 + $0x40] sm:$0xff] (!%p140_p2)   ;;  %s792_s16 = sshll.u32 (!%p140_p2), %s787_s13, 5  ;;  %v987_v2 = vld [vmem:[%s1287_s1 + $0x48] sm:$0xff] (!%p140_p2)   ;;  %v989_v4 = vld [vmem:[%s1287_s1 + $0x50] sm:$0xff] (!%p140_p2)   ;;  %vm698_vm0 = vcmask (!%p140_p2), 523264  }
   0x6   : > { %143 = sbr.rel (%p140_p2) target bundleno = 316 (0x13c), region = 32  ;;  %v986_v1 = vld [vmem:[%s1287_s1] sm:$0xff] (!%p140_p2)   ;;  %849 = vmatprep.subr.bf16.mxu0 (!%p140_p2), %v985_v0  ;;  %961 = vmatprep.subr.bf16.mxu1 (!%p140_p2), %v985_v0  ;;  %v988_v3 = vld [vmem:[%s1287_s1 + $0x8] sm:$0xff] (!%p140_p2)   ;;  %p165_p3 = scmp.lt.s32.totalorder (!%p140_p2), %s792_s16, 63  ;;  %v990_v5 = vld [vmem:[%s1287_s1 + $0x10] sm:$0xff] (!%p140_p2)  }
   0x7   : > { %850 = vmatpush3.bf16.msra.mxu0 (!%p140_p2), %v986_v1  ;;  %969 = vmatpush3.bf16.msra.mxu1 (!%p140_p2), %v986_v1  ;;  %v991_v6 = vld [vmem:[%s1287_s1 + $0x58] sm:$0xff] (!%p140_p2)   ;;  %v993_v8 = vld [vmem:[%s1287_s1 + $0x60] sm:$0xff] (!%p140_p2)   ;;  %v995_v10 = vld [vmem:[%s1287_s1 + $0x68] sm:$0xff] (!%p140_p2)  }
   0x8   : > { %851 = vmatprep.subr.bf16.mxu0 (!%p140_p2), %v987_v2  ;;  %962 = vmatprep.subr.bf16.mxu1 (!%p140_p2), %v987_v2  ;;  %v992_v7 = vld [vmem:[%s1287_s1 + $0x18] sm:$0xff] (!%p140_p2)   ;;  %v994_v9 = vld [vmem:[%s1287_s1 + $0x20] sm:$0xff] (!%p140_p2)   ;;  %v996_v13 = vld [vmem:[%s1287_s1 + $0x28] sm:$0xff] (!%p140_p2)  }
   0x9   : > { %v997_v14 = vld [vmem:[%s1287_s1 + $0x70] sm:$0xff] (!%p140_p2)   ;;  %v999_v16 = vld [vmem:[%s1287_s1 + $0x78] sm:$0xff] (!%p140_p2)   ;;  %v1178_v50 = vld [vmem:[%s1288_s2] ss:$0 sm:$0xff] (!%p140_p2) }
   0xa   : > { %v998_v15 = vld [vmem:[%s1287_s1 + $0x30] sm:$0xff] (!%p140_p2)   ;;  %v1000_v17 = vld [vmem:[%s1287_s1 + $0x38] sm:$0xff] (!%p140_p2)  }
   0xb   : > { %852 = vmatpush3.bf16.msra.mxu0 (!%p140_p2), %v988_v3  ;;  %970 = vmatpush3.bf16.msra.mxu1 (!%p140_p2), %v988_v3 }
   0xc   : > { %853 = vmatprep.subr.bf16.mxu0 (!%p140_p2), %v989_v4  ;;  %963 = vmatprep.subr.bf16.mxu1 (!%p140_p2), %v989_v4 }
   0xd   : > { %s1291_s16 = smov (!%p165_p3, %s792_s16), 63 }
   0xe   : > { %s848_s4 = sshll.u32 %s1291_s16, 3 }
   0xf   : > { %854 = vmatpush3.bf16.msra.mxu0 %v990_v5  ;;  %971 = vmatpush3.bf16.msra.mxu1 %v990_v5  ;;  %s1120_s9 = scalar_lea.vmem %s1286_s0, %s848_s4  ;;  %s1187_s30 = scalar_lea.vmem %s1289_s3, %s848_s4 }
  0x10   : > { %855 = vmatprep.subr.bf16.mxu0 %v991_v6  ;;  %964 = vmatprep.subr.bf16.mxu1 %v991_v6  ;;  %v1003_v11 = vld [vmem:[%s1120_s9 + $0x4] ss:$8 sps:$4 sm:$0xff]   ;;  %v1001_v18 = vld [vmem:[%s1120_s9] ss:$8 sps:$4 sm:$0xff]   ;;  %v1007_v20 = vld [vmem:[%s1120_s9 + $0x14] ss:$8 sps:$4 sm:$0xff]  }
  0x11   : > { %v1006_v12 = vld [vmem:[%s1120_s9 + $0x84] ss:$8 sps:$4 sm:$0xff]   ;;  %537 = vmatprep.mubr.bf16.mxu0 %v1003_v11  ;;  %v1004_v19 = vld [vmem:[%s1120_s9 + $0x80] ss:$8 sps:$4 sm:$0xff]   ;;  %v1009_v21 = vld [vmem:[%s1120_s9 + $0x94] ss:$8 sps:$4 sm:$0xff]  }
  0x12   : > { %601 = vmatprep.mubr.bf16.mxu1 %v1006_v12  ;;  %v1011_v22 = vld [vmem:[%s1120_s9 + $0x10] ss:$8 sps:$4 sm:$0xff]   ;;  %v1013_v24 = vld [vmem:[%s1120_s9 + $0x24] ss:$8 sps:$4 sm:$0xff]   ;;  %v1017_v26 = vld [vmem:[%s1120_s9 + $0x20] ss:$8 sps:$4 sm:$0xff]  }
  0x13   : > { %856 = vmatpush3.bf16.msra.mxu0 %v992_v7  ;;  %972 = vmatpush3.bf16.msra.mxu1 %v992_v7  ;;  %v1012_v23 = vld [vmem:[%s1120_s9 + $0x90] ss:$8 sps:$4 sm:$0xff]   ;;  %v1015_v25 = vld [vmem:[%s1120_s9 + $0xa4] ss:$8 sps:$4 sm:$0xff]   ;;  %v1018_v27 = vld [vmem:[%s1120_s9 + $0xa0] ss:$8 sps:$4 sm:$0xff]  }
  0x14   : > { %857 = vmatprep.subr.bf16.mxu0 %v993_v8  ;;  %965 = vmatprep.subr.bf16.mxu1 %v993_v8  ;;  %v1019_v28 = vld [vmem:[%s1120_s9 + $0x34] ss:$8 sps:$4 sm:$0xff]   ;;  %v1023_v30 = vld [vmem:[%s1120_s9 + $0x30] ss:$8 sps:$4 sm:$0xff]   ;;  %v1025_v32 = vld [vmem:[%s1120_s9 + $0x44] ss:$8 sps:$4 sm:$0xff]  }
  0x15   : > { %v1021_v29 = vld [vmem:[%s1120_s9 + $0xb4] ss:$8 sps:$4 sm:$0xff]   ;;  %v1024_v31 = vld [vmem:[%s1120_s9 + $0xb0] ss:$8 sps:$4 sm:$0xff]   ;;  %v1027_v33 = vld [vmem:[%s1120_s9 + $0xc4] ss:$8 sps:$4 sm:$0xff]  }
  0x16   : > { %v1029_v34 = vld [vmem:[%s1120_s9 + $0x40] ss:$8 sps:$4 sm:$0xff]   ;;  %v1031_v36 = vld [vmem:[%s1120_s9 + $0x54] ss:$8 sps:$4 sm:$0xff]   ;;  %v1035_v38 = vld [vmem:[%s1120_s9 + $0x50] ss:$8 sps:$4 sm:$0xff]  }
  0x17   : > { %858 = vmatpush3.bf16.msra.mxu0 %v994_v9  ;;  %973 = vmatpush3.bf16.msra.mxu1 %v994_v9  ;;  %v1030_v35 = vld [vmem:[%s1120_s9 + $0xc0] ss:$8 sps:$4 sm:$0xff]   ;;  %v1033_v37 = vld [vmem:[%s1120_s9 + $0xd4] ss:$8 sps:$4 sm:$0xff]   ;;  %v1036_v39 = vld [vmem:[%s1120_s9 + $0xd0] ss:$8 sps:$4 sm:$0xff]  }
  0x18   : > { %859 = vmatprep.subr.bf16.mxu0 %v995_v10  ;;  %966 = vmatprep.subr.bf16.mxu1 %v995_v10  ;;  %v1037_v40 = vld [vmem:[%s1120_s9 + $0x64] ss:$8 sps:$4 sm:$0xff]   ;;  %v1041_v42 = vld [vmem:[%s1120_s9 + $0x60] ss:$8 sps:$4 sm:$0xff]   ;;  %v1043_v44 = vld [vmem:[%s1120_s9 + $0x74] ss:$8 sps:$4 sm:$0xff]  }
  0x19   : > { %v1039_v41 = vld [vmem:[%s1120_s9 + $0xe4] ss:$8 sps:$4 sm:$0xff]   ;;  %v1042_v43 = vld [vmem:[%s1120_s9 + $0xe0] ss:$8 sps:$4 sm:$0xff]   ;;  %v1045_v45 = vld [vmem:[%s1120_s9 + $0xf4] ss:$8 sps:$4 sm:$0xff]  }
  0x1a   : > { %v1047_v46 = vld [vmem:[%s1120_s9 + $0x70] ss:$8 sps:$4 sm:$0xff]  }
  0x1b   : > { %860 = vmatpush3.bf16.msra.mxu0 %v996_v13  ;;  %974 = vmatpush3.bf16.msra.mxu1 %v996_v13  ;;  %v1048_v47 = vld [vmem:[%s1120_s9 + $0xf0] ss:$8 sps:$4 sm:$0xff]  }
  0x1c   : > { %861 = vmatprep.subr.bf16.mxu0 %v997_v14  ;;  %967 = vmatprep.subr.bf16.mxu1 %v997_v14 }
  0x1f   : > { %862 = vmatpush3.bf16.msra.mxu0 %v998_v15  ;;  %975 = vmatpush3.bf16.msra.mxu1 %v998_v15 }
  0x20   : > { %863 = vmatprep.subr.bf16.mxu0 %v999_v16  ;;  %968 = vmatprep.subr.bf16.mxu1 %v999_v16 }
  0x23   : > { %864 = vmatpush3.bf16.msra.mxu0 %v1000_v17  ;;  %976 = vmatpush3.bf16.msra.mxu1 %v1000_v17 }
  0x26   : > { %538 = vmatmul.mubr.bf16.vlgmr.msra.gmra.mrb[0].mxu0 %v1001_v18  ;;  %602 = vmatmul.mubr.bf16.vlgmr.msra.gmra.mrb[0].mxu1 %v1004_v19 }
  0x27   : > { %545 = vmatprep.mubr.bf16.mxu0 %v1007_v20  ;;  %609 = vmatprep.mubr.bf16.mxu1 %v1009_v21 }
  0x2e   : > { %546 = vmatmul.mubr.bf16.gmra.mrb[4].mxu0 %v1011_v22  ;;  %610 = vmatmul.mubr.bf16.gmra.mrb[4].mxu1 %v1012_v23 }
  0x2f   : > { %553 = vmatprep.mubr.bf16.mxu0 %v1013_v24  ;;  %617 = vmatprep.mubr.bf16.mxu1 %v1015_v25 }
  0x36   : > { %554 = vmatmul.mubr.bf16.gmra.mrb[8].mxu0 %v1017_v26  ;;  %618 = vmatmul.mubr.bf16.gmra.mrb[8].mxu1 %v1018_v27 }
  0x37   : > { %561 = vmatprep.mubr.bf16.mxu0 %v1019_v28  ;;  %625 = vmatprep.mubr.bf16.mxu1 %v1021_v29 }
  0x3e   : > { %562 = vmatmul.mubr.bf16.gmra.mrb[12].mxu0 %v1023_v30  ;;  %626 = vmatmul.mubr.bf16.gmra.mrb[12].mxu1 %v1024_v31 }
  0x3f   : > { %569 = vmatprep.mubr.bf16.mxu0 %v1025_v32  ;;  %633 = vmatprep.mubr.bf16.mxu1 %v1027_v33 }
  0x46   : > { %570 = vmatmul.mubr.bf16.gmra.mrb[16].mxu0 %v1029_v34  ;;  %634 = vmatmul.mubr.bf16.gmra.mrb[16].mxu1 %v1030_v35 }
  0x47   : > { %577 = vmatprep.mubr.bf16.mxu0 %v1031_v36  ;;  %641 = vmatprep.mubr.bf16.mxu1 %v1033_v37 }
  0x4e   : > { %578 = vmatmul.mubr.bf16.gmra.mrb[20].mxu0 %v1035_v38  ;;  %642 = vmatmul.mubr.bf16.gmra.mrb[20].mxu1 %v1036_v39 }
  0x4f   : > { %585 = vmatprep.mubr.bf16.mxu0 %v1037_v40  ;;  %649 = vmatprep.mubr.bf16.mxu1 %v1039_v41 }
  0x56   : > { %586 = vmatmul.mubr.bf16.gmra.mrb[24].mxu0 %v1041_v42  ;;  %650 = vmatmul.mubr.bf16.gmra.mrb[24].mxu1 %v1042_v43 }
  0x57   : > { %593 = vmatprep.mubr.bf16.mxu0 %v1043_v44  ;;  %657 = vmatprep.mubr.bf16.mxu1 %v1045_v45 }
  0x5e   : > { %594 = vmatmul.mubr.bf16.gmra.mrb[28].mxu0 %v1047_v46  ;;  %658 = vmatmul.mubr.bf16.gmra.mrb[28].mxu1 %v1048_v47 }
  0xf9   : > { %v865_v48 = vpop.f32.mrb[0].mxu0  ;;  %v913_v49 = vpop.f32.mrb[0].mxu1 }
  0xfa   : > { %v866_v51 = vpop.f32.mrb[1].mxu0  ;;  %v914_v52 = vpop.f32.mrb[1].mxu1 }
  0xfb   : > { %v867_v53 = vadd.f32 %v866_v51, %v865_v48  ;;  %v915_v54 = vadd.f32 %v914_v52, %v913_v49  ;;  %v868_v55 = vpop.f32.mrb[2].mxu0  ;;  %v916_v56 = vpop.f32.mrb[2].mxu1 }
  0xfc   : > { %v869_v57 = vpop.f32.mrb[3].mxu0  ;;  %v917_v58 = vpop.f32.mrb[3].mxu1 }
  0xfd   : > { %v540_v59 = vadd.f32 %v867_v53, %v1178_v50  ;;  %v604_v60 = vadd.f32 %v915_v54, %v1178_v50  ;;  %v870_v61 = vadd.f32 %v869_v57, %v868_v55  ;;  %v918_v62 = vadd.f32 %v917_v58, %v916_v56 }
  0xff   : > { %v666_v63 = vmax.f32 %v540_v59, 0.0  ;;  %v682_v0 = vmax.f32 %v604_v60, 0.0  ;;  %v543_v1 = vadd.f32 %v870_v61, %v1178_v50  ;;  %v607_v2 = vadd.f32 %v918_v62, %v1178_v50 }
 0x101   : > { %699 = vst.msk [vmem:[%s1187_s30] sm:$0xff] %vm698_vm0, %v666_v63  ;;  %715 = vst.msk [vmem:[%s1187_s30 + $0x80] sm:$0xff] %vm698_vm0, %v682_v0  ;;  %v667_v3 = vmax.f32 %v543_v1, 0.0  ;;  %v683_v4 = vmax.f32 %v607_v2, 0.0  ;;  %v871_v5 = vpop.f32.mrb[4].mxu0  ;;  %v919_v6 = vpop.f32.mrb[4].mxu1 }
 0x102   : > { %v872_v7 = vpop.f32.mrb[5].mxu0  ;;  %v920_v8 = vpop.f32.mrb[5].mxu1 }
 0x103   : > { %700 = vst.msk [vmem:[%s1187_s30 + $0x8] sm:$0xff] %vm698_vm0, %v667_v3  ;;  %716 = vst.msk [vmem:[%s1187_s30 + $0x88] sm:$0xff] %vm698_vm0, %v683_v4  ;;  %v873_v9 = vadd.f32 %v872_v7, %v871_v5  ;;  %v921_v10 = vadd.f32 %v920_v8, %v919_v6  ;;  %v874_v11 = vpop.f32.mrb[6].mxu0  ;;  %v922_v12 = vpop.f32.mrb[6].mxu1 }
 0x104   : > { %v875_v13 = vpop.f32.mrb[7].mxu0  ;;  %v923_v14 = vpop.f32.mrb[7].mxu1 }
 0x105   : > { %v548_v15 = vadd.f32 %v873_v9, %v1178_v50  ;;  %v612_v16 = vadd.f32 %v921_v10, %v1178_v50  ;;  %v876_v17 = vadd.f32 %v875_v13, %v874_v11  ;;  %v924_v18 = vadd.f32 %v923_v14, %v922_v12 }
 0x107   : > { %v668_v19 = vmax.f32 %v548_v15, 0.0  ;;  %v684_v20 = vmax.f32 %v612_v16, 0.0  ;;  %v551_v21 = vadd.f32 %v876_v17, %v1178_v50  ;;  %v615_v22 = vadd.f32 %v924_v18, %v1178_v50 }
 0x109   : > { %701 = vst.msk [vmem:[%s1187_s30 + $0x10] sm:$0xff] %vm698_vm0, %v668_v19  ;;  %717 = vst.msk [vmem:[%s1187_s30 + $0x90] sm:$0xff] %vm698_vm0, %v684_v20  ;;  %v669_v23 = vmax.f32 %v551_v21, 0.0  ;;  %v685_v24 = vmax.f32 %v615_v22, 0.0  ;;  %v877_v25 = vpop.f32.mrb[8].mxu0  ;;  %v925_v26 = vpop.f32.mrb[8].mxu1 }
 0x10a   : > { %v878_v27 = vpop.f32.mrb[9].mxu0  ;;  %v926_v28 = vpop.f32.mrb[9].mxu1 }
 0x10b   : > { %702 = vst.msk [vmem:[%s1187_s30 + $0x18] sm:$0xff] %vm698_vm0, %v669_v23  ;;  %718 = vst.msk [vmem:[%s1187_s30 + $0x98] sm:$0xff] %vm698_vm0, %v685_v24  ;;  %v879_v29 = vadd.f32 %v878_v27, %v877_v25  ;;  %v927_v30 = vadd.f32 %v926_v28, %v925_v26  ;;  %v880_v31 = vpop.f32.mrb[10].mxu0  ;;  %v928_v32 = vpop.f32.mrb[10].mxu1 }
 0x10c   : > { %v881_v33 = vpop.f32.mrb[11].mxu0  ;;  %v929_v34 = vpop.f32.mrb[11].mxu1 }
 0x10d   : > { %v556_v35 = vadd.f32 %v879_v29, %v1178_v50  ;;  %v620_v36 = vadd.f32 %v927_v30, %v1178_v50  ;;  %v882_v37 = vadd.f32 %v881_v33, %v880_v31  ;;  %v930_v38 = vadd.f32 %v929_v34, %v928_v32 }
 0x10f   : > { %v670_v39 = vmax.f32 %v556_v35, 0.0  ;;  %v686_v40 = vmax.f32 %v620_v36, 0.0  ;;  %v559_v41 = vadd.f32 %v882_v37, %v1178_v50  ;;  %v623_v42 = vadd.f32 %v930_v38, %v1178_v50 }
 0x111   : > { %703 = vst.msk [vmem:[%s1187_s30 + $0x20] sm:$0xff] %vm698_vm0, %v670_v39  ;;  %719 = vst.msk [vmem:[%s1187_s30 + $0xa0] sm:$0xff] %vm698_vm0, %v686_v40  ;;  %v671_v43 = vmax.f32 %v559_v41, 0.0  ;;  %v687_v44 = vmax.f32 %v623_v42, 0.0  ;;  %v883_v45 = vpop.f32.mrb[12].mxu0  ;;  %v931_v46 = vpop.f32.mrb[12].mxu1 }
 0x112   : > { %v884_v47 = vpop.f32.mrb[13].mxu0  ;;  %v932_v48 = vpop.f32.mrb[13].mxu1 }
 0x113   : > { %704 = vst.msk [vmem:[%s1187_s30 + $0x28] sm:$0xff] %vm698_vm0, %v671_v43  ;;  %720 = vst.msk [vmem:[%s1187_s30 + $0xa8] sm:$0xff] %vm698_vm0, %v687_v44  ;;  %v885_v49 = vadd.f32 %v884_v47, %v883_v45  ;;  %v933_v51 = vadd.f32 %v932_v48, %v931_v46  ;;  %v886_v52 = vpop.f32.mrb[14].mxu0  ;;  %v934_v53 = vpop.f32.mrb[14].mxu1 }
 0x114   : > { %v887_v54 = vpop.f32.mrb[15].mxu0  ;;  %v935_v55 = vpop.f32.mrb[15].mxu1 }
 0x115   : > { %v564_v56 = vadd.f32 %v885_v49, %v1178_v50  ;;  %v628_v57 = vadd.f32 %v933_v51, %v1178_v50  ;;  %v888_v58 = vadd.f32 %v887_v54, %v886_v52  ;;  %v936_v59 = vadd.f32 %v935_v55, %v934_v53 }
 0x117   : > { %v672_v60 = vmax.f32 %v564_v56, 0.0  ;;  %v688_v61 = vmax.f32 %v628_v57, 0.0  ;;  %v567_v62 = vadd.f32 %v888_v58, %v1178_v50  ;;  %v631_v63 = vadd.f32 %v936_v59, %v1178_v50 }
 0x119   : > { %705 = vst.msk [vmem:[%s1187_s30 + $0x30] sm:$0xff] %vm698_vm0, %v672_v60  ;;  %721 = vst.msk [vmem:[%s1187_s30 + $0xb0] sm:$0xff] %vm698_vm0, %v688_v61  ;;  %v673_v0 = vmax.f32 %v567_v62, 0.0  ;;  %v689_v1 = vmax.f32 %v631_v63, 0.0  ;;  %v889_v2 = vpop.f32.mrb[16].mxu0  ;;  %v937_v3 = vpop.f32.mrb[16].mxu1 }
 0x11a   : > { %v890_v4 = vpop.f32.mrb[17].mxu0  ;;  %v938_v5 = vpop.f32.mrb[17].mxu1 }
 0x11b   : > { %706 = vst.msk [vmem:[%s1187_s30 + $0x38] sm:$0xff] %vm698_vm0, %v673_v0  ;;  %722 = vst.msk [vmem:[%s1187_s30 + $0xb8] sm:$0xff] %vm698_vm0, %v689_v1  ;;  %v891_v6 = vadd.f32 %v890_v4, %v889_v2  ;;  %v939_v7 = vadd.f32 %v938_v5, %v937_v3  ;;  %v892_v8 = vpop.f32.mrb[18].mxu0  ;;  %v940_v9 = vpop.f32.mrb[18].mxu1 }
 0x11c   : > { %v893_v10 = vpop.f32.mrb[19].mxu0  ;;  %v941_v11 = vpop.f32.mrb[19].mxu1 }
 0x11d   : > { %v572_v12 = vadd.f32 %v891_v6, %v1178_v50  ;;  %v636_v13 = vadd.f32 %v939_v7, %v1178_v50  ;;  %v894_v14 = vadd.f32 %v893_v10, %v892_v8  ;;  %v942_v15 = vadd.f32 %v941_v11, %v940_v9 }
 0x11f   : > { %v674_v16 = vmax.f32 %v572_v12, 0.0  ;;  %v690_v17 = vmax.f32 %v636_v13, 0.0  ;;  %v575_v18 = vadd.f32 %v894_v14, %v1178_v50  ;;  %v639_v19 = vadd.f32 %v942_v15, %v1178_v50 }
 0x121   : > { %707 = vst.msk [vmem:[%s1187_s30 + $0x40] sm:$0xff] %vm698_vm0, %v674_v16  ;;  %723 = vst.msk [vmem:[%s1187_s30 + $0xc0] sm:$0xff] %vm698_vm0, %v690_v17  ;;  %v675_v20 = vmax.f32 %v575_v18, 0.0  ;;  %v691_v21 = vmax.f32 %v639_v19, 0.0  ;;  %v895_v22 = vpop.f32.mrb[20].mxu0  ;;  %v943_v23 = vpop.f32.mrb[20].mxu1 }
 0x122   : > { %v896_v24 = vpop.f32.mrb[21].mxu0  ;;  %v944_v25 = vpop.f32.mrb[21].mxu1 }
 0x123   : > { %708 = vst.msk [vmem:[%s1187_s30 + $0x48] sm:$0xff] %vm698_vm0, %v675_v20  ;;  %724 = vst.msk [vmem:[%s1187_s30 + $0xc8] sm:$0xff] %vm698_vm0, %v691_v21  ;;  %v897_v26 = vadd.f32 %v896_v24, %v895_v22  ;;  %v945_v27 = vadd.f32 %v944_v25, %v943_v23  ;;  %v898_v28 = vpop.f32.mrb[22].mxu0  ;;  %v946_v29 = vpop.f32.mrb[22].mxu1 }
 0x124   : > { %v899_v30 = vpop.f32.mrb[23].mxu0  ;;  %v947_v31 = vpop.f32.mrb[23].mxu1 }
 0x125   : > { %v580_v32 = vadd.f32 %v897_v26, %v1178_v50  ;;  %v644_v33 = vadd.f32 %v945_v27, %v1178_v50  ;;  %v900_v34 = vadd.f32 %v899_v30, %v898_v28  ;;  %v948_v35 = vadd.f32 %v947_v31, %v946_v29 }
 0x127   : > { %v676_v36 = vmax.f32 %v580_v32, 0.0  ;;  %v692_v37 = vmax.f32 %v644_v33, 0.0  ;;  %v583_v38 = vadd.f32 %v900_v34, %v1178_v50  ;;  %v647_v39 = vadd.f32 %v948_v35, %v1178_v50 }
 0x129   : > { %709 = vst.msk [vmem:[%s1187_s30 + $0x50] sm:$0xff] %vm698_vm0, %v676_v36  ;;  %725 = vst.msk [vmem:[%s1187_s30 + $0xd0] sm:$0xff] %vm698_vm0, %v692_v37  ;;  %v677_v40 = vmax.f32 %v583_v38, 0.0  ;;  %v693_v41 = vmax.f32 %v647_v39, 0.0  ;;  %v901_v42 = vpop.f32.mrb[24].mxu0  ;;  %v949_v43 = vpop.f32.mrb[24].mxu1 }
 0x12a   : > { %v902_v44 = vpop.f32.mrb[25].mxu0  ;;  %v950_v45 = vpop.f32.mrb[25].mxu1 }
 0x12b   : > { %710 = vst.msk [vmem:[%s1187_s30 + $0x58] sm:$0xff] %vm698_vm0, %v677_v40  ;;  %726 = vst.msk [vmem:[%s1187_s30 + $0xd8] sm:$0xff] %vm698_vm0, %v693_v41  ;;  %v903_v46 = vadd.f32 %v902_v44, %v901_v42  ;;  %v951_v47 = vadd.f32 %v950_v45, %v949_v43  ;;  %v904_v48 = vpop.f32.mrb[26].mxu0  ;;  %v952_v49 = vpop.f32.mrb[26].mxu1 }
 0x12c   : > { %v905_v51 = vpop.f32.mrb[27].mxu0  ;;  %v953_v52 = vpop.f32.mrb[27].mxu1 }
 0x12d   : > { %v588_v53 = vadd.f32 %v903_v46, %v1178_v50  ;;  %v652_v54 = vadd.f32 %v951_v47, %v1178_v50  ;;  %v906_v55 = vadd.f32 %v905_v51, %v904_v48  ;;  %v954_v56 = vadd.f32 %v953_v52, %v952_v49 }
 0x12f   : > { %v678_v57 = vmax.f32 %v588_v53, 0.0  ;;  %v694_v58 = vmax.f32 %v652_v54, 0.0  ;;  %v591_v59 = vadd.f32 %v906_v55, %v1178_v50  ;;  %v655_v60 = vadd.f32 %v954_v56, %v1178_v50 }
 0x131   : > { %711 = vst.msk [vmem:[%s1187_s30 + $0x60] sm:$0xff] %vm698_vm0, %v678_v57  ;;  %727 = vst.msk [vmem:[%s1187_s30 + $0xe0] sm:$0xff] %vm698_vm0, %v694_v58  ;;  %v679_v61 = vmax.f32 %v591_v59, 0.0  ;;  %v695_v62 = vmax.f32 %v655_v60, 0.0  ;;  %v907_v63 = vpop.f32.mrb[28].mxu0  ;;  %v955_v0 = vpop.f32.mrb[28].mxu1 }
 0x132   : > { %v908_v1 = vpop.f32.mrb[29].mxu0  ;;  %v956_v2 = vpop.f32.mrb[29].mxu1 }
 0x133   : > { %712 = vst.msk [vmem:[%s1187_s30 + $0x68] sm:$0xff] %vm698_vm0, %v679_v61  ;;  %728 = vst.msk [vmem:[%s1187_s30 + $0xe8] sm:$0xff] %vm698_vm0, %v695_v62  ;;  %v909_v3 = vadd.f32 %v908_v1, %v907_v63  ;;  %v957_v4 = vadd.f32 %v956_v2, %v955_v0  ;;  %v910_v5 = vpop.f32.mrb[30].mxu0  ;;  %v958_v6 = vpop.f32.mrb[30].mxu1 }
 0x134   : > { %v911_v7 = vpop.f32.mrb[31].mxu0  ;;  %v959_v8 = vpop.f32.mrb[31].mxu1 }
 0x135   : > { %v596_v9 = vadd.f32 %v909_v3, %v1178_v50  ;;  %v660_v10 = vadd.f32 %v957_v4, %v1178_v50  ;;  %v912_v11 = vadd.f32 %v911_v7, %v910_v5  ;;  %v960_v12 = vadd.f32 %v959_v8, %v958_v6 }
 0x137   : > { %v680_v13 = vmax.f32 %v596_v9, 0.0  ;;  %v696_v14 = vmax.f32 %v660_v10, 0.0  ;;  %v599_v15 = vadd.f32 %v912_v11, %v1178_v50  ;;  %v663_v16 = vadd.f32 %v960_v12, %v1178_v50 }
 0x139   : > { %713 = vst.msk [vmem:[%s1187_s30 + $0x70] sm:$0xff] %vm698_vm0, %v680_v13  ;;  %729 = vst.msk [vmem:[%s1187_s30 + $0xf0] sm:$0xff] %vm698_vm0, %v696_v14  ;;  %v681_v17 = vmax.f32 %v599_v15, 0.0  ;;  %v697_v18 = vmax.f32 %v663_v16, 0.0 }
 0x13b   : > { %714 = vst.msk [vmem:[%s1187_s30 + $0x78] sm:$0xff] %vm698_vm0, %v681_v17  ;;  %730 = vst.msk [vmem:[%s1187_s30 + $0xf8] sm:$0xff] %vm698_vm0, %v697_v18 }
 0x13c PF: > { %s13_s12 = sadd.s32 1, %s1055_s12  }
 0x13d   : > { %p10_p4 = scmp.ge.s32.totalorder %s13_s12, 4  }
 0x13f   :  { %12 = sbr.rel (!%p10_p4) target bundleno = 1 (0x1), region = 62 }

// kernel: extractor_forward.13
= control target key start
LH: loop header
LB: loop body
LE: loop exit
PB: predicated region body
PF: predicated region fallthrough
CT: control target
= control target key end

     0   :  { %vm905_vm0 = vcmask 523264   ;;  %s1670_s1 = inlined_call_operand.vmem [shape: bf16[640,64], index: 1, kind: input, shape index: {}]   ;;  %s1671_s0 = inlined_call_operand.vmem [shape: bf16[128,640], index: 0, kind: input, shape index: {}]   ;;  %s1672_s2 = inlined_call_operand.vmem [shape: f32[1,64], index: 2, kind: input, shape index: {}]   ;;  %s1673_s3 = inlined_call_operand.vmem [shape: f32[128,64], index: 3, kind: output, shape index: {}]  }
   0x1   :  { %v1199_v0 = vld [vmem:[%s1670_s1 + $0x40] sm:$0xff]   ;;  %v1203_v4 = vld [vmem:[%s1670_s1 + $0x48] sm:$0xff]   ;;  %v1207_v8 = vld [vmem:[%s1670_s1 + $0x50] sm:$0xff]  }
   0x2   :  { %v1200_v1 = vld [vmem:[%s1670_s1 + $0xc0] sm:$0xff]   ;;  %1007 = vmatprep.subr.bf16.mxu0 %v1199_v0  ;;  %v1204_v5 = vld [vmem:[%s1670_s1 + $0xc8] sm:$0xff]   ;;  %v1208_v9 = vld [vmem:[%s1670_s1 + $0xd0] sm:$0xff]  }
   0x3   :  { %v1201_v2 = vld [vmem:[%s1670_s1] sm:$0xff]   ;;  %1071 = vmatprep.subr.bf16.mxu1 %v1200_v1  ;;  %v1205_v6 = vld [vmem:[%s1670_s1 + $0x8] sm:$0xff]   ;;  %v1209_v10 = vld [vmem:[%s1670_s1 + $0x10] sm:$0xff]  }
   0x4   :  { %v1202_v3 = vld [vmem:[%s1670_s1 + $0x80] sm:$0xff]   ;;  %1008 = vmatpush3.bf16.msra.mxu0 %v1201_v2  ;;  %v1206_v7 = vld [vmem:[%s1670_s1 + $0x88] sm:$0xff]   ;;  %v1210_v11 = vld [vmem:[%s1670_s1 + $0x90] sm:$0xff]  }
   0x5   :  { %1072 = vmatpush3.bf16.msra.mxu1 %v1202_v3  ;;  %1009 = vmatprep.subr.bf16.mxu0 %v1203_v4  ;;  %v1211_v12 = vld [vmem:[%s1670_s1 + $0x58] sm:$0xff]   ;;  %v1215_v16 = vld [vmem:[%s1670_s1 + $0x60] sm:$0xff]   ;;  %v1219_v20 = vld [vmem:[%s1670_s1 + $0x68] sm:$0xff]  }
   0x6   :  { %1073 = vmatprep.subr.bf16.mxu1 %v1204_v5  ;;  %v1212_v13 = vld [vmem:[%s1670_s1 + $0xd8] sm:$0xff]   ;;  %v1216_v17 = vld [vmem:[%s1670_s1 + $0xe0] sm:$0xff]   ;;  %v1220_v21 = vld [vmem:[%s1670_s1 + $0xe8] sm:$0xff]  }
   0x7   :  { %v1213_v14 = vld [vmem:[%s1670_s1 + $0x18] sm:$0xff]   ;;  %v1217_v18 = vld [vmem:[%s1670_s1 + $0x20] sm:$0xff]   ;;  %v1221_v22 = vld [vmem:[%s1670_s1 + $0x28] sm:$0xff]  }
   0x8   :  { %1010 = vmatpush3.bf16.msra.mxu0 %v1205_v6  ;;  %v1214_v15 = vld [vmem:[%s1670_s1 + $0x98] sm:$0xff]   ;;  %v1218_v19 = vld [vmem:[%s1670_s1 + $0xa0] sm:$0xff]   ;;  %v1222_v23 = vld [vmem:[%s1670_s1 + $0xa8] sm:$0xff]  }
   0x9   :  { %1074 = vmatpush3.bf16.msra.mxu1 %v1206_v7  ;;  %1011 = vmatprep.subr.bf16.mxu0 %v1207_v8  ;;  %v1223_v24 = vld [vmem:[%s1670_s1 + $0x70] sm:$0xff]   ;;  %v1227_v28 = vld [vmem:[%s1670_s1 + $0x78] sm:$0xff]   ;;  %v1236_v35 = vld [vmem:[%s1671_s0 + $0xc] ss:$20 sps:$4 sm:$0xff]  }
   0xa   :  { %1075 = vmatprep.subr.bf16.mxu1 %v1208_v9  ;;  %v1224_v25 = vld [vmem:[%s1670_s1 + $0xf0] sm:$0xff]   ;;  %v1228_v29 = vld [vmem:[%s1670_s1 + $0xf8] sm:$0xff]   ;;  %v1237_v36 = vld [vmem:[%s1670_s1 + $0x100] sm:$0xff]   ;;  %727 = vmatprep.mubr.bf16.mxu1 %v1236_v35 }
   0xb   :  { %v1225_v26 = vld [vmem:[%s1670_s1 + $0x30] sm:$0xff]   ;;  %v1229_v30 = vld [vmem:[%s1670_s1 + $0x38] sm:$0xff]   ;;  %v1238_v37 = vld [vmem:[%s1671_s0 + $0x2c] ss:$20 sps:$4 sm:$0xff]  }
   0xc   :  { %1012 = vmatpush3.bf16.msra.mxu0 %v1209_v10  ;;  %v1226_v27 = vld [vmem:[%s1670_s1 + $0xb0] sm:$0xff]   ;;  %v1230_v31 = vld [vmem:[%s1670_s1 + $0xb8] sm:$0xff]   ;;  %v1244_v39 = vld [vmem:[%s1670_s1 + $0x108] sm:$0xff]  }
   0xd   :  { %1076 = vmatpush3.bf16.msra.mxu1 %v1210_v11  ;;  %1013 = vmatprep.subr.bf16.mxu0 %v1211_v12  ;;  %v1231_v32 = vld [vmem:[%s1671_s0] ss:$20 sps:$4 sm:$0xff]   ;;  %v1233_v33 = vld [vmem:[%s1671_s0 + $0x4] ss:$20 sps:$4 sm:$0xff]   ;;  %v1234_v34 = vld [vmem:[%s1671_s0 + $0x8] ss:$20 sps:$4 sm:$0xff]  }
   0xe   :  { %1077 = vmatprep.subr.bf16.mxu1 %v1212_v13  ;;  %630 = vmatprep.mubr.bf16.mxu0 %v1233_v33  ;;  %v1240_v38 = vld [vmem:[%s1671_s0 + $0x34] ss:$20 sps:$4 sm:$0xff]   ;;  %v1243_v41 = vld [vmem:[%s1671_s0 + $0x30] ss:$20 sps:$4 sm:$0xff]   ;;  %v1258_v45 = vld [vmem:[%s1670_s1 + $0x118] sm:$0xff]  }
   0xf   :  { %v1242_v40 = vld [vmem:[%s1671_s0 + $0x28] ss:$20 sps:$4 sm:$0xff]   ;;  %v1251_v44 = vld [vmem:[%s1670_s1 + $0x110] sm:$0xff]   ;;  %v1250_v47 = vld [vmem:[%s1671_s0 + $0x58] ss:$20 sps:$4 sm:$0xff]  }
  0x10   :  { %1014 = vmatpush3.bf16.msra.mxu0 %v1213_v14  ;;  %v1245_v42 = vld [vmem:[%s1671_s0 + $0x54] ss:$20 sps:$4 sm:$0xff]   ;;  %v1247_v43 = vld [vmem:[%s1671_s0 + $0x5c] ss:$20 sps:$4 sm:$0xff]   ;;  %v1254_v49 = vld [vmem:[%s1671_s0 + $0x84] ss:$20 sps:$4 sm:$0xff]  }
  0x11   :  { %1078 = vmatpush3.bf16.msra.mxu1 %v1214_v15  ;;  %1015 = vmatprep.subr.bf16.mxu0 %v1215_v16  ;;  %v1249_v46 = vld [vmem:[%s1671_s0 + $0x50] ss:$20 sps:$4 sm:$0xff]   ;;  %v1272_v51 = vld [vmem:[%s1670_s1 + $0x128] sm:$0xff]   ;;  %v1257_v53 = vld [vmem:[%s1671_s0 + $0x80] ss:$20 sps:$4 sm:$0xff]  }
  0x12   :  { %1079 = vmatprep.subr.bf16.mxu1 %v1216_v17  ;;  %v1252_v48 = vld [vmem:[%s1671_s0 + $0x7c] ss:$20 sps:$4 sm:$0xff]   ;;  %v1265_v50 = vld [vmem:[%s1670_s1 + $0x120] sm:$0xff]   ;;  %v1256_v52 = vld [vmem:[%s1671_s0 + $0x78] ss:$20 sps:$4 sm:$0xff]  }
  0x13   :  { %v1259_v54 = vld [vmem:[%s1671_s0 + $0xa4] ss:$20 sps:$4 sm:$0xff]   ;;  %v1279_v55 = vld [vmem:[%s1670_s1 + $0x130] sm:$0xff]   ;;  %v1261_v56 = vld [vmem:[%s1671_s0 + $0xac] ss:$20 sps:$4 sm:$0xff]  }
  0x14   :  { %1016 = vmatpush3.bf16.msra.mxu0 %v1217_v18  ;;  %v1286_v57 = vld [vmem:[%s1670_s1 + $0x138] sm:$0xff]   ;;  %v1263_v58 = vld [vmem:[%s1671_s0 + $0xa0] ss:$20 sps:$4 sm:$0xff]   ;;  %v1271_v63 = vld [vmem:[%s1671_s0 + $0xd0] ss:$20 sps:$4 sm:$0xff]  }
  0x15   :  { %1080 = vmatpush3.bf16.msra.mxu1 %v1218_v19  ;;  %1017 = vmatprep.subr.bf16.mxu0 %v1219_v20  ;;  %v1264_v59 = vld [vmem:[%s1671_s0 + $0xa8] ss:$20 sps:$4 sm:$0xff]   ;;  %v1266_v60 = vld [vmem:[%s1671_s0 + $0xcc] ss:$20 sps:$4 sm:$0xff]   ;;  %v1277_v2 = vld [vmem:[%s1671_s0 + $0xf0] ss:$20 sps:$4 sm:$0xff]  }
  0x16   :  { %1081 = vmatprep.subr.bf16.mxu1 %v1220_v21  ;;  %v1268_v61 = vld [vmem:[%s1671_s0 + $0xd4] ss:$20 sps:$4 sm:$0xff]   ;;  %v1275_v1 = vld [vmem:[%s1671_s0 + $0xfc] ss:$20 sps:$4 sm:$0xff]   ;;  %v1278_v3 = vld [vmem:[%s1671_s0 + $0xf8] ss:$20 sps:$4 sm:$0xff]  }
  0x17   :  { %v1270_v62 = vld [vmem:[%s1671_s0 + $0xc8] ss:$20 sps:$4 sm:$0xff]   ;;  %v1282_v5 = vld [vmem:[%s1671_s0 + $0x124] ss:$20 sps:$4 sm:$0xff]   ;;  %v1285_v7 = vld [vmem:[%s1671_s0 + $0x120] ss:$20 sps:$4 sm:$0xff]  }
  0x18   :  { %1018 = vmatpush3.bf16.msra.mxu0 %v1221_v22  ;;  %v1273_v0 = vld [vmem:[%s1671_s0 + $0xf4] ss:$20 sps:$4 sm:$0xff]   ;;  %v1280_v4 = vld [vmem:[%s1671_s0 + $0x11c] ss:$20 sps:$4 sm:$0xff]   ;;  %v1284_v6 = vld [vmem:[%s1671_s0 + $0x118] ss:$20 sps:$4 sm:$0xff]  }
  0x19   :  { %1082 = vmatpush3.bf16.msra.mxu1 %v1222_v23  ;;  %1019 = vmatprep.subr.bf16.mxu0 %v1223_v24  ;;  %v1287_v8 = vld [vmem:[%s1671_s0 + $0x10] ss:$20 sps:$4 sm:$0xff]   ;;  %v1289_v10 = vld [vmem:[%s1671_s0 + $0x38] ss:$20 sps:$4 sm:$0xff]   ;;  %v1291_v12 = vld [vmem:[%s1671_s0 + $0x60] ss:$20 sps:$4 sm:$0xff]  }
  0x1a   :  { %1083 = vmatprep.subr.bf16.mxu1 %v1224_v25  ;;  %v1288_v9 = vld [vmem:[%s1671_s0 + $0xb0] ss:$20 sps:$4 sm:$0xff]   ;;  %v1290_v11 = vld [vmem:[%s1671_s0 + $0xd8] ss:$20 sps:$4 sm:$0xff]   ;;  %v1292_v13 = vld [vmem:[%s1671_s0 + $0x100] ss:$20 sps:$4 sm:$0xff]  }
  0x1b   :  { %v1293_v14 = vld [vmem:[%s1671_s0 + $0x88] ss:$20 sps:$4 sm:$0xff]   ;;  %v1558_v18 = vld [vmem:[%s1672_s2] ss:$0 sm:$0xff] }
  0x1c   :  { %1020 = vmatpush3.bf16.msra.mxu0 %v1225_v26  ;;  %v1294_v15 = vld [vmem:[%s1671_s0 + $0x128] ss:$20 sps:$4 sm:$0xff]  }
  0x1d   :  { %1084 = vmatpush3.bf16.msra.mxu1 %v1226_v27  ;;  %1021 = vmatprep.subr.bf16.mxu0 %v1227_v28 }
  0x1e   :  { %1085 = vmatprep.subr.bf16.mxu1 %v1228_v29 }
  0x20   :  { %1022 = vmatpush3.bf16.msra.mxu0 %v1229_v30 }
  0x21   :  { %1086 = vmatpush3.bf16.msra.mxu1 %v1230_v31  ;;  %1151 = vmatprep.subr.bf16.mxu0 %v1237_v36 }
  0x22   :  { %1183 = vmatprep.subr.bf16.mxu1 %v1237_v36 }
  0x23   :  { %631 = vmatmul.mubr.bf16.vlgmr.msra.gmra.mrb[0].mxu0 %v1231_v32 }
  0x24   :  { %728 = vmatmul.mubr.bf16.vlgmr.msra.gmra.mrb[0].mxu1 %v1234_v34  ;;  %1152 = vmatpush3.bf16.msra.mxu0 %v1237_v36 }
  0x25   :  { %1191 = vmatpush3.bf16.msra.mxu1 %v1237_v36  ;;  %638 = vmatprep.mubr.bf16.mxu0 %v1238_v37 }
  0x26   :  { %735 = vmatprep.mubr.bf16.mxu1 %v1240_v38  ;;  %1153 = vmatprep.subr.bf16.mxu0 %v1244_v39 }
  0x27   :  { %1184 = vmatprep.subr.bf16.mxu1 %v1244_v39 }
  0x28   :  { %1154 = vmatpush3.bf16.msra.mxu0 %v1244_v39 }
  0x29   :  { %1192 = vmatpush3.bf16.msra.mxu1 %v1244_v39  ;;  %1155 = vmatprep.subr.bf16.mxu0 %v1251_v44 }
  0x2a   :  { %1185 = vmatprep.subr.bf16.mxu1 %v1251_v44 }
  0x2b   :  { %639 = vmatmul.mubr.bf16.gmra.mrb[4].mxu0 %v1242_v40 }
  0x2c   :  { %736 = vmatmul.mubr.bf16.gmra.mrb[4].mxu1 %v1243_v41  ;;  %646 = vmatprep.mubr.bf16.mxu0 %v1245_v42 }
  0x2d   :  { %743 = vmatprep.mubr.bf16.mxu1 %v1247_v43  ;;  %1156 = vmatpush3.bf16.msra.mxu0 %v1251_v44 }
  0x2e   :  { %1193 = vmatpush3.bf16.msra.mxu1 %v1251_v44  ;;  %1157 = vmatprep.subr.bf16.mxu0 %v1258_v45 }
  0x2f   :  { %1186 = vmatprep.subr.bf16.mxu1 %v1258_v45 }
  0x31   :  { %1158 = vmatpush3.bf16.msra.mxu0 %v1258_v45 }
  0x32   :  { %1194 = vmatpush3.bf16.msra.mxu1 %v1258_v45  ;;  %1159 = vmatprep.subr.bf16.mxu0 %v1265_v50 }
  0x33   :  { %647 = vmatmul.mubr.bf16.gmra.mrb[8].mxu0 %v1249_v46  ;;  %1187 = vmatprep.subr.bf16.mxu1 %v1265_v50 }
  0x34   :  { %744 = vmatmul.mubr.bf16.gmra.mrb[8].mxu1 %v1250_v47  ;;  %654 = vmatprep.mubr.bf16.mxu0 %v1252_v48 }
  0x35   :  { %751 = vmatprep.mubr.bf16.mxu1 %v1254_v49  ;;  %1160 = vmatpush3.bf16.msra.mxu0 %v1265_v50 }
  0x36   :  { %1195 = vmatpush3.bf16.msra.mxu1 %v1265_v50  ;;  %1161 = vmatprep.subr.bf16.mxu0 %v1272_v51 }
  0x37   :  { %1188 = vmatprep.subr.bf16.mxu1 %v1272_v51 }
  0x39   :  { %1162 = vmatpush3.bf16.msra.mxu0 %v1272_v51 }
  0x3a   :  { %1196 = vmatpush3.bf16.msra.mxu1 %v1272_v51  ;;  %1163 = vmatprep.subr.bf16.mxu0 %v1279_v55 }
  0x3b   :  { %655 = vmatmul.mubr.bf16.gmra.mrb[12].mxu0 %v1256_v52  ;;  %1189 = vmatprep.subr.bf16.mxu1 %v1279_v55 }
  0x3c   :  { %752 = vmatmul.mubr.bf16.gmra.mrb[12].mxu1 %v1257_v53  ;;  %662 = vmatprep.mubr.bf16.mxu0 %v1259_v54 }
  0x3d   :  { %759 = vmatprep.mubr.bf16.mxu1 %v1261_v56  ;;  %1164 = vmatpush3.bf16.msra.mxu0 %v1279_v55 }
  0x3e   :  { %1197 = vmatpush3.bf16.msra.mxu1 %v1279_v55  ;;  %1165 = vmatprep.subr.bf16.mxu0 %v1286_v57 }
  0x3f   :  { %1190 = vmatprep.subr.bf16.mxu1 %v1286_v57 }
  0x41   :  { %1166 = vmatpush3.bf16.msra.mxu0 %v1286_v57 }
  0x42   :  { %1198 = vmatpush3.bf16.msra.mxu1 %v1286_v57 }
  0x43   :  { %663 = vmatmul.mubr.bf16.gmra.mrb[16].mxu0 %v1263_v58 }
  0x44   :  { %760 = vmatmul.mubr.bf16.gmra.mrb[16].mxu1 %v1264_v59  ;;  %670 = vmatprep.mubr.bf16.mxu0 %v1266_v60 }
  0x45   :  { %767 = vmatprep.mubr.bf16.mxu1 %v1268_v61 }
  0x4b   :  { %671 = vmatmul.mubr.bf16.gmra.mrb[20].mxu0 %v1270_v62 }
  0x4c   :  { %768 = vmatmul.mubr.bf16.gmra.mrb[20].mxu1 %v1271_v63  ;;  %678 = vmatprep.mubr.bf16.mxu0 %v1273_v0 }
  0x4d   :  { %775 = vmatprep.mubr.bf16.mxu1 %v1275_v1 }
  0x53   :  { %679 = vmatmul.mubr.bf16.gmra.mrb[24].mxu0 %v1277_v2 }
  0x54   :  { %776 = vmatmul.mubr.bf16.gmra.mrb[24].mxu1 %v1278_v3  ;;  %686 = vmatprep.mubr.bf16.mxu0 %v1280_v4 }
  0x55   :  { %783 = vmatprep.mubr.bf16.mxu1 %v1282_v5 }
  0x5b   :  { %687 = vmatmul.mubr.bf16.gmra.mrb[28].mxu0 %v1284_v6 }
  0x5c   :  { %784 = vmatmul.mubr.bf16.gmra.mrb[28].mxu1 %v1285_v7  ;;  %1167 = vmatprep.mubr.bf16.mxu0 %v1287_v8 }
  0x5d   :  { %1175 = vmatprep.mubr.bf16.mxu1 %v1288_v9 }
  0x63   :  { %1168 = vmatmul.mubr.bf16.vlgmr.msra.gmra.mrb[32].mxu0 %v1289_v10 }
  0x64   :  { %1176 = vmatmul.mubr.bf16.vlgmr.msra.gmra.mrb[32].mxu1 %v1290_v11  ;;  %1171 = vmatprep.mubr.bf16.mxu0 %v1291_v12 }
  0x65   :  { %1179 = vmatprep.mubr.bf16.mxu1 %v1292_v13 }
  0x6b   :  { %1172 = vmatmul.mubr.bf16.gmra.mrb[36].mxu0 %v1293_v14 }
  0x6c   :  { %1180 = vmatmul.mubr.bf16.gmra.mrb[36].mxu1 %v1294_v15 }
  0xf6   :  { %v1023_v16 = vpop.f32.mrb[0].mxu0 }
  0xf7   :  { %v1087_v17 = vpop.f32.mrb[0].mxu1  ;;  %v1024_v19 = vpop.f32.mrb[1].mxu0 }
  0xf8   :  { %v1025_v20 = vadd.f32 %v1024_v19, %v1023_v16  ;;  %v1088_v21 = vpop.f32.mrb[1].mxu1  ;;  %v1026_v22 = vpop.f32.mrb[2].mxu0 }
  0xf9   :  { %v1089_v23 = vadd.f32 %v1088_v21, %v1087_v17  ;;  %v1090_v24 = vpop.f32.mrb[2].mxu1  ;;  %v1027_v25 = vpop.f32.mrb[3].mxu0 }
  0xfa   :  { %v633_v26 = vadd.f32 %v1025_v20, %v1558_v18  ;;  %v1028_v27 = vadd.f32 %v1027_v25, %v1026_v22  ;;  %v1091_v28 = vpop.f32.mrb[3].mxu1 }
  0xfb   :  { %v1092_v29 = vadd.f32 %v1091_v28, %v1090_v24 }
  0xfc   :  { %v636_v30 = vadd.f32 %v1028_v27, %v1558_v18  ;;  %v1562_v31 = vadd.f32 %v1089_v23, %v633_v26 }
  0xfe   :  { %v1029_v32 = vpop.f32.mrb[4].mxu0  ;;  %v1564_v33 = vadd.f32 %v1092_v29, %v636_v30 }
  0xff   :  { %v1093_v34 = vpop.f32.mrb[4].mxu1  ;;  %v1030_v35 = vpop.f32.mrb[5].mxu0 }
 0x100   :  { %v1031_v36 = vadd.f32 %v1030_v35, %v1029_v32  ;;  %v1094_v37 = vpop.f32.mrb[5].mxu1  ;;  %v1032_v38 = vpop.f32.mrb[6].mxu0 }
 0x101   :  { %v1095_v39 = vadd.f32 %v1094_v37, %v1093_v34  ;;  %v1096_v40 = vpop.f32.mrb[6].mxu1  ;;  %v1033_v41 = vpop.f32.mrb[7].mxu0 }
 0x102   :  { %v641_v42 = vadd.f32 %v1031_v36, %v1558_v18  ;;  %v1034_v43 = vadd.f32 %v1033_v41, %v1032_v38  ;;  %v1097_v44 = vpop.f32.mrb[7].mxu1 }
 0x103   :  { %v1098_v45 = vadd.f32 %v1097_v44, %v1096_v40 }
 0x104   :  { %v644_v46 = vadd.f32 %v1034_v43, %v1558_v18  ;;  %v1568_v47 = vadd.f32 %v1095_v39, %v641_v42 }
 0x106   :  { %v1035_v48 = vpop.f32.mrb[8].mxu0  ;;  %v1570_v49 = vadd.f32 %v1098_v45, %v644_v46 }
 0x107   :  { %v1099_v50 = vpop.f32.mrb[8].mxu1  ;;  %v1036_v51 = vpop.f32.mrb[9].mxu0 }
 0x108   :  { %v1037_v52 = vadd.f32 %v1036_v51, %v1035_v48  ;;  %v1100_v53 = vpop.f32.mrb[9].mxu1  ;;  %v1038_v54 = vpop.f32.mrb[10].mxu0 }
 0x109   :  { %v1101_v55 = vadd.f32 %v1100_v53, %v1099_v50  ;;  %v1102_v56 = vpop.f32.mrb[10].mxu1  ;;  %v1039_v57 = vpop.f32.mrb[11].mxu0 }
 0x10a   :  { %v649_v58 = vadd.f32 %v1037_v52, %v1558_v18  ;;  %v1040_v59 = vadd.f32 %v1039_v57, %v1038_v54  ;;  %v1103_v60 = vpop.f32.mrb[11].mxu1 }
 0x10b   :  { %v1104_v61 = vadd.f32 %v1103_v60, %v1102_v56 }
 0x10c   :  { %v652_v62 = vadd.f32 %v1040_v59, %v1558_v18  ;;  %v1574_v63 = vadd.f32 %v1101_v55, %v649_v58 }
 0x10e   :  { %v1041_v0 = vpop.f32.mrb[12].mxu0  ;;  %v1576_v1 = vadd.f32 %v1104_v61, %v652_v62 }
 0x10f   :  { %v1105_v2 = vpop.f32.mrb[12].mxu1  ;;  %v1042_v3 = vpop.f32.mrb[13].mxu0 }
 0x110   :  { %v1043_v4 = vadd.f32 %v1042_v3, %v1041_v0  ;;  %v1106_v5 = vpop.f32.mrb[13].mxu1  ;;  %v1044_v6 = vpop.f32.mrb[14].mxu0 }
 0x111   :  { %v1107_v7 = vadd.f32 %v1106_v5, %v1105_v2  ;;  %v1108_v8 = vpop.f32.mrb[14].mxu1  ;;  %v1045_v9 = vpop.f32.mrb[15].mxu0 }
 0x112   :  { %v657_v10 = vadd.f32 %v1043_v4, %v1558_v18  ;;  %v1046_v11 = vadd.f32 %v1045_v9, %v1044_v6  ;;  %v1109_v12 = vpop.f32.mrb[15].mxu1 }
 0x113   :  { %v1110_v13 = vadd.f32 %v1109_v12, %v1108_v8 }
 0x114   :  { %v660_v14 = vadd.f32 %v1046_v11, %v1558_v18  ;;  %v1580_v15 = vadd.f32 %v1107_v7, %v657_v10 }
 0x116   :  { %v1047_v16 = vpop.f32.mrb[16].mxu0  ;;  %v1582_v17 = vadd.f32 %v1110_v13, %v660_v14 }
 0x117   :  { %v1111_v19 = vpop.f32.mrb[16].mxu1  ;;  %v1048_v20 = vpop.f32.mrb[17].mxu0 }
 0x118   :  { %v1049_v21 = vadd.f32 %v1048_v20, %v1047_v16  ;;  %v1112_v22 = vpop.f32.mrb[17].mxu1  ;;  %v1050_v23 = vpop.f32.mrb[18].mxu0 }
 0x119   :  { %v1113_v24 = vadd.f32 %v1112_v22, %v1111_v19  ;;  %v1114_v25 = vpop.f32.mrb[18].mxu1  ;;  %v1051_v26 = vpop.f32.mrb[19].mxu0 }
 0x11a   :  { %v665_v27 = vadd.f32 %v1049_v21, %v1558_v18  ;;  %v1052_v28 = vadd.f32 %v1051_v26, %v1050_v23  ;;  %v1115_v29 = vpop.f32.mrb[19].mxu1 }
 0x11b   :  { %v1116_v30 = vadd.f32 %v1115_v29, %v1114_v25 }
 0x11c   :  { %v668_v32 = vadd.f32 %v1052_v28, %v1558_v18  ;;  %v762_v34 = vadd.f32 %v1113_v24, %v665_v27 }
 0x11e   :  { %v1053_v35 = vpop.f32.mrb[20].mxu0  ;;  %v1586_v36 = vadd.f32 %v1116_v30, %v668_v32 }
 0x11f   :  { %v1117_v37 = vpop.f32.mrb[20].mxu1  ;;  %v1054_v38 = vpop.f32.mrb[21].mxu0 }
 0x120   :  { %v1055_v39 = vadd.f32 %v1054_v38, %v1053_v35  ;;  %v1118_v40 = vpop.f32.mrb[21].mxu1  ;;  %v1056_v41 = vpop.f32.mrb[22].mxu0 }
 0x121   :  { %v1119_v42 = vadd.f32 %v1118_v40, %v1117_v37  ;;  %v1120_v43 = vpop.f32.mrb[22].mxu1  ;;  %v1057_v44 = vpop.f32.mrb[23].mxu0 }
 0x122   :  { %v673_v45 = vadd.f32 %v1055_v39, %v1558_v18  ;;  %v1058_v46 = vadd.f32 %v1057_v44, %v1056_v41  ;;  %v1121_v48 = vpop.f32.mrb[23].mxu1 }
 0x123   :  { %v1122_v50 = vadd.f32 %v1121_v48, %v1120_v43 }
 0x124   :  { %v676_v51 = vadd.f32 %v1058_v46, %v1558_v18  ;;  %v770_v52 = vadd.f32 %v1119_v42, %v673_v45 }
 0x126   :  { %v1059_v53 = vpop.f32.mrb[24].mxu0  ;;  %v773_v54 = vadd.f32 %v1122_v50, %v676_v51 }
 0x127   :  { %v1123_v55 = vpop.f32.mrb[24].mxu1  ;;  %v1060_v56 = vpop.f32.mrb[25].mxu0 }
 0x128   :  { %v1061_v57 = vadd.f32 %v1060_v56, %v1059_v53  ;;  %v1124_v58 = vpop.f32.mrb[25].mxu1  ;;  %v1062_v59 = vpop.f32.mrb[26].mxu0 }
 0x129   :  { %v1125_v60 = vadd.f32 %v1124_v58, %v1123_v55  ;;  %v1126_v61 = vpop.f32.mrb[26].mxu1  ;;  %v1063_v62 = vpop.f32.mrb[27].mxu0 }
 0x12a   :  { %v681_v0 = vadd.f32 %v1061_v57, %v1558_v18  ;;  %v1064_v2 = vadd.f32 %v1063_v62, %v1062_v59  ;;  %v1127_v3 = vpop.f32.mrb[27].mxu1 }
 0x12b   :  { %v1128_v4 = vadd.f32 %v1127_v3, %v1126_v61 }
 0x12c   :  { %v684_v5 = vadd.f32 %v1064_v2, %v1558_v18  ;;  %v778_v6 = vadd.f32 %v1125_v60, %v681_v0 }
 0x12e   :  { %v1065_v7 = vpop.f32.mrb[28].mxu0  ;;  %v1592_v8 = vadd.f32 %v1128_v4, %v684_v5 }
 0x12f   :  { %v1129_v9 = vpop.f32.mrb[28].mxu1  ;;  %v1066_v10 = vpop.f32.mrb[29].mxu0 }
 0x130   :  { %v1067_v11 = vadd.f32 %v1066_v10, %v1065_v7  ;;  %v1130_v12 = vpop.f32.mrb[29].mxu1  ;;  %v1068_v13 = vpop.f32.mrb[30].mxu0 }
 0x131   :  { %v1131_v14 = vadd.f32 %v1130_v12, %v1129_v9  ;;  %v1132_v16 = vpop.f32.mrb[30].mxu1  ;;  %v1069_v19 = vpop.f32.mrb[31].mxu0 }
 0x132   :  { %v689_v20 = vadd.f32 %v1067_v11, %v1558_v18  ;;  %v1070_v21 = vadd.f32 %v1069_v19, %v1068_v13  ;;  %v1133_v22 = vpop.f32.mrb[31].mxu1 }
 0x133   :  { %v1134_v23 = vadd.f32 %v1133_v22, %v1132_v16 }
 0x134   :  { %v692_v24 = vadd.f32 %v1070_v21, %v1558_v18  ;;  %v786_v25 = vadd.f32 %v1131_v14, %v689_v20 }
 0x136   :  { %v1169_v26 = vpop.f32.mrb[32].mxu0  ;;  %v789_v27 = vadd.f32 %v1134_v23, %v692_v24 }
 0x137   :  { %v835_v28 = vadd.f32 %v1169_v26, %v1568_v47  ;;  %v1177_v29 = vpop.f32.mrb[32].mxu1  ;;  %v826_v30 = vpop.f32.mrb[33].mxu0 }
 0x138   :  { %v867_v32 = vadd.f32 %v1177_v29, %v770_v52  ;;  %v827_v35 = vadd.f32 %v826_v30, %v1562_v31  ;;  %v858_v37 = vpop.f32.mrb[33].mxu1  ;;  %v1170_v38 = vpop.f32.mrb[34].mxu0 }
 0x139   :  { %v891_v39 = vmax.f32 %v835_v28, 0.0  ;;  %v859_v40 = vadd.f32 %v858_v37, %v762_v34  ;;  %v838_v41 = vadd.f32 %v1170_v38, %v1570_v49  ;;  %v1178_v42 = vpop.f32.mrb[34].mxu1  ;;  %v829_v43 = vpop.f32.mrb[35].mxu0 }
 0x13a   :  { %v899_v18 = vmax.f32 %v867_v32, 0.0  ;;  %v889_v44 = vmax.f32 %v827_v35, 0.0  ;;  %v870_v45 = vadd.f32 %v1178_v42, %v773_v54  ;;  %v830_v46 = vadd.f32 %v829_v43, %v1564_v33  ;;  %v861_v47 = vpop.f32.mrb[35].mxu1 }
 0x13b   :  { %908 = vst.msk [vmem:[%s1673_s3 + $0x10] sm:$0xff] %vm905_vm0, %v891_v39  ;;  %v897_v31 = vmax.f32 %v859_v40, 0.0  ;;  %v892_v48 = vmax.f32 %v838_v41, 0.0  ;;  %v862_v50 = vadd.f32 %v861_v47, %v1586_v36 }
 0x13c   :  { %916 = vst.msk [vmem:[%s1673_s3 + $0x50] sm:$0xff] %vm905_vm0, %v899_v18  ;;  %906 = vst.msk [vmem:[%s1673_s3] sm:$0xff] %vm905_vm0, %v889_v44  ;;  %v900_v33 = vmax.f32 %v870_v45, 0.0  ;;  %v890_v49 = vmax.f32 %v830_v46, 0.0 }
 0x13d   :  { %914 = vst.msk [vmem:[%s1673_s3 + $0x40] sm:$0xff] %vm905_vm0, %v897_v31  ;;  %909 = vst.msk [vmem:[%s1673_s3 + $0x18] sm:$0xff] %vm905_vm0, %v892_v48  ;;  %v898_v34 = vmax.f32 %v862_v50, 0.0 }
 0x13e   :  { %917 = vst.msk [vmem:[%s1673_s3 + $0x58] sm:$0xff] %vm905_vm0, %v900_v33  ;;  %907 = vst.msk [vmem:[%s1673_s3 + $0x8] sm:$0xff] %vm905_vm0, %v890_v49  ;;  %v1173_v36 = vpop.f32.mrb[36].mxu0 }
 0x13f   :  { %915 = vst.msk [vmem:[%s1673_s3 + $0x48] sm:$0xff] %vm905_vm0, %v898_v34  ;;  %v851_v51 = vadd.f32 %v1173_v36, %v1580_v15  ;;  %v1181_v52 = vpop.f32.mrb[36].mxu1  ;;  %v842_v53 = vpop.f32.mrb[37].mxu0 }
 0x140   :  { %v883_v54 = vadd.f32 %v1181_v52, %v786_v25  ;;  %v843_v55 = vadd.f32 %v842_v53, %v1574_v63  ;;  %v874_v56 = vpop.f32.mrb[37].mxu1  ;;  %v1174_v57 = vpop.f32.mrb[38].mxu0 }
 0x141   :  { %v895_v58 = vmax.f32 %v851_v51, 0.0  ;;  %v875_v59 = vadd.f32 %v874_v56, %v778_v6  ;;  %v854_v60 = vadd.f32 %v1174_v57, %v1582_v17  ;;  %v1182_v61 = vpop.f32.mrb[38].mxu1  ;;  %v845_v62 = vpop.f32.mrb[39].mxu0 }
 0x142   :  { %v903_v0 = vmax.f32 %v883_v54, 0.0  ;;  %v893_v2 = vmax.f32 %v843_v55, 0.0  ;;  %v886_v3 = vadd.f32 %v1182_v61, %v789_v27  ;;  %v846_v4 = vadd.f32 %v845_v62, %v1576_v1  ;;  %v877_v5 = vpop.f32.mrb[39].mxu1 }
 0x143   :  { %912 = vst.msk [vmem:[%s1673_s3 + $0x30] sm:$0xff] %vm905_vm0, %v895_v58  ;;  %v901_v63 = vmax.f32 %v875_v59, 0.0  ;;  %v896_v15 = vmax.f32 %v854_v60, 0.0  ;;  %v878_v7 = vadd.f32 %v877_v5, %v1592_v8 }
 0x144   :  { %920 = vst.msk [vmem:[%s1673_s3 + $0x70] sm:$0xff] %vm905_vm0, %v903_v0  ;;  %910 = vst.msk [vmem:[%s1673_s3 + $0x20] sm:$0xff] %vm905_vm0, %v893_v2  ;;  %v904_v1 = vmax.f32 %v886_v3, 0.0  ;;  %v894_v17 = vmax.f32 %v846_v4, 0.0 }
 0x145   :  { %918 = vst.msk [vmem:[%s1673_s3 + $0x60] sm:$0xff] %vm905_vm0, %v901_v63  ;;  %913 = vst.msk [vmem:[%s1673_s3 + $0x38] sm:$0xff] %vm905_vm0, %v896_v15  ;;  %v902_v6 = vmax.f32 %v878_v7, 0.0 }
 0x146   :  { %921 = vst.msk [vmem:[%s1673_s3 + $0x78] sm:$0xff] %vm905_vm0, %v904_v1  ;;  %911 = vst.msk [vmem:[%s1673_s3 + $0x28] sm:$0xff] %vm905_vm0, %v894_v17 }
 0x147   :  { %919 = vst.msk [vmem:[%s1673_s3 + $0x68] sm:$0xff] %vm905_vm0, %v902_v6 }

// kernel: extractor_forward.14
= control target key start
LH: loop header
LB: loop body
LE: loop exit
PB: predicated region body
PF: predicated region fallthrough
CT: control target
= control target key end

     0   :  { %vm940_vm0 = vcmask 523264   ;;  %s1767_s1 = inlined_call_operand.vmem [shape: bf16[640,64], index: 1, kind: input, shape index: {}]   ;;  %s1768_s0 = inlined_call_operand.vmem [shape: bf16[128,640], index: 0, kind: input, shape index: {}]   ;;  %s1769_s2 = inlined_call_operand.vmem [shape: f32[1,64], index: 2, kind: input, shape index: {}]   ;;  %s1770_s3 = inlined_call_operand.vmem [shape: f32[128,64], index: 3, kind: input, shape index: {}]   ;;  %s1771_s4 = inlined_call_operand.vmem [shape: f32[128,64], index: 4, kind: output, shape index: {}]  }
   0x1   :  { %v1234_v0 = vld [vmem:[%s1767_s1 + $0x40] sm:$0xff]   ;;  %v1238_v4 = vld [vmem:[%s1767_s1 + $0x48] sm:$0xff]   ;;  %v1242_v8 = vld [vmem:[%s1767_s1 + $0x50] sm:$0xff]  }
   0x2   :  { %v1235_v1 = vld [vmem:[%s1767_s1 + $0xc0] sm:$0xff]   ;;  %1042 = vmatprep.subr.bf16.mxu0 %v1234_v0  ;;  %v1239_v5 = vld [vmem:[%s1767_s1 + $0xc8] sm:$0xff]   ;;  %v1243_v9 = vld [vmem:[%s1767_s1 + $0xd0] sm:$0xff]  }
   0x3   :  { %v1236_v2 = vld [vmem:[%s1767_s1] sm:$0xff]   ;;  %1106 = vmatprep.subr.bf16.mxu1 %v1235_v1  ;;  %v1240_v6 = vld [vmem:[%s1767_s1 + $0x8] sm:$0xff]   ;;  %v1244_v10 = vld [vmem:[%s1767_s1 + $0x10] sm:$0xff]  }
   0x4   :  { %v1237_v3 = vld [vmem:[%s1767_s1 + $0x80] sm:$0xff]   ;;  %1043 = vmatpush3.bf16.msra.mxu0 %v1236_v2  ;;  %v1241_v7 = vld [vmem:[%s1767_s1 + $0x88] sm:$0xff]   ;;  %v1245_v11 = vld [vmem:[%s1767_s1 + $0x90] sm:$0xff]  }
   0x5   :  { %1107 = vmatpush3.bf16.msra.mxu1 %v1237_v3  ;;  %1044 = vmatprep.subr.bf16.mxu0 %v1238_v4  ;;  %v1246_v12 = vld [vmem:[%s1767_s1 + $0x58] sm:$0xff]   ;;  %v1250_v16 = vld [vmem:[%s1767_s1 + $0x60] sm:$0xff]   ;;  %v1254_v20 = vld [vmem:[%s1767_s1 + $0x68] sm:$0xff]  }
   0x6   :  { %1108 = vmatprep.subr.bf16.mxu1 %v1239_v5  ;;  %v1247_v13 = vld [vmem:[%s1767_s1 + $0xd8] sm:$0xff]   ;;  %v1251_v17 = vld [vmem:[%s1767_s1 + $0xe0] sm:$0xff]   ;;  %v1255_v21 = vld [vmem:[%s1767_s1 + $0xe8] sm:$0xff]  }
   0x7   :  { %v1248_v14 = vld [vmem:[%s1767_s1 + $0x18] sm:$0xff]   ;;  %v1252_v18 = vld [vmem:[%s1767_s1 + $0x20] sm:$0xff]   ;;  %v1256_v22 = vld [vmem:[%s1767_s1 + $0x28] sm:$0xff]  }
   0x8   :  { %1045 = vmatpush3.bf16.msra.mxu0 %v1240_v6  ;;  %v1249_v15 = vld [vmem:[%s1767_s1 + $0x98] sm:$0xff]   ;;  %v1253_v19 = vld [vmem:[%s1767_s1 + $0xa0] sm:$0xff]   ;;  %v1257_v23 = vld [vmem:[%s1767_s1 + $0xa8] sm:$0xff]  }
   0x9   :  { %1109 = vmatpush3.bf16.msra.mxu1 %v1241_v7  ;;  %1046 = vmatprep.subr.bf16.mxu0 %v1242_v8  ;;  %v1258_v24 = vld [vmem:[%s1767_s1 + $0x70] sm:$0xff]   ;;  %v1262_v28 = vld [vmem:[%s1767_s1 + $0x78] sm:$0xff]   ;;  %v1271_v35 = vld [vmem:[%s1768_s0 + $0xc] ss:$20 sps:$4 sm:$0xff]  }
   0xa   :  { %1110 = vmatprep.subr.bf16.mxu1 %v1243_v9  ;;  %v1259_v25 = vld [vmem:[%s1767_s1 + $0xf0] sm:$0xff]   ;;  %v1263_v29 = vld [vmem:[%s1767_s1 + $0xf8] sm:$0xff]   ;;  %v1272_v36 = vld [vmem:[%s1767_s1 + $0x100] sm:$0xff]   ;;  %730 = vmatprep.mubr.bf16.mxu1 %v1271_v35 }
   0xb   :  { %v1260_v26 = vld [vmem:[%s1767_s1 + $0x30] sm:$0xff]   ;;  %v1264_v30 = vld [vmem:[%s1767_s1 + $0x38] sm:$0xff]   ;;  %v1273_v37 = vld [vmem:[%s1768_s0 + $0x2c] ss:$20 sps:$4 sm:$0xff]  }
   0xc   :  { %1047 = vmatpush3.bf16.msra.mxu0 %v1244_v10  ;;  %v1261_v27 = vld [vmem:[%s1767_s1 + $0xb0] sm:$0xff]   ;;  %v1265_v31 = vld [vmem:[%s1767_s1 + $0xb8] sm:$0xff]   ;;  %v1279_v39 = vld [vmem:[%s1767_s1 + $0x108] sm:$0xff]  }
   0xd   :  { %1111 = vmatpush3.bf16.msra.mxu1 %v1245_v11  ;;  %1048 = vmatprep.subr.bf16.mxu0 %v1246_v12  ;;  %v1266_v32 = vld [vmem:[%s1768_s0] ss:$20 sps:$4 sm:$0xff]   ;;  %v1268_v33 = vld [vmem:[%s1768_s0 + $0x4] ss:$20 sps:$4 sm:$0xff]   ;;  %v1269_v34 = vld [vmem:[%s1768_s0 + $0x8] ss:$20 sps:$4 sm:$0xff]  }
   0xe   :  { %1112 = vmatprep.subr.bf16.mxu1 %v1247_v13  ;;  %633 = vmatprep.mubr.bf16.mxu0 %v1268_v33  ;;  %v1275_v38 = vld [vmem:[%s1768_s0 + $0x34] ss:$20 sps:$4 sm:$0xff]   ;;  %v1278_v41 = vld [vmem:[%s1768_s0 + $0x30] ss:$20 sps:$4 sm:$0xff]   ;;  %v1293_v45 = vld [vmem:[%s1767_s1 + $0x118] sm:$0xff]  }
   0xf   :  { %v1277_v40 = vld [vmem:[%s1768_s0 + $0x28] ss:$20 sps:$4 sm:$0xff]   ;;  %v1286_v44 = vld [vmem:[%s1767_s1 + $0x110] sm:$0xff]   ;;  %v1285_v47 = vld [vmem:[%s1768_s0 + $0x58] ss:$20 sps:$4 sm:$0xff]  }
  0x10   :  { %1049 = vmatpush3.bf16.msra.mxu0 %v1248_v14  ;;  %v1280_v42 = vld [vmem:[%s1768_s0 + $0x54] ss:$20 sps:$4 sm:$0xff]   ;;  %v1282_v43 = vld [vmem:[%s1768_s0 + $0x5c] ss:$20 sps:$4 sm:$0xff]   ;;  %v1289_v49 = vld [vmem:[%s1768_s0 + $0x84] ss:$20 sps:$4 sm:$0xff]  }
  0x11   :  { %1113 = vmatpush3.bf16.msra.mxu1 %v1249_v15  ;;  %1050 = vmatprep.subr.bf16.mxu0 %v1250_v16  ;;  %v1284_v46 = vld [vmem:[%s1768_s0 + $0x50] ss:$20 sps:$4 sm:$0xff]   ;;  %v1307_v51 = vld [vmem:[%s1767_s1 + $0x128] sm:$0xff]   ;;  %v1292_v53 = vld [vmem:[%s1768_s0 + $0x80] ss:$20 sps:$4 sm:$0xff]  }
  0x12   :  { %1114 = vmatprep.subr.bf16.mxu1 %v1251_v17  ;;  %v1287_v48 = vld [vmem:[%s1768_s0 + $0x7c] ss:$20 sps:$4 sm:$0xff]   ;;  %v1300_v50 = vld [vmem:[%s1767_s1 + $0x120] sm:$0xff]   ;;  %v1291_v52 = vld [vmem:[%s1768_s0 + $0x78] ss:$20 sps:$4 sm:$0xff]  }
  0x13   :  { %v1294_v54 = vld [vmem:[%s1768_s0 + $0xa4] ss:$20 sps:$4 sm:$0xff]   ;;  %v1314_v55 = vld [vmem:[%s1767_s1 + $0x130] sm:$0xff]   ;;  %v1296_v56 = vld [vmem:[%s1768_s0 + $0xac] ss:$20 sps:$4 sm:$0xff]  }
  0x14   :  { %1051 = vmatpush3.bf16.msra.mxu0 %v1252_v18  ;;  %v1321_v57 = vld [vmem:[%s1767_s1 + $0x138] sm:$0xff]   ;;  %v1298_v58 = vld [vmem:[%s1768_s0 + $0xa0] ss:$20 sps:$4 sm:$0xff]   ;;  %v1306_v63 = vld [vmem:[%s1768_s0 + $0xd0] ss:$20 sps:$4 sm:$0xff]  }
  0x15   :  { %1115 = vmatpush3.bf16.msra.mxu1 %v1253_v19  ;;  %1052 = vmatprep.subr.bf16.mxu0 %v1254_v20  ;;  %v1299_v59 = vld [vmem:[%s1768_s0 + $0xa8] ss:$20 sps:$4 sm:$0xff]   ;;  %v1301_v60 = vld [vmem:[%s1768_s0 + $0xcc] ss:$20 sps:$4 sm:$0xff]   ;;  %v1312_v2 = vld [vmem:[%s1768_s0 + $0xf0] ss:$20 sps:$4 sm:$0xff]  }
  0x16   :  { %1116 = vmatprep.subr.bf16.mxu1 %v1255_v21  ;;  %v1303_v61 = vld [vmem:[%s1768_s0 + $0xd4] ss:$20 sps:$4 sm:$0xff]   ;;  %v1310_v1 = vld [vmem:[%s1768_s0 + $0xfc] ss:$20 sps:$4 sm:$0xff]   ;;  %v1313_v3 = vld [vmem:[%s1768_s0 + $0xf8] ss:$20 sps:$4 sm:$0xff]  }
  0x17   :  { %v1305_v62 = vld [vmem:[%s1768_s0 + $0xc8] ss:$20 sps:$4 sm:$0xff]   ;;  %v1317_v5 = vld [vmem:[%s1768_s0 + $0x124] ss:$20 sps:$4 sm:$0xff]   ;;  %v1320_v7 = vld [vmem:[%s1768_s0 + $0x120] ss:$20 sps:$4 sm:$0xff]  }
  0x18   :  { %1053 = vmatpush3.bf16.msra.mxu0 %v1256_v22  ;;  %v1308_v0 = vld [vmem:[%s1768_s0 + $0xf4] ss:$20 sps:$4 sm:$0xff]   ;;  %v1315_v4 = vld [vmem:[%s1768_s0 + $0x11c] ss:$20 sps:$4 sm:$0xff]   ;;  %v1319_v6 = vld [vmem:[%s1768_s0 + $0x118] ss:$20 sps:$4 sm:$0xff]  }
  0x19   :  { %1117 = vmatpush3.bf16.msra.mxu1 %v1257_v23  ;;  %1054 = vmatprep.subr.bf16.mxu0 %v1258_v24  ;;  %v1322_v8 = vld [vmem:[%s1768_s0 + $0x10] ss:$20 sps:$4 sm:$0xff]   ;;  %v1324_v10 = vld [vmem:[%s1768_s0 + $0x38] ss:$20 sps:$4 sm:$0xff]   ;;  %v1326_v12 = vld [vmem:[%s1768_s0 + $0x60] ss:$20 sps:$4 sm:$0xff]  }
  0x1a   :  { %1118 = vmatprep.subr.bf16.mxu1 %v1259_v25  ;;  %v1323_v9 = vld [vmem:[%s1768_s0 + $0xb0] ss:$20 sps:$4 sm:$0xff]   ;;  %v1325_v11 = vld [vmem:[%s1768_s0 + $0xd8] ss:$20 sps:$4 sm:$0xff]   ;;  %v1327_v13 = vld [vmem:[%s1768_s0 + $0x100] ss:$20 sps:$4 sm:$0xff]  }
  0x1b   :  { %v1328_v14 = vld [vmem:[%s1768_s0 + $0x88] ss:$20 sps:$4 sm:$0xff]   ;;  %v1598_v18 = vld [vmem:[%s1769_s2] ss:$0 sm:$0xff] }
  0x1c   :  { %1055 = vmatpush3.bf16.msra.mxu0 %v1260_v26  ;;  %v1329_v15 = vld [vmem:[%s1768_s0 + $0x128] ss:$20 sps:$4 sm:$0xff]  }
  0x1d   :  { %1119 = vmatpush3.bf16.msra.mxu1 %v1261_v27  ;;  %1056 = vmatprep.subr.bf16.mxu0 %v1262_v28 }
  0x1e   :  { %1120 = vmatprep.subr.bf16.mxu1 %v1263_v29 }
  0x20   :  { %1057 = vmatpush3.bf16.msra.mxu0 %v1264_v30 }
  0x21   :  { %1121 = vmatpush3.bf16.msra.mxu1 %v1265_v31  ;;  %1186 = vmatprep.subr.bf16.mxu0 %v1272_v36 }
  0x22   :  { %1218 = vmatprep.subr.bf16.mxu1 %v1272_v36 }
  0x23   :  { %634 = vmatmul.mubr.bf16.vlgmr.msra.gmra.mrb[0].mxu0 %v1266_v32 }
  0x24   :  { %731 = vmatmul.mubr.bf16.vlgmr.msra.gmra.mrb[0].mxu1 %v1269_v34  ;;  %1187 = vmatpush3.bf16.msra.mxu0 %v1272_v36 }
  0x25   :  { %1226 = vmatpush3.bf16.msra.mxu1 %v1272_v36  ;;  %641 = vmatprep.mubr.bf16.mxu0 %v1273_v37 }
  0x26   :  { %738 = vmatprep.mubr.bf16.mxu1 %v1275_v38  ;;  %1188 = vmatprep.subr.bf16.mxu0 %v1279_v39 }
  0x27   :  { %1219 = vmatprep.subr.bf16.mxu1 %v1279_v39 }
  0x28   :  { %1189 = vmatpush3.bf16.msra.mxu0 %v1279_v39 }
  0x29   :  { %1227 = vmatpush3.bf16.msra.mxu1 %v1279_v39  ;;  %1190 = vmatprep.subr.bf16.mxu0 %v1286_v44 }
  0x2a   :  { %1220 = vmatprep.subr.bf16.mxu1 %v1286_v44 }
  0x2b   :  { %642 = vmatmul.mubr.bf16.gmra.mrb[4].mxu0 %v1277_v40 }
  0x2c   :  { %739 = vmatmul.mubr.bf16.gmra.mrb[4].mxu1 %v1278_v41  ;;  %649 = vmatprep.mubr.bf16.mxu0 %v1280_v42 }
  0x2d   :  { %746 = vmatprep.mubr.bf16.mxu1 %v1282_v43  ;;  %1191 = vmatpush3.bf16.msra.mxu0 %v1286_v44 }
  0x2e   :  { %1228 = vmatpush3.bf16.msra.mxu1 %v1286_v44  ;;  %1192 = vmatprep.subr.bf16.mxu0 %v1293_v45 }
  0x2f   :  { %1221 = vmatprep.subr.bf16.mxu1 %v1293_v45 }
  0x31   :  { %1193 = vmatpush3.bf16.msra.mxu0 %v1293_v45 }
  0x32   :  { %1229 = vmatpush3.bf16.msra.mxu1 %v1293_v45  ;;  %1194 = vmatprep.subr.bf16.mxu0 %v1300_v50 }
  0x33   :  { %650 = vmatmul.mubr.bf16.gmra.mrb[8].mxu0 %v1284_v46  ;;  %1222 = vmatprep.subr.bf16.mxu1 %v1300_v50 }
  0x34   :  { %747 = vmatmul.mubr.bf16.gmra.mrb[8].mxu1 %v1285_v47  ;;  %657 = vmatprep.mubr.bf16.mxu0 %v1287_v48 }
  0x35   :  { %754 = vmatprep.mubr.bf16.mxu1 %v1289_v49  ;;  %1195 = vmatpush3.bf16.msra.mxu0 %v1300_v50 }
  0x36   :  { %1230 = vmatpush3.bf16.msra.mxu1 %v1300_v50  ;;  %1196 = vmatprep.subr.bf16.mxu0 %v1307_v51 }
  0x37   :  { %1223 = vmatprep.subr.bf16.mxu1 %v1307_v51 }
  0x39   :  { %1197 = vmatpush3.bf16.msra.mxu0 %v1307_v51 }
  0x3a   :  { %1231 = vmatpush3.bf16.msra.mxu1 %v1307_v51  ;;  %1198 = vmatprep.subr.bf16.mxu0 %v1314_v55 }
  0x3b   :  { %658 = vmatmul.mubr.bf16.gmra.mrb[12].mxu0 %v1291_v52  ;;  %1224 = vmatprep.subr.bf16.mxu1 %v1314_v55 }
  0x3c   :  { %755 = vmatmul.mubr.bf16.gmra.mrb[12].mxu1 %v1292_v53  ;;  %665 = vmatprep.mubr.bf16.mxu0 %v1294_v54 }
  0x3d   :  { %762 = vmatprep.mubr.bf16.mxu1 %v1296_v56  ;;  %1199 = vmatpush3.bf16.msra.mxu0 %v1314_v55 }
  0x3e   :  { %1232 = vmatpush3.bf16.msra.mxu1 %v1314_v55  ;;  %1200 = vmatprep.subr.bf16.mxu0 %v1321_v57 }
  0x3f   :  { %1225 = vmatprep.subr.bf16.mxu1 %v1321_v57 }
  0x41   :  { %1201 = vmatpush3.bf16.msra.mxu0 %v1321_v57 }
  0x42   :  { %1233 = vmatpush3.bf16.msra.mxu1 %v1321_v57 }
  0x43   :  { %666 = vmatmul.mubr.bf16.gmra.mrb[16].mxu0 %v1298_v58 }
  0x44   :  { %763 = vmatmul.mubr.bf16.gmra.mrb[16].mxu1 %v1299_v59  ;;  %673 = vmatprep.mubr.bf16.mxu0 %v1301_v60 }
  0x45   :  { %770 = vmatprep.mubr.bf16.mxu1 %v1303_v61 }
  0x4b   :  { %674 = vmatmul.mubr.bf16.gmra.mrb[20].mxu0 %v1305_v62 }
  0x4c   :  { %771 = vmatmul.mubr.bf16.gmra.mrb[20].mxu1 %v1306_v63  ;;  %681 = vmatprep.mubr.bf16.mxu0 %v1308_v0 }
  0x4d   :  { %778 = vmatprep.mubr.bf16.mxu1 %v1310_v1 }
  0x53   :  { %682 = vmatmul.mubr.bf16.gmra.mrb[24].mxu0 %v1312_v2 }
  0x54   :  { %779 = vmatmul.mubr.bf16.gmra.mrb[24].mxu1 %v1313_v3  ;;  %689 = vmatprep.mubr.bf16.mxu0 %v1315_v4 }
  0x55   :  { %786 = vmatprep.mubr.bf16.mxu1 %v1317_v5 }
  0x5b   :  { %690 = vmatmul.mubr.bf16.gmra.mrb[28].mxu0 %v1319_v6 }
  0x5c   :  { %787 = vmatmul.mubr.bf16.gmra.mrb[28].mxu1 %v1320_v7  ;;  %1202 = vmatprep.mubr.bf16.mxu0 %v1322_v8 }
  0x5d   :  { %1210 = vmatprep.mubr.bf16.mxu1 %v1323_v9 }
  0x63   :  { %1203 = vmatmul.mubr.bf16.vlgmr.msra.gmra.mrb[32].mxu0 %v1324_v10 }
  0x64   :  { %1211 = vmatmul.mubr.bf16.vlgmr.msra.gmra.mrb[32].mxu1 %v1325_v11  ;;  %1206 = vmatprep.mubr.bf16.mxu0 %v1326_v12 }
  0x65   :  { %1214 = vmatprep.mubr.bf16.mxu1 %v1327_v13 }
  0x6b   :  { %1207 = vmatmul.mubr.bf16.gmra.mrb[36].mxu0 %v1328_v14 }
  0x6c   :  { %1215 = vmatmul.mubr.bf16.gmra.mrb[36].mxu1 %v1329_v15 }
  0xf6   :  { %v1058_v16 = vpop.f32.mrb[0].mxu0 }
  0xf7   :  { %v1122_v17 = vpop.f32.mrb[0].mxu1  ;;  %v1059_v19 = vpop.f32.mrb[1].mxu0 }
  0xf8   :  { %v1060_v20 = vadd.f32 %v1059_v19, %v1058_v16  ;;  %v1123_v21 = vpop.f32.mrb[1].mxu1  ;;  %v1061_v22 = vpop.f32.mrb[2].mxu0 }
  0xf9   :  { %v1124_v23 = vadd.f32 %v1123_v21, %v1122_v17  ;;  %v1125_v24 = vpop.f32.mrb[2].mxu1  ;;  %v1062_v25 = vpop.f32.mrb[3].mxu0 }
  0xfa   :  { %v636_v26 = vadd.f32 %v1060_v20, %v1598_v18  ;;  %v1063_v27 = vadd.f32 %v1062_v25, %v1061_v22  ;;  %v1126_v28 = vpop.f32.mrb[3].mxu1 }
  0xfb   :  { %v1127_v29 = vadd.f32 %v1126_v28, %v1125_v24 }
  0xfc   :  { %v639_v30 = vadd.f32 %v1063_v27, %v1598_v18  ;;  %v1602_v31 = vadd.f32 %v1124_v23, %v636_v26 }
  0xfe   :  { %v1064_v32 = vpop.f32.mrb[4].mxu0  ;;  %v1604_v33 = vadd.f32 %v1127_v29, %v639_v30 }
  0xff   :  { %v1128_v34 = vpop.f32.mrb[4].mxu1  ;;  %v1065_v35 = vpop.f32.mrb[5].mxu0 }
 0x100   :  { %v1066_v36 = vadd.f32 %v1065_v35, %v1064_v32  ;;  %v1129_v37 = vpop.f32.mrb[5].mxu1  ;;  %v1067_v38 = vpop.f32.mrb[6].mxu0 }
 0x101   :  { %v1130_v39 = vadd.f32 %v1129_v37, %v1128_v34  ;;  %v1131_v40 = vpop.f32.mrb[6].mxu1  ;;  %v1068_v41 = vpop.f32.mrb[7].mxu0 }
 0x102   :  { %v644_v42 = vadd.f32 %v1066_v36, %v1598_v18  ;;  %v1069_v43 = vadd.f32 %v1068_v41, %v1067_v38  ;;  %v1132_v44 = vpop.f32.mrb[7].mxu1 }
 0x103   :  { %v1133_v45 = vadd.f32 %v1132_v44, %v1131_v40 }
 0x104   :  { %v647_v46 = vadd.f32 %v1069_v43, %v1598_v18  ;;  %v1608_v47 = vadd.f32 %v1130_v39, %v644_v42 }
 0x106   :  { %v1070_v48 = vpop.f32.mrb[8].mxu0  ;;  %v1610_v49 = vadd.f32 %v1133_v45, %v647_v46 }
 0x107   :  { %v1134_v50 = vpop.f32.mrb[8].mxu1  ;;  %v1071_v51 = vpop.f32.mrb[9].mxu0 }
 0x108   :  { %v1072_v52 = vadd.f32 %v1071_v51, %v1070_v48  ;;  %v1135_v53 = vpop.f32.mrb[9].mxu1  ;;  %v1073_v54 = vpop.f32.mrb[10].mxu0 }
 0x109   :  { %v1136_v55 = vadd.f32 %v1135_v53, %v1134_v50  ;;  %v1137_v56 = vpop.f32.mrb[10].mxu1  ;;  %v1074_v57 = vpop.f32.mrb[11].mxu0 }
 0x10a   :  { %v652_v58 = vadd.f32 %v1072_v52, %v1598_v18  ;;  %v1075_v59 = vadd.f32 %v1074_v57, %v1073_v54  ;;  %v1138_v60 = vpop.f32.mrb[11].mxu1 }
 0x10b   :  { %v1139_v61 = vadd.f32 %v1138_v60, %v1137_v56 }
 0x10c   :  { %v655_v62 = vadd.f32 %v1075_v59, %v1598_v18  ;;  %v1614_v63 = vadd.f32 %v1136_v55, %v652_v58 }
 0x10e   :  { %v1076_v0 = vpop.f32.mrb[12].mxu0  ;;  %v1616_v1 = vadd.f32 %v1139_v61, %v655_v62 }
 0x10f   :  { %v1140_v2 = vpop.f32.mrb[12].mxu1  ;;  %v1077_v3 = vpop.f32.mrb[13].mxu0 }
 0x110   :  { %v1078_v4 = vadd.f32 %v1077_v3, %v1076_v0  ;;  %v1141_v5 = vpop.f32.mrb[13].mxu1  ;;  %v1079_v6 = vpop.f32.mrb[14].mxu0 }
 0x111   :  { %v1142_v7 = vadd.f32 %v1141_v5, %v1140_v2  ;;  %v1143_v8 = vpop.f32.mrb[14].mxu1  ;;  %v1080_v9 = vpop.f32.mrb[15].mxu0 }
 0x112   :  { %v660_v10 = vadd.f32 %v1078_v4, %v1598_v18  ;;  %v1081_v11 = vadd.f32 %v1080_v9, %v1079_v6  ;;  %v1144_v12 = vpop.f32.mrb[15].mxu1 }
 0x113   :  { %v1145_v13 = vadd.f32 %v1144_v12, %v1143_v8 }
 0x114   :  { %v663_v14 = vadd.f32 %v1081_v11, %v1598_v18  ;;  %v1620_v15 = vadd.f32 %v1142_v7, %v660_v10 }
 0x116   :  { %v1082_v16 = vpop.f32.mrb[16].mxu0  ;;  %v1622_v17 = vadd.f32 %v1145_v13, %v663_v14 }
 0x117   :  { %v1146_v19 = vpop.f32.mrb[16].mxu1  ;;  %v1083_v20 = vpop.f32.mrb[17].mxu0 }
 0x118   :  { %v1084_v21 = vadd.f32 %v1083_v20, %v1082_v16  ;;  %v1147_v22 = vpop.f32.mrb[17].mxu1  ;;  %v1085_v23 = vpop.f32.mrb[18].mxu0 }
 0x119   :  { %v1148_v24 = vadd.f32 %v1147_v22, %v1146_v19  ;;  %v1149_v25 = vpop.f32.mrb[18].mxu1  ;;  %v1086_v26 = vpop.f32.mrb[19].mxu0 }
 0x11a   :  { %v668_v27 = vadd.f32 %v1084_v21, %v1598_v18  ;;  %v1087_v28 = vadd.f32 %v1086_v26, %v1085_v23  ;;  %v1150_v29 = vpop.f32.mrb[19].mxu1 }
 0x11b   :  { %v1151_v30 = vadd.f32 %v1150_v29, %v1149_v25 }
 0x11c   :  { %v671_v32 = vadd.f32 %v1087_v28, %v1598_v18  ;;  %v1626_v34 = vadd.f32 %v1148_v24, %v668_v27  ;;  %v894_v27 = vld [vmem:[%s1770_s3 + $0x10] sm:$0xff] }
 0x11e   :  { %v1088_v35 = vpop.f32.mrb[20].mxu0  ;;  %v1628_v36 = vadd.f32 %v1151_v30, %v671_v32  ;;  %v902_v32 = vld [vmem:[%s1770_s3 + $0x50] sm:$0xff] }
 0x11f   :  { %v1152_v37 = vpop.f32.mrb[20].mxu1  ;;  %v1089_v38 = vpop.f32.mrb[21].mxu0 }
 0x120   :  { %v1090_v39 = vadd.f32 %v1089_v38, %v1088_v35  ;;  %v1153_v40 = vpop.f32.mrb[21].mxu1  ;;  %v1091_v41 = vpop.f32.mrb[22].mxu0 }
 0x121   :  { %v1154_v42 = vadd.f32 %v1153_v40, %v1152_v37  ;;  %v1155_v43 = vpop.f32.mrb[22].mxu1  ;;  %v1092_v44 = vpop.f32.mrb[23].mxu0  ;;  %v900_v40 = vld [vmem:[%s1770_s3 + $0x40] sm:$0xff] }
 0x122   :  { %v676_v45 = vadd.f32 %v1090_v39, %v1598_v18  ;;  %v1093_v46 = vadd.f32 %v1092_v44, %v1091_v41  ;;  %v1156_v48 = vpop.f32.mrb[23].mxu1 }
 0x123   :  { %v1157_v50 = vadd.f32 %v1156_v48, %v1155_v43  ;;  %v893_v48 = vld [vmem:[%s1770_s3 + $0x8] sm:$0xff] }
 0x124   :  { %v679_v51 = vadd.f32 %v1093_v46, %v1598_v18  ;;  %v773_v52 = vadd.f32 %v1154_v42, %v676_v45 }
 0x126   :  { %v1094_v53 = vpop.f32.mrb[24].mxu0  ;;  %v776_v54 = vadd.f32 %v1157_v50, %v679_v51 }
 0x127   :  { %v1158_v55 = vpop.f32.mrb[24].mxu1  ;;  %v1095_v56 = vpop.f32.mrb[25].mxu0 }
 0x128   :  { %v1096_v57 = vadd.f32 %v1095_v56, %v1094_v53  ;;  %v1159_v58 = vpop.f32.mrb[25].mxu1  ;;  %v1097_v59 = vpop.f32.mrb[26].mxu0 }
 0x129   :  { %v1160_v60 = vadd.f32 %v1159_v58, %v1158_v55  ;;  %v1161_v61 = vpop.f32.mrb[26].mxu1  ;;  %v1098_v62 = vpop.f32.mrb[27].mxu0 }
 0x12a   :  { %v684_v0 = vadd.f32 %v1096_v57, %v1598_v18  ;;  %v1099_v2 = vadd.f32 %v1098_v62, %v1097_v59  ;;  %v1162_v3 = vpop.f32.mrb[27].mxu1 }
 0x12b   :  { %v1163_v4 = vadd.f32 %v1162_v3, %v1161_v61 }
 0x12c   :  { %v687_v5 = vadd.f32 %v1099_v2, %v1598_v18  ;;  %v1634_v6 = vadd.f32 %v1160_v60, %v684_v0 }
 0x12e   :  { %v1100_v7 = vpop.f32.mrb[28].mxu0  ;;  %v1636_v8 = vadd.f32 %v1163_v4, %v687_v5  ;;  %v898_v4 = vld [vmem:[%s1770_s3 + $0x30] sm:$0xff] }
 0x12f   :  { %v1164_v9 = vpop.f32.mrb[28].mxu1  ;;  %v1101_v10 = vpop.f32.mrb[29].mxu0 }
 0x130   :  { %v1102_v11 = vadd.f32 %v1101_v10, %v1100_v7  ;;  %v1165_v12 = vpop.f32.mrb[29].mxu1  ;;  %v1103_v13 = vpop.f32.mrb[30].mxu0  ;;  %v906_v10 = vld [vmem:[%s1770_s3 + $0x70] sm:$0xff] }
 0x131   :  { %v1166_v14 = vadd.f32 %v1165_v12, %v1164_v9  ;;  %v1167_v16 = vpop.f32.mrb[30].mxu1  ;;  %v1104_v19 = vpop.f32.mrb[31].mxu0  ;;  %v896_v12 = vld [vmem:[%s1770_s3 + $0x20] sm:$0xff] }
 0x132   :  { %v692_v20 = vadd.f32 %v1102_v11, %v1598_v18  ;;  %v1105_v21 = vadd.f32 %v1104_v19, %v1103_v13  ;;  %v1168_v22 = vpop.f32.mrb[31].mxu1 }
 0x133   :  { %v1169_v23 = vadd.f32 %v1168_v22, %v1167_v16  ;;  %v904_v16 = vld [vmem:[%s1770_s3 + $0x60] sm:$0xff] }
 0x134   :  { %v695_v24 = vadd.f32 %v1105_v21, %v1598_v18  ;;  %v789_v25 = vadd.f32 %v1166_v14, %v692_v20  ;;  %v892_v18 = vld [vmem:[%s1770_s3] sm:$0xff]  ;;  %v899_v20 = vld [vmem:[%s1770_s3 + $0x38] sm:$0xff] }
 0x136   :  { %v1204_v26 = vpop.f32.mrb[32].mxu0  ;;  %v1643_v28 = vadd.f32 %v1169_v23, %v695_v24  ;;  %v907_v24 = vld [vmem:[%s1770_s3 + $0x78] sm:$0xff] }
 0x137   :  { %v838_v29 = vadd.f32 %v1204_v26, %v1608_v47  ;;  %v1212_v30 = vpop.f32.mrb[32].mxu1  ;;  %v829_v35 = vpop.f32.mrb[33].mxu0  ;;  %v895_v47 = vld [vmem:[%s1770_s3 + $0x18] sm:$0xff]  ;;  %v897_v26 = vld [vmem:[%s1770_s3 + $0x28] sm:$0xff] }
 0x138   :  { %v870_v37 = vadd.f32 %v1212_v30, %v773_v52  ;;  %v830_v38 = vadd.f32 %v829_v35, %v1602_v31  ;;  %v861_v39 = vpop.f32.mrb[33].mxu1  ;;  %v1205_v41 = vpop.f32.mrb[34].mxu0  ;;  %v903_v31 = vld [vmem:[%s1770_s3 + $0x58] sm:$0xff] }
 0x139   :  { %v910_v42 = vadd.f32 %v894_v27, %v838_v29  ;;  %v862_v43 = vadd.f32 %v861_v39, %v1626_v34  ;;  %v841_v44 = vadd.f32 %v1205_v41, %v1610_v49  ;;  %v1213_v45 = vpop.f32.mrb[34].mxu1  ;;  %v832_v46 = vpop.f32.mrb[35].mxu0  ;;  %v901_v49 = vld [vmem:[%s1770_s3 + $0x48] sm:$0xff] }
 0x13a   :  { %v918_v50 = vadd.f32 %v902_v32, %v870_v37  ;;  %v908_v51 = vadd.f32 %v892_v18, %v830_v38  ;;  %v873_v52 = vadd.f32 %v1213_v45, %v776_v54  ;;  %v833_v53 = vadd.f32 %v832_v46, %v1604_v33  ;;  %v864_v55 = vpop.f32.mrb[35].mxu1 }
 0x13b   :  { %v926_v34 = vmax.f32 %v910_v42, 0.0  ;;  %v916_v56 = vadd.f32 %v900_v40, %v862_v43  ;;  %v911_v57 = vadd.f32 %v895_v47, %v841_v44  ;;  %v865_v58 = vadd.f32 %v864_v55, %v1628_v36 }
 0x13c   :  { %v934_v59 = vmax.f32 %v918_v50, 0.0  ;;  %v924_v60 = vmax.f32 %v908_v51, 0.0  ;;  %v919_v61 = vadd.f32 %v903_v31, %v873_v52  ;;  %v909_v62 = vadd.f32 %v893_v48, %v833_v53 }
 0x13d   :  { %943 = vst.msk [vmem:[%s1771_s4 + $0x10] sm:$0xff] %vm940_vm0, %v926_v34  ;;  %v932_v33 = vmax.f32 %v916_v56, 0.0  ;;  %v927_v54 = vmax.f32 %v911_v57, 0.0  ;;  %v917_v0 = vadd.f32 %v901_v49, %v865_v58 }
 0x13e   :  { %951 = vst.msk [vmem:[%s1771_s4 + $0x50] sm:$0xff] %vm940_vm0, %v934_v59  ;;  %941 = vst.msk [vmem:[%s1771_s4] sm:$0xff] %vm940_vm0, %v924_v60  ;;  %v935_v36 = vmax.f32 %v919_v61, 0.0  ;;  %v925_v2 = vmax.f32 %v909_v62, 0.0  ;;  %v1208_v3 = vpop.f32.mrb[36].mxu0 }
 0x13f   :  { %949 = vst.msk [vmem:[%s1771_s4 + $0x40] sm:$0xff] %vm940_vm0, %v932_v33  ;;  %944 = vst.msk [vmem:[%s1771_s4 + $0x18] sm:$0xff] %vm940_vm0, %v927_v54  ;;  %v933_v5 = vmax.f32 %v917_v0, 0.0  ;;  %v854_v7 = vadd.f32 %v1208_v3, %v1620_v15  ;;  %v1216_v9 = vpop.f32.mrb[36].mxu1  ;;  %v845_v11 = vpop.f32.mrb[37].mxu0 }
 0x140   :  { %952 = vst.msk [vmem:[%s1771_s4 + $0x58] sm:$0xff] %vm940_vm0, %v935_v36  ;;  %942 = vst.msk [vmem:[%s1771_s4 + $0x8] sm:$0xff] %vm940_vm0, %v925_v2  ;;  %v886_v15 = vadd.f32 %v1216_v9, %v789_v25  ;;  %v846_v13 = vadd.f32 %v845_v11, %v1614_v63  ;;  %v877_v14 = vpop.f32.mrb[37].mxu1  ;;  %v1209_v19 = vpop.f32.mrb[38].mxu0 }
 0x141   :  { %950 = vst.msk [vmem:[%s1771_s4 + $0x48] sm:$0xff] %vm940_vm0, %v933_v5  ;;  %v914_v21 = vadd.f32 %v898_v4, %v854_v7  ;;  %v878_v22 = vadd.f32 %v877_v14, %v1634_v6  ;;  %v857_v63 = vadd.f32 %v1209_v19, %v1622_v17  ;;  %v1217_v23 = vpop.f32.mrb[38].mxu1  ;;  %v848_v25 = vpop.f32.mrb[39].mxu0  ;;  %v905_v17 = vld [vmem:[%s1770_s3 + $0x68] sm:$0xff] }
 0x142   :  { %v922_v27 = vadd.f32 %v906_v10, %v886_v15  ;;  %v912_v29 = vadd.f32 %v896_v12, %v846_v13  ;;  %v889_v30 = vadd.f32 %v1217_v23, %v1643_v28  ;;  %v849_v32 = vadd.f32 %v848_v25, %v1616_v1  ;;  %v880_v35 = vpop.f32.mrb[39].mxu1 }
 0x143   :  { %v930_v6 = vmax.f32 %v914_v21, 0.0  ;;  %v920_v18 = vadd.f32 %v904_v16, %v878_v22  ;;  %v915_v37 = vadd.f32 %v899_v20, %v857_v63  ;;  %v881_v38 = vadd.f32 %v880_v35, %v1636_v8 }
 0x144   :  { %v938_v39 = vmax.f32 %v922_v27, 0.0  ;;  %v928_v40 = vmax.f32 %v912_v29, 0.0  ;;  %v923_v41 = vadd.f32 %v907_v24, %v889_v30  ;;  %v913_v47 = vadd.f32 %v897_v26, %v849_v32 }
 0x145   :  { %947 = vst.msk [vmem:[%s1771_s4 + $0x30] sm:$0xff] %vm940_vm0, %v930_v6  ;;  %v936_v1 = vmax.f32 %v920_v18, 0.0  ;;  %v931_v28 = vmax.f32 %v915_v37, 0.0  ;;  %v921_v42 = vadd.f32 %v905_v17, %v881_v38 }
 0x146   :  { %955 = vst.msk [vmem:[%s1771_s4 + $0x70] sm:$0xff] %vm940_vm0, %v938_v39  ;;  %945 = vst.msk [vmem:[%s1771_s4 + $0x20] sm:$0xff] %vm940_vm0, %v928_v40  ;;  %v939_v8 = vmax.f32 %v923_v41, 0.0  ;;  %v929_v43 = vmax.f32 %v913_v47, 0.0 }
 0x147   :  { %953 = vst.msk [vmem:[%s1771_s4 + $0x60] sm:$0xff] %vm940_vm0, %v936_v1  ;;  %948 = vst.msk [vmem:[%s1771_s4 + $0x38] sm:$0xff] %vm940_vm0, %v931_v28  ;;  %v937_v44 = vmax.f32 %v921_v42, 0.0 }
 0x148   :  { %956 = vst.msk [vmem:[%s1771_s4 + $0x78] sm:$0xff] %vm940_vm0, %v939_v8  ;;  %946 = vst.msk [vmem:[%s1771_s4 + $0x28] sm:$0xff] %vm940_vm0, %v929_v43 }
 0x149   :  { %954 = vst.msk [vmem:[%s1771_s4 + $0x68] sm:$0xff] %vm940_vm0, %v937_v44 }

// kernel: extractor_forward.18
= control target key start
LH: loop header
LB: loop body
LE: loop exit
PB: predicated region body
PF: predicated region fallthrough
CT: control target
= control target key end

     0   :  { %s275_s1 = inlined_call_operand.vmem [shape: bf16[128,128], index: 1, kind: input, shape index: {}]   ;;  %s276_s0 = inlined_call_operand.vmem [shape: bf16[32,128], index: 0, kind: input, shape index: {}]   ;;  %s277_s2 = inlined_call_operand.vmem [shape: f32[1,128], index: 2, kind: input, shape index: {}]   ;;  %s278_s3 = inlined_call_operand.vmem [shape: f32[32,128], index: 3, kind: output, shape index: {}]  }
   0x1   :  { %v200_v0 = vld [vmem:[%s275_s1] sm:$0xff]   ;;  %v201_v1 = vld [vmem:[%s275_s1 + $0x8] sm:$0xff]   ;;  %v202_v2 = vld [vmem:[%s275_s1 + $0x10] sm:$0xff]  }
   0x2   :  { %180 = vmatprep.subr.bf16.mxu0 %v200_v0  ;;  %v203_v3 = vld [vmem:[%s275_s1 + $0x18] sm:$0xff]   ;;  %v208_v4 = vld [vmem:[%s276_s0] sm:$0xff]   ;;  %v205_v6 = vld [vmem:[%s275_s1 + $0x28] sm:$0xff]  }
   0x3   :  { %181 = vmatpush3.bf16.msra.mxu0 %v200_v0  ;;  %196 = vmatprep.mubr.bf16.mxu0 %v208_v4  ;;  %v204_v5 = vld [vmem:[%s275_s1 + $0x20] sm:$0xff]   ;;  %v206_v7 = vld [vmem:[%s275_s1 + $0x30] sm:$0xff]   ;;  %v207_v8 = vld [vmem:[%s275_s1 + $0x38] sm:$0xff]  }
   0x4   :  { %182 = vmatprep.subr.bf16.mxu0 %v201_v1  ;;  %v209_v9 = vld [vmem:[%s276_s0 + $0x8] sm:$0xff]   ;;  %v159_v10 = vld [vmem:[%s277_s2] ss:$0 sm:$0xff] }
   0x7   :  { %183 = vmatpush3.bf16.msra.mxu0 %v201_v1 }
   0x8   :  { %184 = vmatprep.subr.bf16.mxu0 %v202_v2 }
   0xb   :  { %185 = vmatpush3.bf16.msra.mxu0 %v202_v2 }
   0xc   :  { %186 = vmatprep.subr.bf16.mxu0 %v203_v3 }
   0xf   :  { %187 = vmatpush3.bf16.msra.mxu0 %v203_v3 }
  0x10   :  { %188 = vmatprep.subr.bf16.mxu0 %v204_v5 }
  0x13   :  { %189 = vmatpush3.bf16.msra.mxu0 %v204_v5 }
  0x14   :  { %190 = vmatprep.subr.bf16.mxu0 %v205_v6 }
  0x17   :  { %191 = vmatpush3.bf16.msra.mxu0 %v205_v6 }
  0x18   :  { %192 = vmatprep.subr.bf16.mxu0 %v206_v7 }
  0x1b   :  { %193 = vmatpush3.bf16.msra.mxu0 %v206_v7 }
  0x1c   :  { %194 = vmatprep.subr.bf16.mxu0 %v207_v8 }
  0x1f   :  { %195 = vmatpush3.bf16.msra.mxu0 %v207_v8 }
  0x22   :  { %197 = vmatmul.mubr.bf16.vlgmr.msra.gmra.mrb[0].mxu0 %v209_v9 }
  0xf5   :  { %v198_v11 = vpop.f32.mrb[0].mxu0 }
  0xf6   :  { %v145_v12 = vadd.f32 %v198_v11, %v159_v10  ;;  %v136_v13 = vpop.f32.mrb[1].mxu0 }
  0xf7   :  { %v137_v14 = vadd.f32 %v159_v10, %v136_v13  ;;  %v199_v15 = vpop.f32.mrb[2].mxu0 }
  0xf8   :  { %153 = vst [vmem:[%s278_s3 + $0x10] sm:$0xff] %v145_v12  ;;  %v148_v16 = vadd.f32 %v199_v15, %v159_v10  ;;  %v139_v17 = vpop.f32.mrb[3].mxu0 }
  0xf9   :  { %151 = vst [vmem:[%s278_s3] sm:$0xff] %v137_v14  ;;  %v140_v18 = vadd.f32 %v159_v10, %v139_v17 }
  0xfa   :  { %154 = vst [vmem:[%s278_s3 + $0x18] sm:$0xff] %v148_v16 }
  0xfb   :  { %152 = vst [vmem:[%s278_s3 + $0x8] sm:$0xff] %v140_v18 }

// kernel: extractor_forward.17
= control target key start
LH: loop header
LB: loop body
LE: loop exit
PB: predicated region body
PF: predicated region fallthrough
CT: control target
= control target key end

     0   :  { %s941_s1 = inlined_call_operand.vmem [shape: bf16[640,128], index: 1, kind: input, shape index: {}]   ;;  %s942_s0 = inlined_call_operand.vmem [shape: bf16[32,640], index: 0, kind: input, shape index: {}]   ;;  %s943_s2 = inlined_call_operand.vmem [shape: f32[1,128], index: 2, kind: input, shape index: {}]   ;;  %s944_s3 = inlined_call_operand.vmem [shape: f32[32,128], index: 3, kind: output, shape index: {}]  }
   0x1   :  { %v702_v0 = vld [vmem:[%s941_s1 + $0x40] sm:$0xff]   ;;  %v706_v4 = vld [vmem:[%s941_s1 + $0x48] sm:$0xff]   ;;  %v710_v8 = vld [vmem:[%s941_s1 + $0x50] sm:$0xff]  }
   0x2   :  { %v703_v1 = vld [vmem:[%s941_s1] sm:$0xff]   ;;  %616 = vmatprep.subr.bf16.mxu0 %v702_v0  ;;  %v707_v5 = vld [vmem:[%s941_s1 + $0x8] sm:$0xff]   ;;  %v711_v9 = vld [vmem:[%s941_s1 + $0x10] sm:$0xff]  }
   0x3   :  { %v704_v2 = vld [vmem:[%s941_s1 + $0xc0] sm:$0xff]   ;;  %617 = vmatpush3.bf16.msra.mxu0 %v703_v1  ;;  %v708_v6 = vld [vmem:[%s941_s1 + $0xc8] sm:$0xff]   ;;  %v712_v10 = vld [vmem:[%s941_s1 + $0xd0] sm:$0xff]  }
   0x4   :  { %v705_v3 = vld [vmem:[%s941_s1 + $0x80] sm:$0xff]   ;;  %644 = vmatprep.subr.bf16.mxu1 %v704_v2  ;;  %618 = vmatprep.subr.bf16.mxu0 %v706_v4  ;;  %v709_v7 = vld [vmem:[%s941_s1 + $0x88] sm:$0xff]   ;;  %v713_v11 = vld [vmem:[%s941_s1 + $0x90] sm:$0xff]  }
   0x5   :  { %645 = vmatpush3.bf16.msra.mxu1 %v705_v3  ;;  %v714_v12 = vld [vmem:[%s941_s1 + $0x58] sm:$0xff]   ;;  %v718_v16 = vld [vmem:[%s941_s1 + $0x60] sm:$0xff]   ;;  %v722_v20 = vld [vmem:[%s941_s1 + $0x68] sm:$0xff]  }
   0x6   :  { %646 = vmatprep.subr.bf16.mxu1 %v708_v6  ;;  %v715_v13 = vld [vmem:[%s941_s1 + $0x18] sm:$0xff]   ;;  %v719_v17 = vld [vmem:[%s941_s1 + $0x20] sm:$0xff]   ;;  %v723_v21 = vld [vmem:[%s941_s1 + $0x28] sm:$0xff]  }
   0x7   :  { %619 = vmatpush3.bf16.msra.mxu0 %v707_v5  ;;  %v716_v14 = vld [vmem:[%s941_s1 + $0xd8] sm:$0xff]   ;;  %v720_v18 = vld [vmem:[%s941_s1 + $0xe0] sm:$0xff]   ;;  %v724_v22 = vld [vmem:[%s941_s1 + $0xe8] sm:$0xff]  }
   0x8   :  { %620 = vmatprep.subr.bf16.mxu0 %v710_v8  ;;  %v717_v15 = vld [vmem:[%s941_s1 + $0x98] sm:$0xff]   ;;  %v721_v19 = vld [vmem:[%s941_s1 + $0xa0] sm:$0xff]   ;;  %v725_v23 = vld [vmem:[%s941_s1 + $0xa8] sm:$0xff]  }
   0x9   :  { %647 = vmatpush3.bf16.msra.mxu1 %v709_v7  ;;  %v726_v24 = vld [vmem:[%s941_s1 + $0x70] sm:$0xff]   ;;  %v730_v28 = vld [vmem:[%s941_s1 + $0x78] sm:$0xff]   ;;  %v737_v34 = vld [vmem:[%s941_s1 + $0x100] sm:$0xff]  }
   0xa   :  { %648 = vmatprep.subr.bf16.mxu1 %v712_v10  ;;  %v727_v25 = vld [vmem:[%s941_s1 + $0x30] sm:$0xff]   ;;  %v731_v29 = vld [vmem:[%s941_s1 + $0x38] sm:$0xff]   ;;  %v740_v36 = vld [vmem:[%s942_s0 + $0xc] ss:$20 sps:$4 sm:$0xff]  }
   0xb   :  { %621 = vmatpush3.bf16.msra.mxu0 %v711_v9  ;;  %v728_v26 = vld [vmem:[%s941_s1 + $0xf0] sm:$0xff]   ;;  %v732_v30 = vld [vmem:[%s941_s1 + $0xf8] sm:$0xff]   ;;  %v741_v37 = vld [vmem:[%s941_s1 + $0x108] sm:$0xff]   ;;  %487 = vmatprep.mubr.bf16.mxu1 %v740_v36 }
   0xc   :  { %622 = vmatprep.subr.bf16.mxu0 %v714_v12  ;;  %v729_v27 = vld [vmem:[%s941_s1 + $0xb0] sm:$0xff]   ;;  %v735_v32 = vld [vmem:[%s942_s0 + $0x4] ss:$20 sps:$4 sm:$0xff]   ;;  %v738_v35 = vld [vmem:[%s942_s0 + $0x8] ss:$20 sps:$4 sm:$0xff]  }
   0xd   :  { %649 = vmatpush3.bf16.msra.mxu1 %v713_v11  ;;  %v733_v31 = vld [vmem:[%s942_s0] ss:$20 sps:$4 sm:$0xff]   ;;  %v736_v33 = vld [vmem:[%s941_s1 + $0xb8] sm:$0xff]   ;;  %438 = vmatprep.mubr.bf16.mxu0 %v735_v32  ;;  %v751_v43 = vld [vmem:[%s942_s0 + $0x30] ss:$20 sps:$4 sm:$0xff]  }
   0xe   :  { %650 = vmatprep.subr.bf16.mxu1 %v716_v14  ;;  %v742_v38 = vld [vmem:[%s941_s1 + $0x110] sm:$0xff]   ;;  %v745_v39 = vld [vmem:[%s942_s0 + $0x2c] ss:$20 sps:$4 sm:$0xff]   ;;  %v743_v40 = vld [vmem:[%s941_s1 + $0x118] sm:$0xff]  }
   0xf   :  { %623 = vmatpush3.bf16.msra.mxu0 %v715_v13  ;;  %v748_v41 = vld [vmem:[%s942_s0 + $0x28] ss:$20 sps:$4 sm:$0xff]   ;;  %v744_v44 = vld [vmem:[%s941_s1 + $0x120] sm:$0xff]   ;;  %v752_v47 = vld [vmem:[%s941_s1 + $0x130] sm:$0xff]  }
  0x10   :  { %624 = vmatprep.subr.bf16.mxu0 %v718_v16  ;;  %v749_v42 = vld [vmem:[%s942_s0 + $0x34] ss:$20 sps:$4 sm:$0xff]   ;;  %v754_v45 = vld [vmem:[%s942_s0 + $0x10] ss:$20 sps:$4 sm:$0xff]   ;;  %v753_v48 = vld [vmem:[%s941_s1 + $0x138] sm:$0xff]  }
  0x11   :  { %651 = vmatpush3.bf16.msra.mxu1 %v717_v15  ;;  %v747_v46 = vld [vmem:[%s941_s1 + $0x128] sm:$0xff]   ;;  %v565_v51 = vld [vmem:[%s943_s2] ss:$0 sm:$0xff] }
  0x12   :  { %652 = vmatprep.subr.bf16.mxu1 %v720_v18  ;;  %v755_v49 = vld [vmem:[%s942_s0 + $0x38] ss:$20 sps:$4 sm:$0xff]  }
  0x13   :  { %625 = vmatpush3.bf16.msra.mxu0 %v719_v17 }
  0x14   :  { %626 = vmatprep.subr.bf16.mxu0 %v722_v20 }
  0x15   :  { %653 = vmatpush3.bf16.msra.mxu1 %v721_v19 }
  0x16   :  { %654 = vmatprep.subr.bf16.mxu1 %v724_v22 }
  0x17   :  { %627 = vmatpush3.bf16.msra.mxu0 %v723_v21 }
  0x18   :  { %628 = vmatprep.subr.bf16.mxu0 %v726_v24 }
  0x19   :  { %655 = vmatpush3.bf16.msra.mxu1 %v725_v23 }
  0x1a   :  { %656 = vmatprep.subr.bf16.mxu1 %v728_v26 }
  0x1b   :  { %629 = vmatpush3.bf16.msra.mxu0 %v727_v25 }
  0x1c   :  { %630 = vmatprep.subr.bf16.mxu0 %v730_v28 }
  0x1d   :  { %657 = vmatpush3.bf16.msra.mxu1 %v729_v27 }
  0x1e   :  { %658 = vmatprep.subr.bf16.mxu1 %v732_v30 }
  0x1f   :  { %631 = vmatpush3.bf16.msra.mxu0 %v731_v29 }
  0x20   :  { %682 = vmatprep.subr.bf16.mxu0 %v737_v34 }
  0x21   :  { %659 = vmatpush3.bf16.msra.mxu1 %v736_v33 }
  0x22   :  { %439 = vmatmul.mubr.bf16.vlgmr.msra.gmra.mrb[0].mxu0 %v733_v31 }
  0x23   :  { %683 = vmatpush3.bf16.msra.mxu0 %v737_v34  ;;  %446 = vmatprep.mubr.bf16.mxu0 %v745_v39 }
  0x24   :  { %488 = vmatmul.mubr.bf16.vlgmr.msra.gmra.mrb[0].mxu1 %v738_v35  ;;  %684 = vmatprep.subr.bf16.mxu0 %v741_v37 }
  0x25   :  { %495 = vmatprep.mubr.bf16.mxu1 %v749_v42 }
  0x27   :  { %685 = vmatpush3.bf16.msra.mxu0 %v741_v37 }
  0x28   :  { %686 = vmatprep.subr.bf16.mxu0 %v742_v38 }
  0x2a   :  { %447 = vmatmul.mubr.bf16.gmra.mrb[4].mxu0 %v748_v41 }
  0x2b   :  { %687 = vmatpush3.bf16.msra.mxu0 %v742_v38  ;;  %698 = vmatprep.mubr.bf16.mxu0 %v754_v45 }
  0x2c   :  { %688 = vmatprep.subr.bf16.mxu0 %v743_v40  ;;  %496 = vmatmul.mubr.bf16.gmra.mrb[4].mxu1 %v751_v43 }
  0x2f   :  { %689 = vmatpush3.bf16.msra.mxu0 %v743_v40 }
  0x30   :  { %690 = vmatprep.subr.bf16.mxu0 %v744_v44 }
  0x33   :  { %691 = vmatpush3.bf16.msra.mxu0 %v744_v44 }
  0x34   :  { %692 = vmatprep.subr.bf16.mxu0 %v747_v46 }
  0x37   :  { %693 = vmatpush3.bf16.msra.mxu0 %v747_v46 }
  0x38   :  { %694 = vmatprep.subr.bf16.mxu0 %v752_v47 }
  0x3b   :  { %695 = vmatpush3.bf16.msra.mxu0 %v752_v47 }
  0x3c   :  { %696 = vmatprep.subr.bf16.mxu0 %v753_v48 }
  0x3f   :  { %697 = vmatpush3.bf16.msra.mxu0 %v753_v48 }
  0x42   :  { %699 = vmatmul.mubr.bf16.vlgmr.msra.gmra.mrb[8].mxu0 %v755_v49 }
  0xf5   :  { %v632_v50 = vpop.f32.mrb[0].mxu0 }
  0xf6   :  { %v633_v52 = vpop.f32.mrb[1].mxu0 }
  0xf7   :  { %v634_v53 = vadd.f32 %v633_v52, %v632_v50  ;;  %v635_v54 = vpop.f32.mrb[2].mxu0  ;;  %v660_v55 = vpop.f32.mrb[0].mxu1 }
  0xf8   :  { %v636_v56 = vpop.f32.mrb[3].mxu0  ;;  %v661_v59 = vpop.f32.mrb[1].mxu1 }
  0xf9   :  { %v441_v57 = vadd.f32 %v634_v53, %v565_v51  ;;  %v637_v58 = vadd.f32 %v636_v56, %v635_v54  ;;  %v662_v60 = vadd.f32 %v661_v59, %v660_v55  ;;  %v663_v61 = vpop.f32.mrb[2].mxu1 }
  0xfa   :  { %v664_v63 = vpop.f32.mrb[3].mxu1 }
  0xfb   :  { %v444_v62 = vadd.f32 %v637_v58, %v565_v51  ;;  %v665_v0 = vadd.f32 %v664_v63, %v663_v61  ;;  %v490_v1 = vadd.f32 %v662_v60, %v441_v57 }
  0xfd   :  { %v638_v2 = vpop.f32.mrb[4].mxu0  ;;  %v493_v4 = vadd.f32 %v665_v0, %v444_v62 }
  0xfe   :  { %v639_v3 = vpop.f32.mrb[5].mxu0 }
  0xff   :  { %v640_v5 = vadd.f32 %v639_v3, %v638_v2  ;;  %v641_v6 = vpop.f32.mrb[6].mxu0  ;;  %v666_v7 = vpop.f32.mrb[4].mxu1 }
 0x100   :  { %v642_v8 = vpop.f32.mrb[7].mxu0  ;;  %v667_v11 = vpop.f32.mrb[5].mxu1 }
 0x101   :  { %v449_v9 = vadd.f32 %v640_v5, %v565_v51  ;;  %v643_v10 = vadd.f32 %v642_v8, %v641_v6  ;;  %v668_v12 = vadd.f32 %v667_v11, %v666_v7  ;;  %v669_v13 = vpop.f32.mrb[6].mxu1 }
 0x102   :  { %v670_v15 = vpop.f32.mrb[7].mxu1 }
 0x103   :  { %v452_v14 = vadd.f32 %v643_v10, %v565_v51  ;;  %v671_v16 = vadd.f32 %v670_v15, %v669_v13  ;;  %v498_v17 = vadd.f32 %v668_v12, %v449_v9 }
 0x105   :  { %v501_v18 = vadd.f32 %v671_v16, %v452_v14 }
 0x115   :  { %v700_v19 = vpop.f32.mrb[8].mxu0 }
 0x116   :  { %v547_v20 = vadd.f32 %v700_v19, %v498_v17  ;;  %v538_v21 = vpop.f32.mrb[9].mxu0 }
 0x117   :  { %v539_v22 = vadd.f32 %v538_v21, %v490_v1  ;;  %v701_v23 = vpop.f32.mrb[10].mxu0 }
 0x118   :  { %v555_v24 = vmax.f32 %v547_v20, 0.0  ;;  %v550_v25 = vadd.f32 %v701_v23, %v501_v18  ;;  %v541_v26 = vpop.f32.mrb[11].mxu0 }
 0x119   :  { %v553_v27 = vmax.f32 %v539_v22, 0.0  ;;  %v542_v28 = vadd.f32 %v541_v26, %v493_v4 }
 0x11a   :  { %559 = vst [vmem:[%s944_s3 + $0x10] sm:$0xff] %v555_v24  ;;  %v556_v29 = vmax.f32 %v550_v25, 0.0 }
 0x11b   :  { %557 = vst [vmem:[%s944_s3] sm:$0xff] %v553_v27  ;;  %v554_v30 = vmax.f32 %v542_v28, 0.0 }
 0x11c   :  { %560 = vst [vmem:[%s944_s3 + $0x18] sm:$0xff] %v556_v29 }
 0x11d   :  { %558 = vst [vmem:[%s944_s3 + $0x8] sm:$0xff] %v554_v30 }

// kernel: extractor_forward.20
= control target key start
LH: loop header
LB: loop body
LE: loop exit
PB: predicated region body
PF: predicated region fallthrough
CT: control target
= control target key end

     0   :  { %s1603_s1 = inlined_call_operand.vmem [shape: bf16[1152,128], index: 1, kind: input, shape index: {}]   ;;  %s1604_s0 = inlined_call_operand.vmem [shape: bf16[32,1152], index: 0, kind: input, shape index: {}]   ;;  %s1605_s2 = inlined_call_operand.vmem [shape: f32[1,128], index: 2, kind: input, shape index: {}]   ;;  %s1606_s3 = inlined_call_operand.vmem [shape: f32[32,128], index: 3, kind: output, shape index: {}]  }
   0x1   :  { %v1200_v0 = vld [vmem:[%s1603_s1 + $0x40] sm:$0xff]   ;;  %v1204_v4 = vld [vmem:[%s1603_s1 + $0x48] sm:$0xff]   ;;  %v1208_v8 = vld [vmem:[%s1603_s1 + $0x50] sm:$0xff]  }
   0x2   :  { %v1201_v1 = vld [vmem:[%s1603_s1] sm:$0xff]   ;;  %1058 = vmatprep.subr.bf16.mxu0 %v1200_v0  ;;  %v1205_v5 = vld [vmem:[%s1603_s1 + $0x8] sm:$0xff]   ;;  %v1209_v9 = vld [vmem:[%s1603_s1 + $0x10] sm:$0xff]  }
   0x3   :  { %v1202_v2 = vld [vmem:[%s1603_s1 + $0xc0] sm:$0xff]   ;;  %1059 = vmatpush3.bf16.msra.mxu0 %v1201_v1  ;;  %v1206_v6 = vld [vmem:[%s1603_s1 + $0xc8] sm:$0xff]   ;;  %v1210_v10 = vld [vmem:[%s1603_s1 + $0xd0] sm:$0xff]  }
   0x4   :  { %v1203_v3 = vld [vmem:[%s1603_s1 + $0x80] sm:$0xff]   ;;  %1086 = vmatprep.subr.bf16.mxu1 %v1202_v2  ;;  %1060 = vmatprep.subr.bf16.mxu0 %v1204_v4  ;;  %v1207_v7 = vld [vmem:[%s1603_s1 + $0x88] sm:$0xff]   ;;  %v1211_v11 = vld [vmem:[%s1603_s1 + $0x90] sm:$0xff]  }
   0x5   :  { %1087 = vmatpush3.bf16.msra.mxu1 %v1203_v3  ;;  %v1212_v12 = vld [vmem:[%s1603_s1 + $0x58] sm:$0xff]   ;;  %v1216_v16 = vld [vmem:[%s1603_s1 + $0x60] sm:$0xff]   ;;  %v1220_v20 = vld [vmem:[%s1603_s1 + $0x68] sm:$0xff]  }
   0x6   :  { %1088 = vmatprep.subr.bf16.mxu1 %v1206_v6  ;;  %v1213_v13 = vld [vmem:[%s1603_s1 + $0x18] sm:$0xff]   ;;  %v1217_v17 = vld [vmem:[%s1603_s1 + $0x20] sm:$0xff]   ;;  %v1221_v21 = vld [vmem:[%s1603_s1 + $0x28] sm:$0xff]  }
   0x7   :  { %1061 = vmatpush3.bf16.msra.mxu0 %v1205_v5  ;;  %v1214_v14 = vld [vmem:[%s1603_s1 + $0xd8] sm:$0xff]   ;;  %v1218_v18 = vld [vmem:[%s1603_s1 + $0xe0] sm:$0xff]   ;;  %v1222_v22 = vld [vmem:[%s1603_s1 + $0xe8] sm:$0xff]  }
   0x8   :  { %1062 = vmatprep.subr.bf16.mxu0 %v1208_v8  ;;  %v1215_v15 = vld [vmem:[%s1603_s1 + $0x98] sm:$0xff]   ;;  %v1219_v19 = vld [vmem:[%s1603_s1 + $0xa0] sm:$0xff]   ;;  %v1223_v23 = vld [vmem:[%s1603_s1 + $0xa8] sm:$0xff]  }
   0x9   :  { %1089 = vmatpush3.bf16.msra.mxu1 %v1207_v7  ;;  %v1224_v24 = vld [vmem:[%s1603_s1 + $0x70] sm:$0xff]   ;;  %v1228_v28 = vld [vmem:[%s1603_s1 + $0x78] sm:$0xff]   ;;  %v1231_v31 = vld [vmem:[%s1604_s0] ss:$36 sps:$4 sm:$0xff]  }
   0xa   :  { %1090 = vmatprep.subr.bf16.mxu1 %v1210_v10  ;;  %v1225_v25 = vld [vmem:[%s1603_s1 + $0x30] sm:$0xff]   ;;  %v1229_v29 = vld [vmem:[%s1603_s1 + $0x38] sm:$0xff]   ;;  %v1233_v32 = vld [vmem:[%s1604_s0 + $0x4] ss:$36 sps:$4 sm:$0xff]  }
   0xb   :  { %1063 = vmatpush3.bf16.msra.mxu0 %v1209_v9  ;;  %v1226_v26 = vld [vmem:[%s1603_s1 + $0xf0] sm:$0xff]   ;;  %v1230_v30 = vld [vmem:[%s1603_s1 + $0xf8] sm:$0xff]   ;;  %742 = vmatprep.mubr.bf16.mxu0 %v1233_v32  ;;  %v1235_v34 = vld [vmem:[%s1603_s1 + $0x140] sm:$0xff]  }
   0xc   :  { %1064 = vmatprep.subr.bf16.mxu0 %v1212_v12  ;;  %v1227_v27 = vld [vmem:[%s1603_s1 + $0xb0] sm:$0xff]   ;;  %v1234_v33 = vld [vmem:[%s1603_s1 + $0xb8] sm:$0xff]   ;;  %v1236_v35 = vld [vmem:[%s1604_s0 + $0x8] ss:$36 sps:$4 sm:$0xff]  }
   0xd   :  { %1091 = vmatpush3.bf16.msra.mxu1 %v1211_v11  ;;  %v1238_v36 = vld [vmem:[%s1604_s0 + $0xc] ss:$36 sps:$4 sm:$0xff]   ;;  %v1239_v37 = vld [vmem:[%s1603_s1 + $0x100] sm:$0xff]   ;;  %v1250_v48 = vld [vmem:[%s1603_s1 + $0x158] sm:$0xff]  }
   0xe   :  { %1092 = vmatprep.subr.bf16.mxu1 %v1214_v14  ;;  %791 = vmatprep.mubr.bf16.mxu1 %v1238_v36  ;;  %v1240_v38 = vld [vmem:[%s1603_s1 + $0x1c0] sm:$0xff]   ;;  %v1242_v40 = vld [vmem:[%s1603_s1 + $0x148] sm:$0xff]   ;;  %v1246_v44 = vld [vmem:[%s1603_s1 + $0x150] sm:$0xff]  }
   0xf   :  { %1065 = vmatpush3.bf16.msra.mxu0 %v1213_v13  ;;  %v1241_v39 = vld [vmem:[%s1603_s1 + $0x180] sm:$0xff]   ;;  %v1243_v41 = vld [vmem:[%s1603_s1 + $0x108] sm:$0xff]   ;;  %v1247_v45 = vld [vmem:[%s1603_s1 + $0x110] sm:$0xff]  }
  0x10   :  { %1066 = vmatprep.subr.bf16.mxu0 %v1216_v16  ;;  %v1244_v42 = vld [vmem:[%s1603_s1 + $0x1c8] sm:$0xff]   ;;  %v1248_v46 = vld [vmem:[%s1603_s1 + $0x1d0] sm:$0xff]   ;;  %v1251_v49 = vld [vmem:[%s1603_s1 + $0x118] sm:$0xff]  }
  0x11   :  { %1093 = vmatpush3.bf16.msra.mxu1 %v1215_v15  ;;  %v1245_v43 = vld [vmem:[%s1603_s1 + $0x188] sm:$0xff]   ;;  %v1249_v47 = vld [vmem:[%s1603_s1 + $0x190] sm:$0xff]   ;;  %v1252_v50 = vld [vmem:[%s1603_s1 + $0x1d8] sm:$0xff]  }
  0x12   :  { %1094 = vmatprep.subr.bf16.mxu1 %v1218_v18  ;;  %v1253_v51 = vld [vmem:[%s1603_s1 + $0x198] sm:$0xff]   ;;  %v1254_v52 = vld [vmem:[%s1603_s1 + $0x160] sm:$0xff]   ;;  %v1258_v56 = vld [vmem:[%s1603_s1 + $0x168] sm:$0xff]  }
  0x13   :  { %1067 = vmatpush3.bf16.msra.mxu0 %v1217_v17  ;;  %v1255_v53 = vld [vmem:[%s1603_s1 + $0x120] sm:$0xff]   ;;  %v1259_v57 = vld [vmem:[%s1604_s0 + $0x4c] ss:$36 sps:$4 sm:$0xff]   ;;  %v1264_v61 = vld [vmem:[%s1604_s0 + $0x54] ss:$36 sps:$4 sm:$0xff]  }
  0x14   :  { %1068 = vmatprep.subr.bf16.mxu0 %v1220_v20  ;;  %v1256_v54 = vld [vmem:[%s1603_s1 + $0x1e0] sm:$0xff]   ;;  %v1261_v58 = vld [vmem:[%s1603_s1 + $0x128] sm:$0xff]   ;;  %v1267_v63 = vld [vmem:[%s1604_s0 + $0x50] ss:$36 sps:$4 sm:$0xff]  }
  0x15   :  { %1095 = vmatpush3.bf16.msra.mxu1 %v1219_v19  ;;  %v1257_v55 = vld [vmem:[%s1603_s1 + $0x1a0] sm:$0xff]   ;;  %v1262_v59 = vld [vmem:[%s1604_s0 + $0x48] ss:$36 sps:$4 sm:$0xff]   ;;  %v1268_v0 = vld [vmem:[%s1603_s1 + $0x170] sm:$0xff]  }
  0x16   :  { %1096 = vmatprep.subr.bf16.mxu1 %v1222_v22  ;;  %v1263_v60 = vld [vmem:[%s1603_s1 + $0x1e8] sm:$0xff]   ;;  %v1269_v1 = vld [vmem:[%s1603_s1 + $0x130] sm:$0xff]   ;;  %v1272_v4 = vld [vmem:[%s1603_s1 + $0x178] sm:$0xff]  }
  0x17   :  { %1069 = vmatpush3.bf16.msra.mxu0 %v1221_v21  ;;  %v1266_v62 = vld [vmem:[%s1603_s1 + $0x1a8] sm:$0xff]   ;;  %v1270_v2 = vld [vmem:[%s1603_s1 + $0x1f0] sm:$0xff]   ;;  %v1273_v5 = vld [vmem:[%s1603_s1 + $0x138] sm:$0xff]  }
  0x18   :  { %1070 = vmatprep.subr.bf16.mxu0 %v1224_v24  ;;  %v1271_v3 = vld [vmem:[%s1603_s1 + $0x1b0] sm:$0xff]   ;;  %v1274_v6 = vld [vmem:[%s1603_s1 + $0x1f8] sm:$0xff]   ;;  %v1279_v10 = vld [vmem:[%s1603_s1 + $0x200] sm:$0xff]  }
  0x19   :  { %1097 = vmatpush3.bf16.msra.mxu1 %v1223_v23  ;;  %v1275_v7 = vld [vmem:[%s1604_s0 + $0x10] ss:$36 sps:$4 sm:$0xff]   ;;  %v1278_v9 = vld [vmem:[%s1603_s1 + $0x1b8] sm:$0xff]   ;;  %v1283_v13 = vld [vmem:[%s1603_s1 + $0x208] sm:$0xff]  }
  0x1a   :  { %1098 = vmatprep.subr.bf16.mxu1 %v1226_v26  ;;  %v1277_v8 = vld [vmem:[%s1604_s0 + $0x14] ss:$36 sps:$4 sm:$0xff]   ;;  %v1282_v12 = vld [vmem:[%s1604_s0 + $0x1c] ss:$36 sps:$4 sm:$0xff]   ;;  %v1288_v17 = vld [vmem:[%s1604_s0 + $0x64] ss:$36 sps:$4 sm:$0xff]  }
  0x1b   :  { %1071 = vmatpush3.bf16.msra.mxu0 %v1225_v25  ;;  %v1280_v11 = vld [vmem:[%s1604_s0 + $0x18] ss:$36 sps:$4 sm:$0xff]   ;;  %v1287_v16 = vld [vmem:[%s1603_s1 + $0x210] sm:$0xff]   ;;  %v1290_v18 = vld [vmem:[%s1604_s0 + $0x60] ss:$36 sps:$4 sm:$0xff]  }
  0x1c   :  { %1072 = vmatprep.subr.bf16.mxu0 %v1228_v28  ;;  %v1284_v14 = vld [vmem:[%s1604_s0 + $0x5c] ss:$36 sps:$4 sm:$0xff]   ;;  %v1293_v22 = vld [vmem:[%s1603_s1 + $0x228] sm:$0xff]   ;;  %v1294_v23 = vld [vmem:[%s1603_s1 + $0x230] sm:$0xff]  }
  0x1d   :  { %1099 = vmatpush3.bf16.msra.mxu1 %v1227_v27  ;;  %v1286_v15 = vld [vmem:[%s1604_s0 + $0x58] ss:$36 sps:$4 sm:$0xff]   ;;  %v1292_v20 = vld [vmem:[%s1603_s1 + $0x220] sm:$0xff]   ;;  %v1297_v25 = vld [vmem:[%s1604_s0 + $0x68] ss:$36 sps:$4 sm:$0xff]  }
  0x1e   :  { %1100 = vmatprep.subr.bf16.mxu1 %v1230_v30  ;;  %v1291_v19 = vld [vmem:[%s1603_s1 + $0x218] sm:$0xff]   ;;  %v1296_v21 = vld [vmem:[%s1604_s0 + $0x20] ss:$36 sps:$4 sm:$0xff]  }
  0x1f   :  { %1073 = vmatpush3.bf16.msra.mxu0 %v1229_v29  ;;  %v1295_v24 = vld [vmem:[%s1603_s1 + $0x238] sm:$0xff]   ;;  %v967_v27 = vld [vmem:[%s1605_s2] ss:$0 sm:$0xff] }
  0x20   :  { %1114 = vmatprep.subr.bf16.mxu0 %v1235_v34 }
  0x21   :  { %1101 = vmatpush3.bf16.msra.mxu1 %v1234_v33 }
  0x22   :  { %743 = vmatmul.mubr.bf16.vlgmr.msra.gmra.mrb[0].mxu0 %v1231_v31  ;;  %1142 = vmatprep.subr.bf16.mxu1 %v1240_v38 }
  0x23   :  { %1115 = vmatpush3.bf16.msra.mxu0 %v1239_v37  ;;  %750 = vmatprep.mubr.bf16.mxu0 %v1259_v57 }
  0x24   :  { %792 = vmatmul.mubr.bf16.vlgmr.msra.gmra.mrb[0].mxu1 %v1236_v35  ;;  %1116 = vmatprep.subr.bf16.mxu0 %v1242_v40 }
  0x25   :  { %1143 = vmatpush3.bf16.msra.mxu1 %v1241_v39  ;;  %799 = vmatprep.mubr.bf16.mxu1 %v1264_v61 }
  0x26   :  { %1144 = vmatprep.subr.bf16.mxu1 %v1244_v42 }
  0x27   :  { %1117 = vmatpush3.bf16.msra.mxu0 %v1243_v41 }
  0x28   :  { %1118 = vmatprep.subr.bf16.mxu0 %v1246_v44 }
  0x29   :  { %1145 = vmatpush3.bf16.msra.mxu1 %v1245_v43 }
  0x2a   :  { %1146 = vmatprep.subr.bf16.mxu1 %v1248_v46  ;;  %751 = vmatmul.mubr.bf16.gmra.mrb[4].mxu0 %v1262_v59 }
  0x2b   :  { %1119 = vmatpush3.bf16.msra.mxu0 %v1247_v45  ;;  %840 = vmatprep.mubr.bf16.mxu0 %v1277_v8 }
  0x2c   :  { %1120 = vmatprep.subr.bf16.mxu0 %v1250_v48  ;;  %800 = vmatmul.mubr.bf16.gmra.mrb[4].mxu1 %v1267_v63 }
  0x2d   :  { %1147 = vmatpush3.bf16.msra.mxu1 %v1249_v47  ;;  %889 = vmatprep.mubr.bf16.mxu1 %v1282_v12 }
  0x2e   :  { %1148 = vmatprep.subr.bf16.mxu1 %v1252_v50 }
  0x2f   :  { %1121 = vmatpush3.bf16.msra.mxu0 %v1251_v49 }
  0x30   :  { %1122 = vmatprep.subr.bf16.mxu0 %v1254_v52 }
  0x31   :  { %1149 = vmatpush3.bf16.msra.mxu1 %v1253_v51 }
  0x32   :  { %1150 = vmatprep.subr.bf16.mxu1 %v1256_v54 }
  0x33   :  { %1123 = vmatpush3.bf16.msra.mxu0 %v1255_v53 }
  0x34   :  { %1124 = vmatprep.subr.bf16.mxu0 %v1258_v56 }
  0x35   :  { %1151 = vmatpush3.bf16.msra.mxu1 %v1257_v55 }
  0x36   :  { %1152 = vmatprep.subr.bf16.mxu1 %v1263_v60 }
  0x37   :  { %1125 = vmatpush3.bf16.msra.mxu0 %v1261_v58 }
  0x38   :  { %1126 = vmatprep.subr.bf16.mxu0 %v1268_v0 }
  0x39   :  { %1153 = vmatpush3.bf16.msra.mxu1 %v1266_v62 }
  0x3a   :  { %1154 = vmatprep.subr.bf16.mxu1 %v1270_v2 }
  0x3b   :  { %1127 = vmatpush3.bf16.msra.mxu0 %v1269_v1 }
  0x3c   :  { %1128 = vmatprep.subr.bf16.mxu0 %v1272_v4 }
  0x3d   :  { %1155 = vmatpush3.bf16.msra.mxu1 %v1271_v3 }
  0x3e   :  { %1156 = vmatprep.subr.bf16.mxu1 %v1274_v6 }
  0x3f   :  { %1129 = vmatpush3.bf16.msra.mxu0 %v1273_v5 }
  0x40   :  { %1180 = vmatprep.subr.bf16.mxu0 %v1279_v10 }
  0x41   :  { %1157 = vmatpush3.bf16.msra.mxu1 %v1278_v9 }
  0x42   :  { %841 = vmatmul.mubr.bf16.vlgmr.msra.gmra.mrb[8].mxu0 %v1275_v7 }
  0x43   :  { %1181 = vmatpush3.bf16.msra.mxu0 %v1279_v10  ;;  %848 = vmatprep.mubr.bf16.mxu0 %v1284_v14 }
  0x44   :  { %890 = vmatmul.mubr.bf16.vlgmr.msra.gmra.mrb[8].mxu1 %v1280_v11  ;;  %1182 = vmatprep.subr.bf16.mxu0 %v1283_v13 }
  0x45   :  { %897 = vmatprep.mubr.bf16.mxu1 %v1288_v17 }
  0x47   :  { %1183 = vmatpush3.bf16.msra.mxu0 %v1283_v13 }
  0x48   :  { %1184 = vmatprep.subr.bf16.mxu0 %v1287_v16 }
  0x4a   :  { %849 = vmatmul.mubr.bf16.gmra.mrb[12].mxu0 %v1286_v15 }
  0x4b   :  { %1185 = vmatpush3.bf16.msra.mxu0 %v1287_v16  ;;  %1196 = vmatprep.mubr.bf16.mxu0 %v1296_v21 }
  0x4c   :  { %898 = vmatmul.mubr.bf16.gmra.mrb[12].mxu1 %v1290_v18  ;;  %1186 = vmatprep.subr.bf16.mxu0 %v1291_v19 }
  0x4f   :  { %1187 = vmatpush3.bf16.msra.mxu0 %v1291_v19 }
  0x50   :  { %1188 = vmatprep.subr.bf16.mxu0 %v1292_v20 }
  0x53   :  { %1189 = vmatpush3.bf16.msra.mxu0 %v1292_v20 }
  0x54   :  { %1190 = vmatprep.subr.bf16.mxu0 %v1293_v22 }
  0x57   :  { %1191 = vmatpush3.bf16.msra.mxu0 %v1293_v22 }
  0x58   :  { %1192 = vmatprep.subr.bf16.mxu0 %v1294_v23 }
  0x5b   :  { %1193 = vmatpush3.bf16.msra.mxu0 %v1294_v23 }
  0x5c   :  { %1194 = vmatprep.subr.bf16.mxu0 %v1295_v24 }
  0x5f   :  { %1195 = vmatpush3.bf16.msra.mxu0 %v1295_v24 }
  0x62   :  { %1197 = vmatmul.mubr.bf16.vlgmr.msra.gmra.mrb[16].mxu0 %v1297_v25 }
  0xf5   :  { %v1074_v26 = vpop.f32.mrb[0].mxu0 }
  0xf6   :  { %v1075_v28 = vpop.f32.mrb[1].mxu0 }
  0xf7   :  { %v1076_v29 = vadd.f32 %v1075_v28, %v1074_v26  ;;  %v1077_v30 = vpop.f32.mrb[2].mxu0  ;;  %v1102_v31 = vpop.f32.mrb[0].mxu1 }
  0xf8   :  { %v1078_v32 = vpop.f32.mrb[3].mxu0  ;;  %v1103_v35 = vpop.f32.mrb[1].mxu1 }
  0xf9   :  { %v745_v33 = vadd.f32 %v1076_v29, %v967_v27  ;;  %v1079_v34 = vadd.f32 %v1078_v32, %v1077_v30  ;;  %v1104_v36 = vadd.f32 %v1103_v35, %v1102_v31  ;;  %v1105_v37 = vpop.f32.mrb[2].mxu1 }
  0xfa   :  { %v1106_v39 = vpop.f32.mrb[3].mxu1 }
  0xfb   :  { %v748_v38 = vadd.f32 %v1079_v34, %v967_v27  ;;  %v794_v40 = vadd.f32 %v1104_v36, %v745_v33  ;;  %v1107_v41 = vadd.f32 %v1106_v39, %v1105_v37 }
  0xfd   :  { %v797_v42 = vadd.f32 %v1107_v41, %v748_v38  ;;  %v1080_v43 = vpop.f32.mrb[4].mxu0 }
  0xfe   :  { %v1081_v44 = vpop.f32.mrb[5].mxu0 }
  0xff   :  { %v1082_v45 = vadd.f32 %v1081_v44, %v1080_v43  ;;  %v1083_v46 = vpop.f32.mrb[6].mxu0  ;;  %v1108_v47 = vpop.f32.mrb[4].mxu1 }
 0x100   :  { %v1084_v48 = vpop.f32.mrb[7].mxu0  ;;  %v1109_v51 = vpop.f32.mrb[5].mxu1 }
 0x101   :  { %v753_v49 = vadd.f32 %v1082_v45, %v967_v27  ;;  %v1085_v50 = vadd.f32 %v1084_v48, %v1083_v46  ;;  %v1110_v52 = vadd.f32 %v1109_v51, %v1108_v47  ;;  %v1111_v53 = vpop.f32.mrb[6].mxu1 }
 0x102   :  { %v1112_v55 = vpop.f32.mrb[7].mxu1 }
 0x103   :  { %v756_v54 = vadd.f32 %v1085_v50, %v967_v27  ;;  %v802_v56 = vadd.f32 %v1110_v52, %v753_v49  ;;  %v1113_v57 = vadd.f32 %v1112_v55, %v1111_v53 }
 0x105   :  { %v805_v58 = vadd.f32 %v1113_v57, %v756_v54 }
 0x115   :  { %v1130_v59 = vpop.f32.mrb[8].mxu0 }
 0x116   :  { %v1131_v60 = vpop.f32.mrb[9].mxu0 }
 0x117   :  { %v1132_v61 = vadd.f32 %v1131_v60, %v1130_v59  ;;  %v1133_v62 = vpop.f32.mrb[10].mxu0  ;;  %v1158_v63 = vpop.f32.mrb[8].mxu1 }
 0x118   :  { %v1134_v0 = vpop.f32.mrb[11].mxu0  ;;  %v1159_v3 = vpop.f32.mrb[9].mxu1 }
 0x119   :  { %v843_v1 = vadd.f32 %v1132_v61, %v794_v40  ;;  %v1135_v2 = vadd.f32 %v1134_v0, %v1133_v62  ;;  %v1160_v4 = vadd.f32 %v1159_v3, %v1158_v63  ;;  %v1161_v5 = vpop.f32.mrb[10].mxu1 }
 0x11a   :  { %v1162_v7 = vpop.f32.mrb[11].mxu1 }
 0x11b   :  { %v846_v6 = vadd.f32 %v1135_v2, %v797_v42  ;;  %v1163_v8 = vadd.f32 %v1162_v7, %v1161_v5  ;;  %v892_v9 = vadd.f32 %v1160_v4, %v843_v1 }
 0x11d   :  { %v1136_v10 = vpop.f32.mrb[12].mxu0  ;;  %v895_v12 = vadd.f32 %v1163_v8, %v846_v6 }
 0x11e   :  { %v1137_v11 = vpop.f32.mrb[13].mxu0 }
 0x11f   :  { %v1138_v13 = vadd.f32 %v1137_v11, %v1136_v10  ;;  %v1139_v14 = vpop.f32.mrb[14].mxu0  ;;  %v1164_v15 = vpop.f32.mrb[12].mxu1 }
 0x120   :  { %v1140_v16 = vpop.f32.mrb[15].mxu0  ;;  %v1165_v19 = vpop.f32.mrb[13].mxu1 }
 0x121   :  { %v851_v17 = vadd.f32 %v1138_v13, %v802_v56  ;;  %v1141_v18 = vadd.f32 %v1140_v16, %v1139_v14  ;;  %v1166_v20 = vadd.f32 %v1165_v19, %v1164_v15  ;;  %v1167_v21 = vpop.f32.mrb[14].mxu1 }
 0x122   :  { %v1168_v23 = vpop.f32.mrb[15].mxu1 }
 0x123   :  { %v854_v22 = vadd.f32 %v1141_v18, %v805_v58  ;;  %v1169_v24 = vadd.f32 %v1168_v23, %v1167_v21  ;;  %v900_v25 = vadd.f32 %v1166_v20, %v851_v17 }
 0x125   :  { %v903_v26 = vadd.f32 %v1169_v24, %v854_v22 }
 0x135   :  { %v1198_v27 = vpop.f32.mrb[16].mxu0 }
 0x136   :  { %v949_v28 = vadd.f32 %v1198_v27, %v900_v25  ;;  %v940_v29 = vpop.f32.mrb[17].mxu0 }
 0x137   :  { %v941_v30 = vadd.f32 %v940_v29, %v892_v9  ;;  %v1199_v31 = vpop.f32.mrb[18].mxu0 }
 0x138   :  { %v957_v32 = vmax.f32 %v949_v28, 0.0  ;;  %v952_v33 = vadd.f32 %v1199_v31, %v903_v26  ;;  %v943_v34 = vpop.f32.mrb[19].mxu0 }
 0x139   :  { %v955_v35 = vmax.f32 %v941_v30, 0.0  ;;  %v944_v36 = vadd.f32 %v943_v34, %v895_v12 }
 0x13a   :  { %961 = vst [vmem:[%s1606_s3 + $0x10] sm:$0xff] %v957_v32  ;;  %v958_v37 = vmax.f32 %v952_v33, 0.0 }
 0x13b   :  { %959 = vst [vmem:[%s1606_s3] sm:$0xff] %v955_v35  ;;  %v956_v38 = vmax.f32 %v944_v36, 0.0 }
 0x13c   :  { %962 = vst [vmem:[%s1606_s3 + $0x18] sm:$0xff] %v958_v37 }
 0x13d   :  { %960 = vst [vmem:[%s1606_s3 + $0x8] sm:$0xff] %v956_v38 }

// kernel: extractor_forward.19
= control target key start
LH: loop header
LB: loop body
LE: loop exit
PB: predicated region body
PF: predicated region fallthrough
CT: control target
= control target key end

     0   :  { %s1631_s1 = inlined_call_operand.vmem [shape: bf16[1152,128], index: 1, kind: input, shape index: {}]   ;;  %s1632_s0 = inlined_call_operand.vmem [shape: bf16[32,1152], index: 0, kind: input, shape index: {}]   ;;  %s1633_s2 = inlined_call_operand.vmem [shape: f32[1,128], index: 2, kind: input, shape index: {}]   ;;  %s1634_s3 = inlined_call_operand.vmem [shape: f32[32,128], index: 3, kind: input, shape index: {}]   ;;  %s1635_s4 = inlined_call_operand.vmem [shape: f32[32,128], index: 4, kind: output, shape index: {}]  }
   0x1   :  { %v1211_v0 = vld [vmem:[%s1631_s1 + $0x40] sm:$0xff]   ;;  %v1215_v4 = vld [vmem:[%s1631_s1 + $0x48] sm:$0xff]   ;;  %v1219_v8 = vld [vmem:[%s1631_s1 + $0x50] sm:$0xff]  }
   0x2   :  { %v1212_v1 = vld [vmem:[%s1631_s1] sm:$0xff]   ;;  %1069 = vmatprep.subr.bf16.mxu0 %v1211_v0  ;;  %v1216_v5 = vld [vmem:[%s1631_s1 + $0x8] sm:$0xff]   ;;  %v1220_v9 = vld [vmem:[%s1631_s1 + $0x10] sm:$0xff]  }
   0x3   :  { %v1213_v2 = vld [vmem:[%s1631_s1 + $0xc0] sm:$0xff]   ;;  %1070 = vmatpush3.bf16.msra.mxu0 %v1212_v1  ;;  %v1217_v6 = vld [vmem:[%s1631_s1 + $0xc8] sm:$0xff]   ;;  %v1221_v10 = vld [vmem:[%s1631_s1 + $0xd0] sm:$0xff]  }
   0x4   :  { %v1214_v3 = vld [vmem:[%s1631_s1 + $0x80] sm:$0xff]   ;;  %1097 = vmatprep.subr.bf16.mxu1 %v1213_v2  ;;  %1071 = vmatprep.subr.bf16.mxu0 %v1215_v4  ;;  %v1218_v7 = vld [vmem:[%s1631_s1 + $0x88] sm:$0xff]   ;;  %v1222_v11 = vld [vmem:[%s1631_s1 + $0x90] sm:$0xff]  }
   0x5   :  { %1098 = vmatpush3.bf16.msra.mxu1 %v1214_v3  ;;  %v1223_v12 = vld [vmem:[%s1631_s1 + $0x58] sm:$0xff]   ;;  %v1227_v16 = vld [vmem:[%s1631_s1 + $0x60] sm:$0xff]   ;;  %v1231_v20 = vld [vmem:[%s1631_s1 + $0x68] sm:$0xff]  }
   0x6   :  { %1099 = vmatprep.subr.bf16.mxu1 %v1217_v6  ;;  %v1224_v13 = vld [vmem:[%s1631_s1 + $0x18] sm:$0xff]   ;;  %v1228_v17 = vld [vmem:[%s1631_s1 + $0x20] sm:$0xff]   ;;  %v1232_v21 = vld [vmem:[%s1631_s1 + $0x28] sm:$0xff]  }
   0x7   :  { %1072 = vmatpush3.bf16.msra.mxu0 %v1216_v5  ;;  %v1225_v14 = vld [vmem:[%s1631_s1 + $0xd8] sm:$0xff]   ;;  %v1229_v18 = vld [vmem:[%s1631_s1 + $0xe0] sm:$0xff]   ;;  %v1233_v22 = vld [vmem:[%s1631_s1 + $0xe8] sm:$0xff]  }
   0x8   :  { %1073 = vmatprep.subr.bf16.mxu0 %v1219_v8  ;;  %v1226_v15 = vld [vmem:[%s1631_s1 + $0x98] sm:$0xff]   ;;  %v1230_v19 = vld [vmem:[%s1631_s1 + $0xa0] sm:$0xff]   ;;  %v1234_v23 = vld [vmem:[%s1631_s1 + $0xa8] sm:$0xff]  }
   0x9   :  { %1100 = vmatpush3.bf16.msra.mxu1 %v1218_v7  ;;  %v1235_v24 = vld [vmem:[%s1631_s1 + $0x70] sm:$0xff]   ;;  %v1239_v28 = vld [vmem:[%s1631_s1 + $0x78] sm:$0xff]   ;;  %v1242_v31 = vld [vmem:[%s1632_s0] ss:$36 sps:$4 sm:$0xff]  }
   0xa   :  { %1101 = vmatprep.subr.bf16.mxu1 %v1221_v10  ;;  %v1236_v25 = vld [vmem:[%s1631_s1 + $0x30] sm:$0xff]   ;;  %v1240_v29 = vld [vmem:[%s1631_s1 + $0x38] sm:$0xff]   ;;  %v1244_v32 = vld [vmem:[%s1632_s0 + $0x4] ss:$36 sps:$4 sm:$0xff]  }
   0xb   :  { %1074 = vmatpush3.bf16.msra.mxu0 %v1220_v9  ;;  %v1237_v26 = vld [vmem:[%s1631_s1 + $0xf0] sm:$0xff]   ;;  %v1241_v30 = vld [vmem:[%s1631_s1 + $0xf8] sm:$0xff]   ;;  %745 = vmatprep.mubr.bf16.mxu0 %v1244_v32  ;;  %v1246_v34 = vld [vmem:[%s1631_s1 + $0x140] sm:$0xff]  }
   0xc   :  { %1075 = vmatprep.subr.bf16.mxu0 %v1223_v12  ;;  %v1238_v27 = vld [vmem:[%s1631_s1 + $0xb0] sm:$0xff]   ;;  %v1245_v33 = vld [vmem:[%s1631_s1 + $0xb8] sm:$0xff]   ;;  %v1247_v35 = vld [vmem:[%s1632_s0 + $0x8] ss:$36 sps:$4 sm:$0xff]  }
   0xd   :  { %1102 = vmatpush3.bf16.msra.mxu1 %v1222_v11  ;;  %v1249_v36 = vld [vmem:[%s1632_s0 + $0xc] ss:$36 sps:$4 sm:$0xff]   ;;  %v1250_v37 = vld [vmem:[%s1631_s1 + $0x100] sm:$0xff]   ;;  %v1261_v48 = vld [vmem:[%s1631_s1 + $0x158] sm:$0xff]  }
   0xe   :  { %1103 = vmatprep.subr.bf16.mxu1 %v1225_v14  ;;  %794 = vmatprep.mubr.bf16.mxu1 %v1249_v36  ;;  %v1251_v38 = vld [vmem:[%s1631_s1 + $0x1c0] sm:$0xff]   ;;  %v1253_v40 = vld [vmem:[%s1631_s1 + $0x148] sm:$0xff]   ;;  %v1257_v44 = vld [vmem:[%s1631_s1 + $0x150] sm:$0xff]  }
   0xf   :  { %1076 = vmatpush3.bf16.msra.mxu0 %v1224_v13  ;;  %v1252_v39 = vld [vmem:[%s1631_s1 + $0x180] sm:$0xff]   ;;  %v1254_v41 = vld [vmem:[%s1631_s1 + $0x108] sm:$0xff]   ;;  %v1258_v45 = vld [vmem:[%s1631_s1 + $0x110] sm:$0xff]  }
  0x10   :  { %1077 = vmatprep.subr.bf16.mxu0 %v1227_v16  ;;  %v1255_v42 = vld [vmem:[%s1631_s1 + $0x1c8] sm:$0xff]   ;;  %v1259_v46 = vld [vmem:[%s1631_s1 + $0x1d0] sm:$0xff]   ;;  %v1262_v49 = vld [vmem:[%s1631_s1 + $0x118] sm:$0xff]  }
  0x11   :  { %1104 = vmatpush3.bf16.msra.mxu1 %v1226_v15  ;;  %v1256_v43 = vld [vmem:[%s1631_s1 + $0x188] sm:$0xff]   ;;  %v1260_v47 = vld [vmem:[%s1631_s1 + $0x190] sm:$0xff]   ;;  %v1263_v50 = vld [vmem:[%s1631_s1 + $0x1d8] sm:$0xff]  }
  0x12   :  { %1105 = vmatprep.subr.bf16.mxu1 %v1229_v18  ;;  %v1264_v51 = vld [vmem:[%s1631_s1 + $0x198] sm:$0xff]   ;;  %v1265_v52 = vld [vmem:[%s1631_s1 + $0x160] sm:$0xff]   ;;  %v1269_v56 = vld [vmem:[%s1631_s1 + $0x168] sm:$0xff]  }
  0x13   :  { %1078 = vmatpush3.bf16.msra.mxu0 %v1228_v17  ;;  %v1266_v53 = vld [vmem:[%s1631_s1 + $0x120] sm:$0xff]   ;;  %v1270_v57 = vld [vmem:[%s1632_s0 + $0x4c] ss:$36 sps:$4 sm:$0xff]   ;;  %v1275_v61 = vld [vmem:[%s1632_s0 + $0x54] ss:$36 sps:$4 sm:$0xff]  }
  0x14   :  { %1079 = vmatprep.subr.bf16.mxu0 %v1231_v20  ;;  %v1267_v54 = vld [vmem:[%s1631_s1 + $0x1e0] sm:$0xff]   ;;  %v1272_v58 = vld [vmem:[%s1631_s1 + $0x128] sm:$0xff]   ;;  %v1278_v63 = vld [vmem:[%s1632_s0 + $0x50] ss:$36 sps:$4 sm:$0xff]  }
  0x15   :  { %1106 = vmatpush3.bf16.msra.mxu1 %v1230_v19  ;;  %v1268_v55 = vld [vmem:[%s1631_s1 + $0x1a0] sm:$0xff]   ;;  %v1273_v59 = vld [vmem:[%s1632_s0 + $0x48] ss:$36 sps:$4 sm:$0xff]   ;;  %v1279_v0 = vld [vmem:[%s1631_s1 + $0x170] sm:$0xff]  }
  0x16   :  { %1107 = vmatprep.subr.bf16.mxu1 %v1233_v22  ;;  %v1274_v60 = vld [vmem:[%s1631_s1 + $0x1e8] sm:$0xff]   ;;  %v1280_v1 = vld [vmem:[%s1631_s1 + $0x130] sm:$0xff]   ;;  %v1283_v4 = vld [vmem:[%s1631_s1 + $0x178] sm:$0xff]  }
  0x17   :  { %1080 = vmatpush3.bf16.msra.mxu0 %v1232_v21  ;;  %v1277_v62 = vld [vmem:[%s1631_s1 + $0x1a8] sm:$0xff]   ;;  %v1281_v2 = vld [vmem:[%s1631_s1 + $0x1f0] sm:$0xff]   ;;  %v1284_v5 = vld [vmem:[%s1631_s1 + $0x138] sm:$0xff]  }
  0x18   :  { %1081 = vmatprep.subr.bf16.mxu0 %v1235_v24  ;;  %v1282_v3 = vld [vmem:[%s1631_s1 + $0x1b0] sm:$0xff]   ;;  %v1285_v6 = vld [vmem:[%s1631_s1 + $0x1f8] sm:$0xff]   ;;  %v1290_v10 = vld [vmem:[%s1631_s1 + $0x200] sm:$0xff]  }
  0x19   :  { %1108 = vmatpush3.bf16.msra.mxu1 %v1234_v23  ;;  %v1286_v7 = vld [vmem:[%s1632_s0 + $0x10] ss:$36 sps:$4 sm:$0xff]   ;;  %v1289_v9 = vld [vmem:[%s1631_s1 + $0x1b8] sm:$0xff]   ;;  %v1294_v13 = vld [vmem:[%s1631_s1 + $0x208] sm:$0xff]  }
  0x1a   :  { %1109 = vmatprep.subr.bf16.mxu1 %v1237_v26  ;;  %v1288_v8 = vld [vmem:[%s1632_s0 + $0x14] ss:$36 sps:$4 sm:$0xff]   ;;  %v1293_v12 = vld [vmem:[%s1632_s0 + $0x1c] ss:$36 sps:$4 sm:$0xff]   ;;  %v1299_v17 = vld [vmem:[%s1632_s0 + $0x64] ss:$36 sps:$4 sm:$0xff]  }
  0x1b   :  { %1082 = vmatpush3.bf16.msra.mxu0 %v1236_v25  ;;  %v1291_v11 = vld [vmem:[%s1632_s0 + $0x18] ss:$36 sps:$4 sm:$0xff]   ;;  %v1298_v16 = vld [vmem:[%s1631_s1 + $0x210] sm:$0xff]   ;;  %v1301_v18 = vld [vmem:[%s1632_s0 + $0x60] ss:$36 sps:$4 sm:$0xff]  }
  0x1c   :  { %1083 = vmatprep.subr.bf16.mxu0 %v1239_v28  ;;  %v1295_v14 = vld [vmem:[%s1632_s0 + $0x5c] ss:$36 sps:$4 sm:$0xff]   ;;  %v1304_v22 = vld [vmem:[%s1631_s1 + $0x228] sm:$0xff]   ;;  %v1305_v23 = vld [vmem:[%s1631_s1 + $0x230] sm:$0xff]  }
  0x1d   :  { %1110 = vmatpush3.bf16.msra.mxu1 %v1238_v27  ;;  %v1297_v15 = vld [vmem:[%s1632_s0 + $0x58] ss:$36 sps:$4 sm:$0xff]   ;;  %v1303_v20 = vld [vmem:[%s1631_s1 + $0x220] sm:$0xff]   ;;  %v1308_v25 = vld [vmem:[%s1632_s0 + $0x68] ss:$36 sps:$4 sm:$0xff]  }
  0x1e   :  { %1111 = vmatprep.subr.bf16.mxu1 %v1241_v30  ;;  %v1302_v19 = vld [vmem:[%s1631_s1 + $0x218] sm:$0xff]   ;;  %v1307_v21 = vld [vmem:[%s1632_s0 + $0x20] ss:$36 sps:$4 sm:$0xff]  }
  0x1f   :  { %1084 = vmatpush3.bf16.msra.mxu0 %v1240_v29  ;;  %v1306_v24 = vld [vmem:[%s1631_s1 + $0x238] sm:$0xff]   ;;  %v978_v27 = vld [vmem:[%s1633_s2] ss:$0 sm:$0xff] }
  0x20   :  { %1125 = vmatprep.subr.bf16.mxu0 %v1246_v34 }
  0x21   :  { %1112 = vmatpush3.bf16.msra.mxu1 %v1245_v33 }
  0x22   :  { %746 = vmatmul.mubr.bf16.vlgmr.msra.gmra.mrb[0].mxu0 %v1242_v31  ;;  %1153 = vmatprep.subr.bf16.mxu1 %v1251_v38 }
  0x23   :  { %1126 = vmatpush3.bf16.msra.mxu0 %v1250_v37  ;;  %753 = vmatprep.mubr.bf16.mxu0 %v1270_v57 }
  0x24   :  { %795 = vmatmul.mubr.bf16.vlgmr.msra.gmra.mrb[0].mxu1 %v1247_v35  ;;  %1127 = vmatprep.subr.bf16.mxu0 %v1253_v40 }
  0x25   :  { %1154 = vmatpush3.bf16.msra.mxu1 %v1252_v39  ;;  %802 = vmatprep.mubr.bf16.mxu1 %v1275_v61 }
  0x26   :  { %1155 = vmatprep.subr.bf16.mxu1 %v1255_v42 }
  0x27   :  { %1128 = vmatpush3.bf16.msra.mxu0 %v1254_v41 }
  0x28   :  { %1129 = vmatprep.subr.bf16.mxu0 %v1257_v44 }
  0x29   :  { %1156 = vmatpush3.bf16.msra.mxu1 %v1256_v43 }
  0x2a   :  { %1157 = vmatprep.subr.bf16.mxu1 %v1259_v46  ;;  %754 = vmatmul.mubr.bf16.gmra.mrb[4].mxu0 %v1273_v59 }
  0x2b   :  { %1130 = vmatpush3.bf16.msra.mxu0 %v1258_v45  ;;  %843 = vmatprep.mubr.bf16.mxu0 %v1288_v8 }
  0x2c   :  { %1131 = vmatprep.subr.bf16.mxu0 %v1261_v48  ;;  %803 = vmatmul.mubr.bf16.gmra.mrb[4].mxu1 %v1278_v63 }
  0x2d   :  { %1158 = vmatpush3.bf16.msra.mxu1 %v1260_v47  ;;  %892 = vmatprep.mubr.bf16.mxu1 %v1293_v12 }
  0x2e   :  { %1159 = vmatprep.subr.bf16.mxu1 %v1263_v50 }
  0x2f   :  { %1132 = vmatpush3.bf16.msra.mxu0 %v1262_v49 }
  0x30   :  { %1133 = vmatprep.subr.bf16.mxu0 %v1265_v52 }
  0x31   :  { %1160 = vmatpush3.bf16.msra.mxu1 %v1264_v51 }
  0x32   :  { %1161 = vmatprep.subr.bf16.mxu1 %v1267_v54 }
  0x33   :  { %1134 = vmatpush3.bf16.msra.mxu0 %v1266_v53 }
  0x34   :  { %1135 = vmatprep.subr.bf16.mxu0 %v1269_v56 }
  0x35   :  { %1162 = vmatpush3.bf16.msra.mxu1 %v1268_v55 }
  0x36   :  { %1163 = vmatprep.subr.bf16.mxu1 %v1274_v60 }
  0x37   :  { %1136 = vmatpush3.bf16.msra.mxu0 %v1272_v58 }
  0x38   :  { %1137 = vmatprep.subr.bf16.mxu0 %v1279_v0 }
  0x39   :  { %1164 = vmatpush3.bf16.msra.mxu1 %v1277_v62 }
  0x3a   :  { %1165 = vmatprep.subr.bf16.mxu1 %v1281_v2 }
  0x3b   :  { %1138 = vmatpush3.bf16.msra.mxu0 %v1280_v1 }
  0x3c   :  { %1139 = vmatprep.subr.bf16.mxu0 %v1283_v4 }
  0x3d   :  { %1166 = vmatpush3.bf16.msra.mxu1 %v1282_v3 }
  0x3e   :  { %1167 = vmatprep.subr.bf16.mxu1 %v1285_v6 }
  0x3f   :  { %1140 = vmatpush3.bf16.msra.mxu0 %v1284_v5 }
  0x40   :  { %1191 = vmatprep.subr.bf16.mxu0 %v1290_v10 }
  0x41   :  { %1168 = vmatpush3.bf16.msra.mxu1 %v1289_v9 }
  0x42   :  { %844 = vmatmul.mubr.bf16.vlgmr.msra.gmra.mrb[8].mxu0 %v1286_v7 }
  0x43   :  { %1192 = vmatpush3.bf16.msra.mxu0 %v1290_v10  ;;  %851 = vmatprep.mubr.bf16.mxu0 %v1295_v14 }
  0x44   :  { %893 = vmatmul.mubr.bf16.vlgmr.msra.gmra.mrb[8].mxu1 %v1291_v11  ;;  %1193 = vmatprep.subr.bf16.mxu0 %v1294_v13 }
  0x45   :  { %900 = vmatprep.mubr.bf16.mxu1 %v1299_v17 }
  0x47   :  { %1194 = vmatpush3.bf16.msra.mxu0 %v1294_v13 }
  0x48   :  { %1195 = vmatprep.subr.bf16.mxu0 %v1298_v16 }
  0x4a   :  { %852 = vmatmul.mubr.bf16.gmra.mrb[12].mxu0 %v1297_v15 }
  0x4b   :  { %1196 = vmatpush3.bf16.msra.mxu0 %v1298_v16  ;;  %1207 = vmatprep.mubr.bf16.mxu0 %v1307_v21 }
  0x4c   :  { %901 = vmatmul.mubr.bf16.gmra.mrb[12].mxu1 %v1301_v18  ;;  %1197 = vmatprep.subr.bf16.mxu0 %v1302_v19 }
  0x4f   :  { %1198 = vmatpush3.bf16.msra.mxu0 %v1302_v19 }
  0x50   :  { %1199 = vmatprep.subr.bf16.mxu0 %v1303_v20 }
  0x53   :  { %1200 = vmatpush3.bf16.msra.mxu0 %v1303_v20 }
  0x54   :  { %1201 = vmatprep.subr.bf16.mxu0 %v1304_v22 }
  0x57   :  { %1202 = vmatpush3.bf16.msra.mxu0 %v1304_v22 }
  0x58   :  { %1203 = vmatprep.subr.bf16.mxu0 %v1305_v23 }
  0x5b   :  { %1204 = vmatpush3.bf16.msra.mxu0 %v1305_v23 }
  0x5c   :  { %1205 = vmatprep.subr.bf16.mxu0 %v1306_v24 }
  0x5f   :  { %1206 = vmatpush3.bf16.msra.mxu0 %v1306_v24 }
  0x62   :  { %1208 = vmatmul.mubr.bf16.vlgmr.msra.gmra.mrb[16].mxu0 %v1308_v25 }
  0xf5   :  { %v1085_v26 = vpop.f32.mrb[0].mxu0 }
  0xf6   :  { %v1086_v28 = vpop.f32.mrb[1].mxu0 }
  0xf7   :  { %v1087_v29 = vadd.f32 %v1086_v28, %v1085_v26  ;;  %v1088_v30 = vpop.f32.mrb[2].mxu0  ;;  %v1113_v31 = vpop.f32.mrb[0].mxu1  ;;  %v960_v28 = vld [vmem:[%s1634_s3 + $0x10] sm:$0xff] }
  0xf8   :  { %v1089_v32 = vpop.f32.mrb[3].mxu0  ;;  %v1114_v35 = vpop.f32.mrb[1].mxu1 }
  0xf9   :  { %v748_v33 = vadd.f32 %v1087_v29, %v978_v27  ;;  %v1090_v34 = vadd.f32 %v1089_v32, %v1088_v30  ;;  %v1115_v36 = vadd.f32 %v1114_v35, %v1113_v31  ;;  %v1116_v37 = vpop.f32.mrb[2].mxu1  ;;  %v958_v31 = vld [vmem:[%s1634_s3] sm:$0xff] }
  0xfa   :  { %v1117_v39 = vpop.f32.mrb[3].mxu1 }
  0xfb   :  { %v751_v38 = vadd.f32 %v1090_v34, %v978_v27  ;;  %v797_v40 = vadd.f32 %v1115_v36, %v748_v33  ;;  %v1118_v41 = vadd.f32 %v1117_v39, %v1116_v37  ;;  %v961_v34 = vld [vmem:[%s1634_s3 + $0x18] sm:$0xff] }
  0xfd   :  { %v800_v42 = vadd.f32 %v1118_v41, %v751_v38  ;;  %v1091_v43 = vpop.f32.mrb[4].mxu0  ;;  %v959_v38 = vld [vmem:[%s1634_s3 + $0x8] sm:$0xff] }
  0xfe   :  { %v1092_v44 = vpop.f32.mrb[5].mxu0 }
  0xff   :  { %v1093_v45 = vadd.f32 %v1092_v44, %v1091_v43  ;;  %v1094_v46 = vpop.f32.mrb[6].mxu0  ;;  %v1119_v47 = vpop.f32.mrb[4].mxu1 }
 0x100   :  { %v1095_v48 = vpop.f32.mrb[7].mxu0  ;;  %v1120_v51 = vpop.f32.mrb[5].mxu1 }
 0x101   :  { %v756_v49 = vadd.f32 %v1093_v45, %v978_v27  ;;  %v1096_v50 = vadd.f32 %v1095_v48, %v1094_v46  ;;  %v1121_v52 = vadd.f32 %v1120_v51, %v1119_v47  ;;  %v1122_v53 = vpop.f32.mrb[6].mxu1 }
 0x102   :  { %v1123_v55 = vpop.f32.mrb[7].mxu1 }
 0x103   :  { %v759_v54 = vadd.f32 %v1096_v50, %v978_v27  ;;  %v805_v56 = vadd.f32 %v1121_v52, %v756_v49  ;;  %v1124_v57 = vadd.f32 %v1123_v55, %v1122_v53 }
 0x105   :  { %v808_v58 = vadd.f32 %v1124_v57, %v759_v54 }
 0x115   :  { %v1141_v59 = vpop.f32.mrb[8].mxu0 }
 0x116   :  { %v1142_v60 = vpop.f32.mrb[9].mxu0 }
 0x117   :  { %v1143_v61 = vadd.f32 %v1142_v60, %v1141_v59  ;;  %v1144_v62 = vpop.f32.mrb[10].mxu0  ;;  %v1169_v63 = vpop.f32.mrb[8].mxu1 }
 0x118   :  { %v1145_v0 = vpop.f32.mrb[11].mxu0  ;;  %v1170_v3 = vpop.f32.mrb[9].mxu1 }
 0x119   :  { %v846_v1 = vadd.f32 %v1143_v61, %v797_v40  ;;  %v1146_v2 = vadd.f32 %v1145_v0, %v1144_v62  ;;  %v1171_v4 = vadd.f32 %v1170_v3, %v1169_v63  ;;  %v1172_v5 = vpop.f32.mrb[10].mxu1 }
 0x11a   :  { %v1173_v7 = vpop.f32.mrb[11].mxu1 }
 0x11b   :  { %v849_v6 = vadd.f32 %v1146_v2, %v800_v42  ;;  %v1174_v8 = vadd.f32 %v1173_v7, %v1172_v5  ;;  %v895_v9 = vadd.f32 %v1171_v4, %v846_v1 }
 0x11d   :  { %v1147_v10 = vpop.f32.mrb[12].mxu0  ;;  %v898_v12 = vadd.f32 %v1174_v8, %v849_v6 }
 0x11e   :  { %v1148_v11 = vpop.f32.mrb[13].mxu0 }
 0x11f   :  { %v1149_v13 = vadd.f32 %v1148_v11, %v1147_v10  ;;  %v1150_v14 = vpop.f32.mrb[14].mxu0  ;;  %v1175_v15 = vpop.f32.mrb[12].mxu1 }
 0x120   :  { %v1151_v16 = vpop.f32.mrb[15].mxu0  ;;  %v1176_v19 = vpop.f32.mrb[13].mxu1 }
 0x121   :  { %v854_v17 = vadd.f32 %v1149_v13, %v805_v56  ;;  %v1152_v18 = vadd.f32 %v1151_v16, %v1150_v14  ;;  %v1177_v20 = vadd.f32 %v1176_v19, %v1175_v15  ;;  %v1178_v21 = vpop.f32.mrb[14].mxu1 }
 0x122   :  { %v1179_v23 = vpop.f32.mrb[15].mxu1 }
 0x123   :  { %v857_v22 = vadd.f32 %v1152_v18, %v808_v58  ;;  %v1180_v24 = vadd.f32 %v1179_v23, %v1178_v21  ;;  %v903_v25 = vadd.f32 %v1177_v20, %v854_v17 }
 0x125   :  { %v906_v26 = vadd.f32 %v1180_v24, %v857_v22 }
 0x135   :  { %v1209_v27 = vpop.f32.mrb[16].mxu0 }
 0x136   :  { %v952_v29 = vadd.f32 %v1209_v27, %v903_v25  ;;  %v943_v30 = vpop.f32.mrb[17].mxu0 }
 0x137   :  { %v944_v32 = vadd.f32 %v943_v30, %v895_v9  ;;  %v1210_v33 = vpop.f32.mrb[18].mxu0 }
 0x138   :  { %v964_v35 = vadd.f32 %v960_v28, %v952_v29  ;;  %v955_v36 = vadd.f32 %v1210_v33, %v906_v26  ;;  %v946_v37 = vpop.f32.mrb[19].mxu0 }
 0x139   :  { %v962_v39 = vadd.f32 %v958_v31, %v944_v32  ;;  %v947_v40 = vadd.f32 %v946_v37, %v898_v12 }
 0x13a   :  { %v968_v41 = vmax.f32 %v964_v35, 0.0  ;;  %v965_v42 = vadd.f32 %v961_v34, %v955_v36 }
 0x13b   :  { %v966_v43 = vmax.f32 %v962_v39, 0.0  ;;  %v963_v44 = vadd.f32 %v959_v38, %v947_v40 }
 0x13c   :  { %972 = vst [vmem:[%s1635_s4 + $0x10] sm:$0xff] %v968_v41  ;;  %v969_v45 = vmax.f32 %v965_v42, 0.0 }
 0x13d   :  { %970 = vst [vmem:[%s1635_s4] sm:$0xff] %v966_v43  ;;  %v967_v46 = vmax.f32 %v963_v44, 0.0 }
 0x13e   :  { %973 = vst [vmem:[%s1635_s4 + $0x18] sm:$0xff] %v969_v45 }
 0x13f   :  { %971 = vst [vmem:[%s1635_s4 + $0x8] sm:$0xff] %v967_v46 }

// kernel: extractor_forward.21
= control target key start
LH: loop header
LB: loop body
LE: loop exit
PB: predicated region body
PF: predicated region fallthrough
CT: control target
= control target key end

     0   :  { %s1782_s0 = inlined_call_operand.vmem [shape: bf16[32,1152], index: 0, kind: input, shape index: {}]   ;;  %s1783_s1 = inlined_call_operand.vmem [shape: bf16[1152,128], index: 1, kind: input, shape index: {}]   ;;  %s1784_s2 = inlined_call_operand.vmem [shape: f32[1,128], index: 2, kind: input, shape index: {}]   ;;  %s1785_s3 = inlined_call_operand.vmem [shape: f32[32,128], index: 3, kind: input, shape index: {}]   ;;  %s1786_s4 = inlined_call_operand.vmem [shape: f32[2,32], index: 4, kind: input, shape index: {}]   ;;  %s1787_s5 = inlined_call_operand.hbm [shape: f32[2,128], index: 5, kind: output, shape index: {}]  }
   0x1   :  { %v1324_v0 = vld [vmem:[%s1783_s1 + $0x40] sm:$0xff]   ;;  %v1328_v4 = vld [vmem:[%s1783_s1 + $0x48] sm:$0xff]   ;;  %v1332_v8 = vld [vmem:[%s1783_s1 + $0x50] sm:$0xff]  }
   0x2   :  { %v1325_v1 = vld [vmem:[%s1783_s1] sm:$0xff]   ;;  %1156 = vmatprep.subr.bf16.mxu0 %v1324_v0  ;;  %v1329_v5 = vld [vmem:[%s1783_s1 + $0x8] sm:$0xff]   ;;  %v1333_v9 = vld [vmem:[%s1783_s1 + $0x10] sm:$0xff]  }
   0x3   :  { %v1326_v2 = vld [vmem:[%s1783_s1 + $0xc0] sm:$0xff]   ;;  %1157 = vmatpush3.bf16.msra.mxu0 %v1325_v1  ;;  %v1330_v6 = vld [vmem:[%s1783_s1 + $0xc8] sm:$0xff]   ;;  %v1334_v10 = vld [vmem:[%s1783_s1 + $0xd0] sm:$0xff]  }
   0x4   :  { %v1327_v3 = vld [vmem:[%s1783_s1 + $0x80] sm:$0xff]   ;;  %1184 = vmatprep.subr.bf16.mxu1 %v1326_v2  ;;  %1158 = vmatprep.subr.bf16.mxu0 %v1328_v4  ;;  %v1331_v7 = vld [vmem:[%s1783_s1 + $0x88] sm:$0xff]   ;;  %v1335_v11 = vld [vmem:[%s1783_s1 + $0x90] sm:$0xff]  }
   0x5   :  { %1185 = vmatpush3.bf16.msra.mxu1 %v1327_v3  ;;  %v1336_v12 = vld [vmem:[%s1783_s1 + $0x58] sm:$0xff]   ;;  %v1340_v16 = vld [vmem:[%s1783_s1 + $0x60] sm:$0xff]   ;;  %v1344_v20 = vld [vmem:[%s1783_s1 + $0x68] sm:$0xff]  }
   0x6   :  { %1186 = vmatprep.subr.bf16.mxu1 %v1330_v6  ;;  %v1337_v13 = vld [vmem:[%s1783_s1 + $0x18] sm:$0xff]   ;;  %v1341_v17 = vld [vmem:[%s1783_s1 + $0x20] sm:$0xff]   ;;  %v1345_v21 = vld [vmem:[%s1783_s1 + $0x28] sm:$0xff]  }
   0x7   :  { %1159 = vmatpush3.bf16.msra.mxu0 %v1329_v5  ;;  %v1338_v14 = vld [vmem:[%s1783_s1 + $0xd8] sm:$0xff]   ;;  %v1342_v18 = vld [vmem:[%s1783_s1 + $0xe0] sm:$0xff]   ;;  %v1346_v22 = vld [vmem:[%s1783_s1 + $0xe8] sm:$0xff]  }
   0x8   :  { %1160 = vmatprep.subr.bf16.mxu0 %v1332_v8  ;;  %v1339_v15 = vld [vmem:[%s1783_s1 + $0x98] sm:$0xff]   ;;  %v1343_v19 = vld [vmem:[%s1783_s1 + $0xa0] sm:$0xff]   ;;  %v1347_v23 = vld [vmem:[%s1783_s1 + $0xa8] sm:$0xff]  }
   0x9   :  { %1187 = vmatpush3.bf16.msra.mxu1 %v1331_v7  ;;  %v1348_v24 = vld [vmem:[%s1783_s1 + $0x70] sm:$0xff]   ;;  %v1352_v28 = vld [vmem:[%s1783_s1 + $0x78] sm:$0xff]   ;;  %v1355_v31 = vld [vmem:[%s1782_s0] ss:$36 sps:$4 sm:$0xff]  }
   0xa   :  { %1188 = vmatprep.subr.bf16.mxu1 %v1334_v10  ;;  %v1349_v25 = vld [vmem:[%s1783_s1 + $0x30] sm:$0xff]   ;;  %v1353_v29 = vld [vmem:[%s1783_s1 + $0x38] sm:$0xff]   ;;  %v1357_v32 = vld [vmem:[%s1782_s0 + $0x4] ss:$36 sps:$4 sm:$0xff]  }
   0xb   :  { %1161 = vmatpush3.bf16.msra.mxu0 %v1333_v9  ;;  %v1350_v26 = vld [vmem:[%s1783_s1 + $0xf0] sm:$0xff]   ;;  %v1354_v30 = vld [vmem:[%s1783_s1 + $0xf8] sm:$0xff]   ;;  %749 = vmatprep.mubr.bf16.mxu0 %v1357_v32  ;;  %v1359_v34 = vld [vmem:[%s1783_s1 + $0x140] sm:$0xff]  }
   0xc   :  { %1162 = vmatprep.subr.bf16.mxu0 %v1336_v12  ;;  %v1351_v27 = vld [vmem:[%s1783_s1 + $0xb0] sm:$0xff]   ;;  %v1358_v33 = vld [vmem:[%s1783_s1 + $0xb8] sm:$0xff]   ;;  %v1360_v35 = vld [vmem:[%s1782_s0 + $0x8] ss:$36 sps:$4 sm:$0xff]  }
   0xd   :  { %1189 = vmatpush3.bf16.msra.mxu1 %v1335_v11  ;;  %v1362_v36 = vld [vmem:[%s1782_s0 + $0xc] ss:$36 sps:$4 sm:$0xff]   ;;  %v1363_v37 = vld [vmem:[%s1783_s1 + $0x100] sm:$0xff]   ;;  %v1374_v48 = vld [vmem:[%s1783_s1 + $0x158] sm:$0xff]  }
   0xe   :  { %1190 = vmatprep.subr.bf16.mxu1 %v1338_v14  ;;  %798 = vmatprep.mubr.bf16.mxu1 %v1362_v36  ;;  %v1364_v38 = vld [vmem:[%s1783_s1 + $0x1c0] sm:$0xff]   ;;  %v1366_v40 = vld [vmem:[%s1783_s1 + $0x148] sm:$0xff]   ;;  %v1370_v44 = vld [vmem:[%s1783_s1 + $0x150] sm:$0xff]  }
   0xf   :  { %1163 = vmatpush3.bf16.msra.mxu0 %v1337_v13  ;;  %v1365_v39 = vld [vmem:[%s1783_s1 + $0x180] sm:$0xff]   ;;  %v1367_v41 = vld [vmem:[%s1783_s1 + $0x108] sm:$0xff]   ;;  %v1371_v45 = vld [vmem:[%s1783_s1 + $0x110] sm:$0xff]  }
  0x10   :  { %1164 = vmatprep.subr.bf16.mxu0 %v1340_v16  ;;  %v1368_v42 = vld [vmem:[%s1783_s1 + $0x1c8] sm:$0xff]   ;;  %v1372_v46 = vld [vmem:[%s1783_s1 + $0x1d0] sm:$0xff]   ;;  %v1375_v49 = vld [vmem:[%s1783_s1 + $0x118] sm:$0xff]  }
  0x11   :  { %1191 = vmatpush3.bf16.msra.mxu1 %v1339_v15  ;;  %v1369_v43 = vld [vmem:[%s1783_s1 + $0x188] sm:$0xff]   ;;  %v1373_v47 = vld [vmem:[%s1783_s1 + $0x190] sm:$0xff]   ;;  %v1376_v50 = vld [vmem:[%s1783_s1 + $0x1d8] sm:$0xff]  }
  0x12   :  { %1192 = vmatprep.subr.bf16.mxu1 %v1342_v18  ;;  %v1377_v51 = vld [vmem:[%s1783_s1 + $0x198] sm:$0xff]   ;;  %v1378_v52 = vld [vmem:[%s1783_s1 + $0x160] sm:$0xff]   ;;  %v1382_v56 = vld [vmem:[%s1783_s1 + $0x168] sm:$0xff]  }
  0x13   :  { %1165 = vmatpush3.bf16.msra.mxu0 %v1341_v17  ;;  %v1379_v53 = vld [vmem:[%s1783_s1 + $0x120] sm:$0xff]   ;;  %v1383_v57 = vld [vmem:[%s1782_s0 + $0x4c] ss:$36 sps:$4 sm:$0xff]   ;;  %v1388_v61 = vld [vmem:[%s1782_s0 + $0x54] ss:$36 sps:$4 sm:$0xff]  }
  0x14   :  { %1166 = vmatprep.subr.bf16.mxu0 %v1344_v20  ;;  %v1380_v54 = vld [vmem:[%s1783_s1 + $0x1e0] sm:$0xff]   ;;  %v1385_v58 = vld [vmem:[%s1783_s1 + $0x128] sm:$0xff]   ;;  %v1391_v63 = vld [vmem:[%s1782_s0 + $0x50] ss:$36 sps:$4 sm:$0xff]  }
  0x15   :  { %1193 = vmatpush3.bf16.msra.mxu1 %v1343_v19  ;;  %v1381_v55 = vld [vmem:[%s1783_s1 + $0x1a0] sm:$0xff]   ;;  %v1386_v59 = vld [vmem:[%s1782_s0 + $0x48] ss:$36 sps:$4 sm:$0xff]   ;;  %v1392_v0 = vld [vmem:[%s1783_s1 + $0x170] sm:$0xff]  }
  0x16   :  { %1194 = vmatprep.subr.bf16.mxu1 %v1346_v22  ;;  %v1387_v60 = vld [vmem:[%s1783_s1 + $0x1e8] sm:$0xff]   ;;  %v1393_v1 = vld [vmem:[%s1783_s1 + $0x130] sm:$0xff]   ;;  %v1396_v4 = vld [vmem:[%s1783_s1 + $0x178] sm:$0xff]  }
  0x17   :  { %1167 = vmatpush3.bf16.msra.mxu0 %v1345_v21  ;;  %v1390_v62 = vld [vmem:[%s1783_s1 + $0x1a8] sm:$0xff]   ;;  %v1394_v2 = vld [vmem:[%s1783_s1 + $0x1f0] sm:$0xff]   ;;  %v1397_v5 = vld [vmem:[%s1783_s1 + $0x138] sm:$0xff]  }
  0x18   :  { %1168 = vmatprep.subr.bf16.mxu0 %v1348_v24  ;;  %v1395_v3 = vld [vmem:[%s1783_s1 + $0x1b0] sm:$0xff]   ;;  %v1398_v6 = vld [vmem:[%s1783_s1 + $0x1f8] sm:$0xff]   ;;  %v1403_v10 = vld [vmem:[%s1783_s1 + $0x200] sm:$0xff]  }
  0x19   :  { %1195 = vmatpush3.bf16.msra.mxu1 %v1347_v23  ;;  %v1399_v7 = vld [vmem:[%s1782_s0 + $0x10] ss:$36 sps:$4 sm:$0xff]   ;;  %v1402_v9 = vld [vmem:[%s1783_s1 + $0x1b8] sm:$0xff]   ;;  %v1407_v13 = vld [vmem:[%s1783_s1 + $0x208] sm:$0xff]  }
  0x1a   :  { %1196 = vmatprep.subr.bf16.mxu1 %v1350_v26  ;;  %v1401_v8 = vld [vmem:[%s1782_s0 + $0x14] ss:$36 sps:$4 sm:$0xff]   ;;  %v1406_v12 = vld [vmem:[%s1782_s0 + $0x1c] ss:$36 sps:$4 sm:$0xff]   ;;  %v1412_v17 = vld [vmem:[%s1782_s0 + $0x64] ss:$36 sps:$4 sm:$0xff]  }
  0x1b   :  { %1169 = vmatpush3.bf16.msra.mxu0 %v1349_v25  ;;  %v1404_v11 = vld [vmem:[%s1782_s0 + $0x18] ss:$36 sps:$4 sm:$0xff]   ;;  %v1411_v16 = vld [vmem:[%s1783_s1 + $0x210] sm:$0xff]   ;;  %v1414_v18 = vld [vmem:[%s1782_s0 + $0x60] ss:$36 sps:$4 sm:$0xff]  }
  0x1c   :  { %1170 = vmatprep.subr.bf16.mxu0 %v1352_v28  ;;  %v1408_v14 = vld [vmem:[%s1782_s0 + $0x5c] ss:$36 sps:$4 sm:$0xff]  }
  0x1d   :  { %1197 = vmatpush3.bf16.msra.mxu1 %v1351_v27  ;;  %v1410_v15 = vld [vmem:[%s1782_s0 + $0x58] ss:$36 sps:$4 sm:$0xff]   ;;  %v1416_v20 = vld [vmem:[%s1783_s1 + $0x220] sm:$0xff]  }
  0x1e   :  { %1198 = vmatprep.subr.bf16.mxu1 %v1354_v30  ;;  %v1415_v19 = vld [vmem:[%s1783_s1 + $0x218] sm:$0xff]   ;;  %v1420_v21 = vld [vmem:[%s1782_s0 + $0x20] ss:$36 sps:$4 sm:$0xff]  }
  0x1f   :  { %1171 = vmatpush3.bf16.msra.mxu0 %v1353_v29 }
  0x20   :  { %1212 = vmatprep.subr.bf16.mxu0 %v1359_v34 }
  0x21   :  { %1199 = vmatpush3.bf16.msra.mxu1 %v1358_v33 }
  0x22   :  { %750 = vmatmul.mubr.bf16.vlgmr.msra.gmra.mrb[0].mxu0 %v1355_v31  ;;  %1240 = vmatprep.subr.bf16.mxu1 %v1364_v38 }
  0x23   :  { %1213 = vmatpush3.bf16.msra.mxu0 %v1363_v37  ;;  %757 = vmatprep.mubr.bf16.mxu0 %v1383_v57 }
  0x24   :  { %799 = vmatmul.mubr.bf16.vlgmr.msra.gmra.mrb[0].mxu1 %v1360_v35  ;;  %1214 = vmatprep.subr.bf16.mxu0 %v1366_v40 }
  0x25   :  { %1241 = vmatpush3.bf16.msra.mxu1 %v1365_v39  ;;  %806 = vmatprep.mubr.bf16.mxu1 %v1388_v61 }
  0x26   :  { %1242 = vmatprep.subr.bf16.mxu1 %v1368_v42 }
  0x27   :  { %1215 = vmatpush3.bf16.msra.mxu0 %v1367_v41 }
  0x28   :  { %1216 = vmatprep.subr.bf16.mxu0 %v1370_v44 }
  0x29   :  { %1243 = vmatpush3.bf16.msra.mxu1 %v1369_v43 }
  0x2a   :  { %1244 = vmatprep.subr.bf16.mxu1 %v1372_v46  ;;  %758 = vmatmul.mubr.bf16.gmra.mrb[4].mxu0 %v1386_v59 }
  0x2b   :  { %1217 = vmatpush3.bf16.msra.mxu0 %v1371_v45  ;;  %847 = vmatprep.mubr.bf16.mxu0 %v1401_v8 }
  0x2c   :  { %1218 = vmatprep.subr.bf16.mxu0 %v1374_v48  ;;  %807 = vmatmul.mubr.bf16.gmra.mrb[4].mxu1 %v1391_v63 }
  0x2d   :  { %1245 = vmatpush3.bf16.msra.mxu1 %v1373_v47  ;;  %896 = vmatprep.mubr.bf16.mxu1 %v1406_v12 }
  0x2e   :  { %1246 = vmatprep.subr.bf16.mxu1 %v1376_v50 }
  0x2f   :  { %1219 = vmatpush3.bf16.msra.mxu0 %v1375_v49 }
  0x30   :  { %1220 = vmatprep.subr.bf16.mxu0 %v1378_v52 }
  0x31   :  { %1247 = vmatpush3.bf16.msra.mxu1 %v1377_v51 }
  0x32   :  { %1248 = vmatprep.subr.bf16.mxu1 %v1380_v54 }
  0x33   :  { %1221 = vmatpush3.bf16.msra.mxu0 %v1379_v53 }
  0x34   :  { %1222 = vmatprep.subr.bf16.mxu0 %v1382_v56 }
  0x35   :  { %1249 = vmatpush3.bf16.msra.mxu1 %v1381_v55 }
  0x36   :  { %1250 = vmatprep.subr.bf16.mxu1 %v1387_v60 }
  0x37   :  { %1223 = vmatpush3.bf16.msra.mxu0 %v1385_v58 }
  0x38   :  { %1224 = vmatprep.subr.bf16.mxu0 %v1392_v0 }
  0x39   :  { %1251 = vmatpush3.bf16.msra.mxu1 %v1390_v62 }
  0x3a   :  { %1252 = vmatprep.subr.bf16.mxu1 %v1394_v2 }
  0x3b   :  { %1225 = vmatpush3.bf16.msra.mxu0 %v1393_v1 }
  0x3c   :  { %1226 = vmatprep.subr.bf16.mxu0 %v1396_v4 }
  0x3d   :  { %1253 = vmatpush3.bf16.msra.mxu1 %v1395_v3 }
  0x3e   :  { %1254 = vmatprep.subr.bf16.mxu1 %v1398_v6 }
  0x3f   :  { %1227 = vmatpush3.bf16.msra.mxu0 %v1397_v5 }
  0x40   :  { %1283 = vmatprep.subr.bf16.mxu0 %v1403_v10 }
  0x41   :  { %1255 = vmatpush3.bf16.msra.mxu1 %v1402_v9 }
  0x42   :  { %848 = vmatmul.mubr.bf16.vlgmr.msra.gmra.mrb[8].mxu0 %v1399_v7 }
  0x43   :  { %1284 = vmatpush3.bf16.msra.mxu0 %v1403_v10  ;;  %855 = vmatprep.mubr.bf16.mxu0 %v1408_v14 }
  0x44   :  { %897 = vmatmul.mubr.bf16.vlgmr.msra.gmra.mrb[8].mxu1 %v1404_v11  ;;  %1285 = vmatprep.subr.bf16.mxu0 %v1407_v13 }
  0x45   :  { %904 = vmatprep.mubr.bf16.mxu1 %v1412_v17 }
  0x47   :  { %1286 = vmatpush3.bf16.msra.mxu0 %v1407_v13 }
  0x48   :  { %1287 = vmatprep.subr.bf16.mxu0 %v1411_v16 }
  0x4a   :  { %856 = vmatmul.mubr.bf16.gmra.mrb[12].mxu0 %v1410_v15 }
  0x4b   :  { %1288 = vmatpush3.bf16.msra.mxu0 %v1411_v16 }
  0x4c   :  { %905 = vmatmul.mubr.bf16.gmra.mrb[12].mxu1 %v1414_v18  ;;  %1289 = vmatprep.subr.bf16.mxu0 %v1415_v19 }
  0x4d   :  { %10 = vsyncpa [#allocation3], 0  ;;  %1299 = vmatprep.mubr.bf16.mxu0 %v1420_v21  ;;  %v1417_v22 = vld [vmem:[%s1783_s1 + $0x228] sm:$0xff]   ;;  %v1418_v23 = vld [vmem:[%s1783_s1 + $0x230] sm:$0xff]   ;;  %v1446_v26 = vmov 0.0|0.0   ;;  %vm1447_vm0 = vmmov 0  }
  0x4e   :  { %v1419_v24 = vld [vmem:[%s1783_s1 + $0x238] sm:$0xff]   ;;  %v1421_v25 = vld [vmem:[%s1782_s0 + $0x68] ss:$36 sps:$4 sm:$0xff]   ;;  %1314 = vmatprep.subr.bf16.mxu1 %v1446_v26  ;;  %v1448_v27 = vmov 0.0   ;;  %v1064_v29 = vld [vmem:[%s1784_s2] ss:$0 sm:$0xff] }
  0x4f   :  { %1290 = vmatpush3.bf16.msra.mxu0 %v1415_v19  ;;  %1311 = vmatprep.mubr.msk.f32.mxu1 %vm1447_vm0, %v1448_v27  ;;  %vm975_vm1 = vcmask 261120  }
  0x50   :  { %1291 = vmatprep.subr.bf16.mxu0 %v1416_v20 }
  0x53   :  { %1292 = vmatpush3.bf16.msra.mxu0 %v1416_v20 }
  0x54   :  { %1293 = vmatprep.subr.bf16.mxu0 %v1417_v22 }
  0x57   :  { %1294 = vmatpush3.bf16.msra.mxu0 %v1417_v22 }
  0x58   :  { %1295 = vmatprep.subr.bf16.mxu0 %v1418_v23 }
  0x5b   :  { %1296 = vmatpush3.bf16.msra.mxu0 %v1418_v23 }
  0x5c   :  { %1297 = vmatprep.subr.bf16.mxu0 %v1419_v24 }
  0x5f   :  { %1298 = vmatpush3.bf16.msra.mxu0 %v1419_v24 }
  0x62   :  { %1300 = vmatmul.mubr.bf16.vlgmr.msra.gmra.mrb[16].mxu0 %v1421_v25 }
  0xf5   :  { %v1172_v28 = vpop.f32.mrb[0].mxu0 }
  0xf6   :  { %v1173_v30 = vpop.f32.mrb[1].mxu0 }
  0xf7   :  { %v1174_v31 = vadd.f32 %v1173_v30, %v1172_v28  ;;  %v1175_v32 = vpop.f32.mrb[2].mxu0  ;;  %v1200_v33 = vpop.f32.mrb[0].mxu1 }
  0xf8   :  { %v1176_v34 = vpop.f32.mrb[3].mxu0  ;;  %v1201_v37 = vpop.f32.mrb[1].mxu1 }
  0xf9   :  { %v752_v35 = vadd.f32 %v1174_v31, %v1064_v29  ;;  %v1177_v36 = vadd.f32 %v1176_v34, %v1175_v32  ;;  %v1202_v38 = vadd.f32 %v1201_v37, %v1200_v33  ;;  %v1203_v39 = vpop.f32.mrb[2].mxu1  ;;  %v964_v31 = vld [vmem:[%s1785_s3 + $0x10] sm:$0xff]  ;;  %v962_v34 = vld [vmem:[%s1785_s3] sm:$0xff]  ;;  %v965_v37 = vld [vmem:[%s1785_s3 + $0x18] sm:$0xff] }
  0xfa   :  { %v1204_v41 = vpop.f32.mrb[3].mxu1 }
  0xfb   :  { %v755_v40 = vadd.f32 %v1177_v36, %v1064_v29  ;;  %v801_v42 = vadd.f32 %v1202_v38, %v752_v35  ;;  %v1205_v43 = vadd.f32 %v1204_v41, %v1203_v39  ;;  %v963_v41 = vld [vmem:[%s1785_s3 + $0x8] sm:$0xff]  ;;  %s1449_s3 = smov [#allocation2]  }
  0xfc   :  { %s1056_s7 = sshll.u32 %s1449_s3, 4  ;;  %s1057_s7 = int_to_ptr.vmem [resolvable:$true] %s1056_s7 }
  0xfd   :  { %v804_v44 = vadd.f32 %v1205_v43, %v755_v40  ;;  %v1178_v45 = vpop.f32.mrb[4].mxu0  ;;  %s1422_s8 = scalar_lea.vmem %s1057_s7, 32  ;;  %p1427_p1 = scmp.lt.s32.totalorder %s1057_s7, %s1057_s7 }
  0xfe   :  { %v1179_v46 = vpop.f32.mrb[5].mxu0  ;;  %p1423_p0 = scmp.ne.s32.totalorder %s1057_s7, %s1422_s8  ;;  %p1428_p2 = scmp.lt.s32.totalorder %s1422_s8, %s1422_s8 }
  0xff   :  { %v1180_v47 = vadd.f32 %v1179_v46, %v1178_v45  ;;  %v1181_v48 = vpop.f32.mrb[6].mxu0  ;;  %v1206_v49 = vpop.f32.mrb[4].mxu1 }
 0x100   :  { %v1182_v50 = vpop.f32.mrb[7].mxu0  ;;  %v1207_v53 = vpop.f32.mrb[5].mxu1  ;;  %p1429_p3 = por %p1428_p2, %p1427_p1 }
 0x101   :  { %v760_v51 = vadd.f32 %v1180_v47, %v1064_v29  ;;  %v1183_v52 = vadd.f32 %v1182_v50, %v1181_v48  ;;  %v1208_v54 = vadd.f32 %v1207_v53, %v1206_v49  ;;  %v1209_v55 = vpop.f32.mrb[6].mxu1 }
 0x102   :  { %v1210_v57 = vpop.f32.mrb[7].mxu1  ;;  %p1430_p4 = pnand %p1429_p3, %p1423_p0 }
 0x103   :  { %v763_v56 = vadd.f32 %v1183_v52, %v1064_v29  ;;  %v809_v58 = vadd.f32 %v1208_v54, %v760_v51  ;;  %v1211_v59 = vadd.f32 %v1210_v57, %v1209_v55  ;;  %v974_v52 = vld [vmem:[%s1786_s4] sm:$0x3] }
 0x105   :  { %v812_v60 = vadd.f32 %v1211_v59, %v763_v56 }
 0x115   :  { %v1228_v61 = vpop.f32.mrb[8].mxu0 }
 0x116   :  { %v1229_v62 = vpop.f32.mrb[9].mxu0 }
 0x117   :  { %v1230_v63 = vadd.f32 %v1229_v62, %v1228_v61  ;;  %v1231_v0 = vpop.f32.mrb[10].mxu0  ;;  %v1256_v1 = vpop.f32.mrb[8].mxu1 }
 0x118   :  { %v1232_v2 = vpop.f32.mrb[11].mxu0  ;;  %v1257_v5 = vpop.f32.mrb[9].mxu1 }
 0x119   :  { %v850_v3 = vadd.f32 %v1230_v63, %v801_v42  ;;  %v1233_v4 = vadd.f32 %v1232_v2, %v1231_v0  ;;  %v1258_v6 = vadd.f32 %v1257_v5, %v1256_v1  ;;  %v1259_v7 = vpop.f32.mrb[10].mxu1 }
 0x11a   :  { %v1260_v9 = vpop.f32.mrb[11].mxu1 }
 0x11b   :  { %v853_v8 = vadd.f32 %v1233_v4, %v804_v44  ;;  %v1261_v10 = vadd.f32 %v1260_v9, %v1259_v7  ;;  %v899_v11 = vadd.f32 %v1258_v6, %v850_v3 }
 0x11d   :  { %v1234_v12 = vpop.f32.mrb[12].mxu0  ;;  %v902_v14 = vadd.f32 %v1261_v10, %v853_v8 }
 0x11e   :  { %v1235_v13 = vpop.f32.mrb[13].mxu0 }
 0x11f   :  { %v1236_v15 = vadd.f32 %v1235_v13, %v1234_v12  ;;  %v1237_v16 = vpop.f32.mrb[14].mxu0  ;;  %v1262_v17 = vpop.f32.mrb[12].mxu1 }
 0x120   :  { %v1238_v18 = vpop.f32.mrb[15].mxu0  ;;  %v1263_v21 = vpop.f32.mrb[13].mxu1 }
 0x121   :  { %v858_v19 = vadd.f32 %v1236_v15, %v809_v58  ;;  %v1239_v20 = vadd.f32 %v1238_v18, %v1237_v16  ;;  %v1264_v22 = vadd.f32 %v1263_v21, %v1262_v17  ;;  %v1265_v23 = vpop.f32.mrb[14].mxu1 }
 0x122   :  { %v1266_v25 = vpop.f32.mrb[15].mxu1 }
 0x123   :  { %v861_v24 = vadd.f32 %v1239_v20, %v812_v60  ;;  %v1267_v27 = vadd.f32 %v1266_v25, %v1265_v23  ;;  %v907_v28 = vadd.f32 %v1264_v22, %v858_v19 }
 0x125   :  { %v910_v29 = vadd.f32 %v1267_v27, %v861_v24 }
 0x135   :  { %v1301_v30 = vpop.f32.mrb[16].mxu0 }
 0x136   :  { %v956_v32 = vadd.f32 %v1301_v30, %v907_v28  ;;  %v947_v33 = vpop.f32.mrb[17].mxu0 }
 0x137   :  { %v948_v35 = vadd.f32 %v947_v33, %v899_v11  ;;  %v1302_v36 = vpop.f32.mrb[18].mxu0 }
 0x138   :  { %v968_v38 = vadd.f32 %v964_v31, %v956_v32  ;;  %v959_v39 = vadd.f32 %v1302_v36, %v910_v29  ;;  %v950_v40 = vpop.f32.mrb[19].mxu0 }
 0x139   :  { %v966_v42 = vadd.f32 %v962_v34, %v948_v35  ;;  %v951_v43 = vadd.f32 %v950_v40, %v902_v14 }
 0x13a   :  { %v969_v44 = vadd.f32 %v965_v37, %v959_v39  ;;  %v972_v46 = vmax.f32 %v968_v38, 0.0 }
 0x13b   :  { %v967_v45 = vadd.f32 %v963_v41, %v951_v43  ;;  %v970_v48 = vmax.f32 %v966_v42, 0.0 }
 0x13c   :  { %v973_v47 = vmax.f32 %v969_v44, 0.0 }
 0x13d   :  { %v971_v49 = vmax.f32 %v967_v45, 0.0 }
 0x13e   :  { %v1318_v50 = vpack.c.bf16 %v973_v47, %v972_v46 }
 0x13f   :  { %v1315_v51 = vpack.c.bf16 %v971_v49, %v970_v48 }
 0x141   :  { %1316 = vmatpush3.bf16.msra.mxu1 %v1315_v51 }
 0x142   :  { %1317 = vmatprep.subr.bf16.mxu1 %v1446_v26 }
 0x145   :  { %1319 = vmatpush3.bf16.msra.mxu1 %v1318_v50 }
 0x148   :  { %1312 = vmatmul.mubr.msk.f32.vlgmr.msra.gmra.mrb[16].mxu1 %vm975_vm1, %v974_v52 }
 0x21b   :  { %v1045_v53 = vpop.f32.mrb[16].mxu1 }
 0x21c   :  { %1049 = vst [vmem:[#allocation2] sm:$0x3] %v1045_v53  ;;  %v1313_v54 = vpop.f32.mrb[17].mxu1 }
 0x21d   :  { %1433 = shalt.err (!%p1430_p4)
}
 0x21e   :  { %s1434_s11 = scalar_lea.hbm %s1787_s5, 32 }
 0x21f   :  { %p1435_p5 = scmp.ne.s32.totalorder %s1787_s5, %s1434_s11  ;;  %p1438_p6 = scmp.lt.u32.totalorder %s1434_s11, %s1787_s5 }
 0x221   :  { %p1440_p7 = pnand %p1438_p6, %p1435_p5 }
 0x223   :  { %1443 = shalt.err (!%p1440_p7)
}
 0x224   :  { %1059 = dma.vmem_to_hbm [thread:$0]  %s1057_s7, 32, %s1787_s5, [#allocation3]  }
 0x225   :  { %1444 = dma.done.wait [#allocation3], 32  }
 0x226   :  { %1445 = vsyncadd [#allocation3], 4294967264 }
 0x227   :  { %1063 = vsyncpa [#allocation3], 1 }

</bundles_post_ra>
